<compile_context>
chip_gen: v6e
topology: v6e:2x2x1
jax: 0.10.0
libtpu: 0.0.40
codegen_flags: <defaults>
</compile_context>

<pallas_src>
import functools
import math

import jax
import jax.numpy as jnp
from jax.experimental import pallas as pl
from jax.experimental.pallas import tpu as pltpu

ENC_DIMS = [128, 64, 36, 18, 9]
DEC_DIMS = [18, 36, 64, 128]


def _round_up(x, m):
    return ((x + m - 1) // m) * m


# --------------------------------------------------------------------------
# One-time parameter construction + packing (hoisted out of the forward pass)
# --------------------------------------------------------------------------
def make_params(key, input_size):
    """torch.nn.Linear-style U(-1/sqrt(fan_in), 1/sqrt(fan_in)) init.

    Returns:
      w_slab: bf16 (n_layers, P, P)   zero-padded weights, y = x @ W layout
      b_slab: f32  (n_layers, 1, P)   zero-padded biases
      dims:   list of true layer dims [input, 128, ..., input]
    """
    dims = [input_size] + ENC_DIMS + DEC_DIMS + [input_size]
    P = _round_up(max(dims), 128)
    n_layers = len(dims) - 1
    ws, bs = [], []
    for i in range(n_layers):
        fan_in, fan_out = dims[i], dims[i + 1]
        key, kw, kb = jax.random.split(key, 3)
        bound = 1.0 / math.sqrt(fan_in)
        w = jax.random.uniform(kw, (fan_in, fan_out), jnp.float32, -bound, bound)
        b = jax.random.uniform(kb, (fan_out,), jnp.float32, -bound, bound)
        ws.append(jnp.pad(w, ((0, P - fan_in), (0, P - fan_out))).astype(jnp.bfloat16))
        bs.append(jnp.pad(b, (0, P - fan_out)).reshape(1, P))
    return jnp.stack(ws), jnp.stack(bs), dims


# --------------------------------------------------------------------------
# Fused kernel
# --------------------------------------------------------------------------
def ae_kernel(x_ref, w_ref, b_ref, o_ref):
    n_layers = w_ref.shape[0]
    tb, d_in = x_ref.shape

    def layer_params(li):
        w = w_ref[li]                       # (P, P) bf16, resident in VMEM
        if li == 0 and d_in < w.shape[0]:
            w = w[:d_in, :]                 # static, tile-aligned value slice
        return w, b_ref[li]                 # bias (1, P) f32

    def apply(h, w, b, last):
        # bf16 operands into the MXU, f32 accumulation; f32 epilogue.
        z = jnp.dot(h, w, preferred_element_type=jnp.float32) + b
        if not last:
            return jnp.maximum(z, 0.0).astype(jnp.bfloat16)   # ReLU (VPU)
        # sigmoid: exp on EUP, approx reciprocal on EUP -> VALU stays free
        return pl.reciprocal(1.0 + jnp.exp(-z), approx=True)

    split = (tb >= 16) and (tb % 16 == 0)
    if split:
        # Two independent batch halves interleaved through the layer chain so
        # MXU fill/drain of one half overlaps the other half's epilogue.
        half = tb // 2
        h0 = x_ref[pl.ds(0, half), :].astype(jnp.bfloat16)
        h1 = x_ref[pl.ds(half, half), :].astype(jnp.bfloat16)
        for li in range(n_layers):
            w, b = layer_params(li)
            last = li == n_layers - 1
            h0 = apply(h0, w, b, last)
            h1 = apply(h1, w, b, last)
        o_ref[pl.ds(0, half), :] = h0.astype(o_ref.dtype)
        o_ref[pl.ds(half, half), :] = h1.astype(o_ref.dtype)
    else:
        h = x_ref[...].astype(jnp.bfloat16)
        for li in range(n_layers):
            w, b = layer_params(li)
            h = apply(h, w, b, li == n_layers - 1)
        o_ref[...] = h.astype(o_ref.dtype)


# --------------------------------------------------------------------------
# Forward wrapper
# --------------------------------------------------------------------------
@functools.partial(jax.jit, static_argnames=("tile_b",))
def ae_forward(x, w_slab, b_slab, tile_b=None):
    B, D = x.shape
    P = w_slab.shape[-1]
    tb = B if tile_b is None else min(tile_b, B)
    grid = (pl.cdiv(B, tb),)

    out = pl.pallas_call(
        ae_kernel,
        out_shape=jax.ShapeDtypeStruct((B, P), jnp.float32),
        grid=grid,
        in_specs=[
            # x: (tb, D) — last dim equals the full array dim, no padding copy.
            pl.BlockSpec((tb, D), lambda i: (i, 0)),
            # packed params: constant index maps -> fetched once, stay resident.
            pl.BlockSpec(w_slab.shape, lambda i: (0, 0, 0)),
            pl.BlockSpec(b_slab.shape, lambda i: (0, 0, 0)),
        ],
        # lane-dense (P = 128-multiple) output -> unmasked vst.
        out_specs=pl.BlockSpec((tb, P), lambda i: (i, 0)),
        compiler_params=pltpu.CompilerParams(
            dimension_semantics=("parallel",)),
    )(x, w_slab, b_slab)

    return out[:, :D] if P != D else out


def _default_tile_b(batch):
    """Full batch in one grid step on single-TC chips (v5e/v6e); split into
    two parallel steps on v7x (2 TensorCores per chip)."""
    try:
        kind = jax.devices()[0].device_kind.lower()
    except Exception:
        kind = ""
    if "v7" in kind and batch % 16 == 0:
        return batch // 2
    return batch


# --------------------------------------------------------------------------
# Pure-JAX reference (uses the true, unpadded layer dims)
# --------------------------------------------------------------------------
def ae_reference(x, w_slab, b_slab, dims):
    h = x.astype(jnp.bfloat16)
    n_layers = len(dims) - 1
    for li in range(n_layers):
        w = w_slab[li, :dims[li], :dims[li + 1]]
        b = b_slab[li, 0, :dims[li + 1]]
        z = jnp.dot(h, w, preferred_element_type=jnp.float32) + b
        if li < n_layers - 1:
            h = jnp.maximum(z, 0.0).astype(jnp.bfloat16)
        else:
            h = jax.nn.sigmoid(z)
    return h.astype(jnp.float32)


if __name__ == "__main__":
    key = jax.random.PRNGKey(0)
    input_size = 64
    batch = 512

    key, kx, kp = jax.random.split(key, 3)
    x = jax.random.uniform(kx, (batch, input_size), jnp.float32)
    w_slab, b_slab, dims = make_params(kp, input_size)

    # One-time bf16 cast of the input (kernel would cast anyway; this halves
    # the input-side HBM traffic of the kernel itself).
    x_bf16 = x.astype(jnp.bfloat16)

    out = ae_forward(x_bf16, w_slab, b_slab, tile_b=_default_tile_b(batch))
    jax.block_until_ready(out)

    ref = ae_reference(x_bf16, w_slab, b_slab, dims)
    assert out.shape == (batch, input_size)
    max_err = float(jnp.max(jnp.abs(out - ref)))
    # Tolerance covers the EUP approximate reciprocal (~2^-12) in the sigmoid.
    assert max_err < 2e-3, max_err

    print("KERNEL_OK")
</pallas_src>

<mosaic_0001>
module attributes {stable_mosaic.version = 11 : i64} {
  func.func @ae_kernel(%arg0: i32, %arg1: memref<512x64xbf16, #tpu.memory_space<vmem>>, %arg2: memref<10x128x128xbf16, #tpu.memory_space<vmem>>, %arg3: memref<10x1x128xf32, #tpu.memory_space<vmem>>, %arg4: memref<512x128xf32, #tpu.memory_space<vmem>>) attributes {dimension_semantics = [#tpu.dimension_semantics<parallel>], iteration_bounds = array<i64: 1>, scalar_prefetch = 0 : i64, scratch_operands = 0 : i64, tpu.core_type = #tpu.core_type<tc>, window_params = [{transform_indices = @transform_0, window_bounds = array<i64: 512, 64>}, {pipeline_mode = #tpu.pipeline_mode<synchronous>, transform_indices = @transform_1, window_bounds = array<i64: 10, 128, 128>}, {pipeline_mode = #tpu.pipeline_mode<synchronous>, transform_indices = @transform_2, window_bounds = array<i64: 10, 1, 128>}, {transform_indices = @transform_3, window_bounds = array<i64: 512, 128>}]} {
    %c0 = arith.constant 0 : index
    %c0_0 = arith.constant 0 : index
    %0 = vector.load %arg1[%c0, %c0_0] : memref<512x64xbf16, #tpu.memory_space<vmem>>, vector<256x64xbf16>
    %c256 = arith.constant 256 : index
    %c0_1 = arith.constant 0 : index
    %1 = vector.load %arg1[%c256, %c0_1] : memref<512x64xbf16, #tpu.memory_space<vmem>>, vector<256x64xbf16>
    %c0_2 = arith.constant 0 : index
    %c0_3 = arith.constant 0 : index
    %c0_4 = arith.constant 0 : index
    %2 = vector.load %arg2[%c0_2, %c0_3, %c0_4] : memref<10x128x128xbf16, #tpu.memory_space<vmem>>, vector<1x128x128xbf16>
    %3 = vector.shape_cast %2 : vector<1x128x128xbf16> to vector<128x128xbf16>
    %4 = vector.extract_strided_slice %3 {offsets = [0, 0], sizes = [64, 128], strides = [1, 1]} : vector<128x128xbf16> to vector<64x128xbf16>
    %c0_5 = arith.constant 0 : index
    %c0_6 = arith.constant 0 : index
    %c0_7 = arith.constant 0 : index
    %5 = vector.load %arg3[%c0_5, %c0_6, %c0_7] : memref<10x1x128xf32, #tpu.memory_space<vmem>>, vector<1x1x128xf32>
    %6 = vector.shape_cast %5 : vector<1x1x128xf32> to vector<1x128xf32>
    %cst = arith.constant dense<0.000000e+00> : vector<256x128xf32>
    %7 = tpu.matmul %0, %4, %cst {dimension_numbers = #tpu.dot_dimension_numbers<[1], [0], [0], [1], [0, 0, 1, 1], [], []>} : vector<256x64xbf16>, vector<64x128xbf16>, vector<256x128xf32> -> vector<256x128xf32>
    %8 = vector.broadcast %6 : vector<1x128xf32> to vector<256x128xf32>
    %9 = arith.addf %7, %8 : vector<256x128xf32>
    %cst_8 = arith.constant 0.000000e+00 : f32
    %10 = vector.broadcast %cst_8 : f32 to vector<256x128xf32>
    %11 = arith.maximumf %9, %10 : vector<256x128xf32>
    %12 = arith.truncf %11 : vector<256x128xf32> to vector<256x128xbf16>
    %cst_9 = arith.constant dense<0.000000e+00> : vector<256x128xf32>
    %13 = tpu.matmul %1, %4, %cst_9 {dimension_numbers = #tpu.dot_dimension_numbers<[1], [0], [0], [1], [0, 0, 1, 1], [], []>} : vector<256x64xbf16>, vector<64x128xbf16>, vector<256x128xf32> -> vector<256x128xf32>
    %14 = vector.broadcast %6 : vector<1x128xf32> to vector<256x128xf32>
    %15 = arith.addf %13, %14 : vector<256x128xf32>
    %cst_10 = arith.constant 0.000000e+00 : f32
    %16 = vector.broadcast %cst_10 : f32 to vector<256x128xf32>
    %17 = arith.maximumf %15, %16 : vector<256x128xf32>
    %18 = arith.truncf %17 : vector<256x128xf32> to vector<256x128xbf16>
    %c1 = arith.constant 1 : index
    %c0_11 = arith.constant 0 : index
    %c0_12 = arith.constant 0 : index
    %19 = vector.load %arg2[%c1, %c0_11, %c0_12] : memref<10x128x128xbf16, #tpu.memory_space<vmem>>, vector<1x128x128xbf16>
    %20 = vector.shape_cast %19 : vector<1x128x128xbf16> to vector<128x128xbf16>
    %c1_13 = arith.constant 1 : index
    %c0_14 = arith.constant 0 : index
    %c0_15 = arith.constant 0 : index
    %21 = vector.load %arg3[%c1_13, %c0_14, %c0_15] : memref<10x1x128xf32, #tpu.memory_space<vmem>>, vector<1x1x128xf32>
    %22 = vector.shape_cast %21 : vector<1x1x128xf32> to vector<1x128xf32>
    %cst_16 = arith.constant dense<0.000000e+00> : vector<256x128xf32>
    %23 = tpu.matmul %12, %20, %cst_16 {dimension_numbers = #tpu.dot_dimension_numbers<[1], [0], [0], [1], [0, 0, 1, 1], [], []>} : vector<256x128xbf16>, vector<128x128xbf16>, vector<256x128xf32> -> vector<256x128xf32>
    %24 = vector.broadcast %22 : vector<1x128xf32> to vector<256x128xf32>
    %25 = arith.addf %23, %24 : vector<256x128xf32>
    %cst_17 = arith.constant 0.000000e+00 : f32
    %26 = vector.broadcast %cst_17 : f32 to vector<256x128xf32>
    %27 = arith.maximumf %25, %26 : vector<256x128xf32>
    %28 = arith.truncf %27 : vector<256x128xf32> to vector<256x128xbf16>
    %cst_18 = arith.constant dense<0.000000e+00> : vector<256x128xf32>
    %29 = tpu.matmul %18, %20, %cst_18 {dimension_numbers = #tpu.dot_dimension_numbers<[1], [0], [0], [1], [0, 0, 1, 1], [], []>} : vector<256x128xbf16>, vector<128x128xbf16>, vector<256x128xf32> -> vector<256x128xf32>
    %30 = vector.broadcast %22 : vector<1x128xf32> to vector<256x128xf32>
    %31 = arith.addf %29, %30 : vector<256x128xf32>
    %cst_19 = arith.constant 0.000000e+00 : f32
    %32 = vector.broadcast %cst_19 : f32 to vector<256x128xf32>
    %33 = arith.maximumf %31, %32 : vector<256x128xf32>
    %34 = arith.truncf %33 : vector<256x128xf32> to vector<256x128xbf16>
    %c2 = arith.constant 2 : index
    %c0_20 = arith.constant 0 : index
    %c0_21 = arith.constant 0 : index
    %35 = vector.load %arg2[%c2, %c0_20, %c0_21] : memref<10x128x128xbf16, #tpu.memory_space<vmem>>, vector<1x128x128xbf16>
    %36 = vector.shape_cast %35 : vector<1x128x128xbf16> to vector<128x128xbf16>
    %c2_22 = arith.constant 2 : index
    %c0_23 = arith.constant 0 : index
    %c0_24 = arith.constant 0 : index
    %37 = vector.load %arg3[%c2_22, %c0_23, %c0_24] : memref<10x1x128xf32, #tpu.memory_space<vmem>>, vector<1x1x128xf32>
    %38 = vector.shape_cast %37 : vector<1x1x128xf32> to vector<1x128xf32>
    %cst_25 = arith.constant dense<0.000000e+00> : vector<256x128xf32>
    %39 = tpu.matmul %28, %36, %cst_25 {dimension_numbers = #tpu.dot_dimension_numbers<[1], [0], [0], [1], [0, 0, 1, 1], [], []>} : vector<256x128xbf16>, vector<128x128xbf16>, vector<256x128xf32> -> vector<256x128xf32>
    %40 = vector.broadcast %38 : vector<1x128xf32> to vector<256x128xf32>
    %41 = arith.addf %39, %40 : vector<256x128xf32>
    %cst_26 = arith.constant 0.000000e+00 : f32
    %42 = vector.broadcast %cst_26 : f32 to vector<256x128xf32>
    %43 = arith.maximumf %41, %42 : vector<256x128xf32>
    %44 = arith.truncf %43 : vector<256x128xf32> to vector<256x128xbf16>
    %cst_27 = arith.constant dense<0.000000e+00> : vector<256x128xf32>
    %45 = tpu.matmul %34, %36, %cst_27 {dimension_numbers = #tpu.dot_dimension_numbers<[1], [0], [0], [1], [0, 0, 1, 1], [], []>} : vector<256x128xbf16>, vector<128x128xbf16>, vector<256x128xf32> -> vector<256x128xf32>
    %46 = vector.broadcast %38 : vector<1x128xf32> to vector<256x128xf32>
    %47 = arith.addf %45, %46 : vector<256x128xf32>
    %cst_28 = arith.constant 0.000000e+00 : f32
    %48 = vector.broadcast %cst_28 : f32 to vector<256x128xf32>
    %49 = arith.maximumf %47, %48 : vector<256x128xf32>
    %50 = arith.truncf %49 : vector<256x128xf32> to vector<256x128xbf16>
    %c3 = arith.constant 3 : index
    %c0_29 = arith.constant 0 : index
    %c0_30 = arith.constant 0 : index
    %51 = vector.load %arg2[%c3, %c0_29, %c0_30] : memref<10x128x128xbf16, #tpu.memory_space<vmem>>, vector<1x128x128xbf16>
    %52 = vector.shape_cast %51 : vector<1x128x128xbf16> to vector<128x128xbf16>
    %c3_31 = arith.constant 3 : index
    %c0_32 = arith.constant 0 : index
    %c0_33 = arith.constant 0 : index
    %53 = vector.load %arg3[%c3_31, %c0_32, %c0_33] : memref<10x1x128xf32, #tpu.memory_space<vmem>>, vector<1x1x128xf32>
    %54 = vector.shape_cast %53 : vector<1x1x128xf32> to vector<1x128xf32>
    %cst_34 = arith.constant dense<0.000000e+00> : vector<256x128xf32>
    %55 = tpu.matmul %44, %52, %cst_34 {dimension_numbers = #tpu.dot_dimension_numbers<[1], [0], [0], [1], [0, 0, 1, 1], [], []>} : vector<256x128xbf16>, vector<128x128xbf16>, vector<256x128xf32> -> vector<256x128xf32>
    %56 = vector.broadcast %54 : vector<1x128xf32> to vector<256x128xf32>
    %57 = arith.addf %55, %56 : vector<256x128xf32>
    %cst_35 = arith.constant 0.000000e+00 : f32
    %58 = vector.broadcast %cst_35 : f32 to vector<256x128xf32>
    %59 = arith.maximumf %57, %58 : vector<256x128xf32>
    %60 = arith.truncf %59 : vector<256x128xf32> to vector<256x128xbf16>
    %cst_36 = arith.constant dense<0.000000e+00> : vector<256x128xf32>
    %61 = tpu.matmul %50, %52, %cst_36 {dimension_numbers = #tpu.dot_dimension_numbers<[1], [0], [0], [1], [0, 0, 1, 1], [], []>} : vector<256x128xbf16>, vector<128x128xbf16>, vector<256x128xf32> -> vector<256x128xf32>
    %62 = vector.broadcast %54 : vector<1x128xf32> to vector<256x128xf32>
    %63 = arith.addf %61, %62 : vector<256x128xf32>
    %cst_37 = arith.constant 0.000000e+00 : f32
    %64 = vector.broadcast %cst_37 : f32 to vector<256x128xf32>
    %65 = arith.maximumf %63, %64 : vector<256x128xf32>
    %66 = arith.truncf %65 : vector<256x128xf32> to vector<256x128xbf16>
    %c4 = arith.constant 4 : index
    %c0_38 = arith.constant 0 : index
    %c0_39 = arith.constant 0 : index
    %67 = vector.load %arg2[%c4, %c0_38, %c0_39] : memref<10x128x128xbf16, #tpu.memory_space<vmem>>, vector<1x128x128xbf16>
    %68 = vector.shape_cast %67 : vector<1x128x128xbf16> to vector<128x128xbf16>
    %c4_40 = arith.constant 4 : index
    %c0_41 = arith.constant 0 : index
    %c0_42 = arith.constant 0 : index
    %69 = vector.load %arg3[%c4_40, %c0_41, %c0_42] : memref<10x1x128xf32, #tpu.memory_space<vmem>>, vector<1x1x128xf32>
    %70 = vector.shape_cast %69 : vector<1x1x128xf32> to vector<1x128xf32>
    %cst_43 = arith.constant dense<0.000000e+00> : vector<256x128xf32>
    %71 = tpu.matmul %60, %68, %cst_43 {dimension_numbers = #tpu.dot_dimension_numbers<[1], [0], [0], [1], [0, 0, 1, 1], [], []>} : vector<256x128xbf16>, vector<128x128xbf16>, vector<256x128xf32> -> vector<256x128xf32>
    %72 = vector.broadcast %70 : vector<1x128xf32> to vector<256x128xf32>
    %73 = arith.addf %71, %72 : vector<256x128xf32>
    %cst_44 = arith.constant 0.000000e+00 : f32
    %74 = vector.broadcast %cst_44 : f32 to vector<256x128xf32>
    %75 = arith.maximumf %73, %74 : vector<256x128xf32>
    %76 = arith.truncf %75 : vector<256x128xf32> to vector<256x128xbf16>
    %cst_45 = arith.constant dense<0.000000e+00> : vector<256x128xf32>
    %77 = tpu.matmul %66, %68, %cst_45 {dimension_numbers = #tpu.dot_dimension_numbers<[1], [0], [0], [1], [0, 0, 1, 1], [], []>} : vector<256x128xbf16>, vector<128x128xbf16>, vector<256x128xf32> -> vector<256x128xf32>
    %78 = vector.broadcast %70 : vector<1x128xf32> to vector<256x128xf32>
    %79 = arith.addf %77, %78 : vector<256x128xf32>
    %cst_46 = arith.constant 0.000000e+00 : f32
    %80 = vector.broadcast %cst_46 : f32 to vector<256x128xf32>
    %81 = arith.maximumf %79, %80 : vector<256x128xf32>
    %82 = arith.truncf %81 : vector<256x128xf32> to vector<256x128xbf16>
    %c5 = arith.constant 5 : index
    %c0_47 = arith.constant 0 : index
    %c0_48 = arith.constant 0 : index
    %83 = vector.load %arg2[%c5, %c0_47, %c0_48] : memref<10x128x128xbf16, #tpu.memory_space<vmem>>, vector<1x128x128xbf16>
    %84 = vector.shape_cast %83 : vector<1x128x128xbf16> to vector<128x128xbf16>
    %c5_49 = arith.constant 5 : index
    %c0_50 = arith.constant 0 : index
    %c0_51 = arith.constant 0 : index
    %85 = vector.load %arg3[%c5_49, %c0_50, %c0_51] : memref<10x1x128xf32, #tpu.memory_space<vmem>>, vector<1x1x128xf32>
    %86 = vector.shape_cast %85 : vector<1x1x128xf32> to vector<1x128xf32>
    %cst_52 = arith.constant dense<0.000000e+00> : vector<256x128xf32>
    %87 = tpu.matmul %76, %84, %cst_52 {dimension_numbers = #tpu.dot_dimension_numbers<[1], [0], [0], [1], [0, 0, 1, 1], [], []>} : vector<256x128xbf16>, vector<128x128xbf16>, vector<256x128xf32> -> vector<256x128xf32>
    %88 = vector.broadcast %86 : vector<1x128xf32> to vector<256x128xf32>
    %89 = arith.addf %87, %88 : vector<256x128xf32>
    %cst_53 = arith.constant 0.000000e+00 : f32
    %90 = vector.broadcast %cst_53 : f32 to vector<256x128xf32>
    %91 = arith.maximumf %89, %90 : vector<256x128xf32>
    %92 = arith.truncf %91 : vector<256x128xf32> to vector<256x128xbf16>
    %cst_54 = arith.constant dense<0.000000e+00> : vector<256x128xf32>
    %93 = tpu.matmul %82, %84, %cst_54 {dimension_numbers = #tpu.dot_dimension_numbers<[1], [0], [0], [1], [0, 0, 1, 1], [], []>} : vector<256x128xbf16>, vector<128x128xbf16>, vector<256x128xf32> -> vector<256x128xf32>
    %94 = vector.broadcast %86 : vector<1x128xf32> to vector<256x128xf32>
    %95 = arith.addf %93, %94 : vector<256x128xf32>
    %cst_55 = arith.constant 0.000000e+00 : f32
    %96 = vector.broadcast %cst_55 : f32 to vector<256x128xf32>
    %97 = arith.maximumf %95, %96 : vector<256x128xf32>
    %98 = arith.truncf %97 : vector<256x128xf32> to vector<256x128xbf16>
    %c6 = arith.constant 6 : index
    %c0_56 = arith.constant 0 : index
    %c0_57 = arith.constant 0 : index
    %99 = vector.load %arg2[%c6, %c0_56, %c0_57] : memref<10x128x128xbf16, #tpu.memory_space<vmem>>, vector<1x128x128xbf16>
    %100 = vector.shape_cast %99 : vector<1x128x128xbf16> to vector<128x128xbf16>
    %c6_58 = arith.constant 6 : index
    %c0_59 = arith.constant 0 : index
    %c0_60 = arith.constant 0 : index
    %101 = vector.load %arg3[%c6_58, %c0_59, %c0_60] : memref<10x1x128xf32, #tpu.memory_space<vmem>>, vector<1x1x128xf32>
    %102 = vector.shape_cast %101 : vector<1x1x128xf32> to vector<1x128xf32>
    %cst_61 = arith.constant dense<0.000000e+00> : vector<256x128xf32>
    %103 = tpu.matmul %92, %100, %cst_61 {dimension_numbers = #tpu.dot_dimension_numbers<[1], [0], [0], [1], [0, 0, 1, 1], [], []>} : vector<256x128xbf16>, vector<128x128xbf16>, vector<256x128xf32> -> vector<256x128xf32>
    %104 = vector.broadcast %102 : vector<1x128xf32> to vector<256x128xf32>
    %105 = arith.addf %103, %104 : vector<256x128xf32>
    %cst_62 = arith.constant 0.000000e+00 : f32
    %106 = vector.broadcast %cst_62 : f32 to vector<256x128xf32>
    %107 = arith.maximumf %105, %106 : vector<256x128xf32>
    %108 = arith.truncf %107 : vector<256x128xf32> to vector<256x128xbf16>
    %cst_63 = arith.constant dense<0.000000e+00> : vector<256x128xf32>
    %109 = tpu.matmul %98, %100, %cst_63 {dimension_numbers = #tpu.dot_dimension_numbers<[1], [0], [0], [1], [0, 0, 1, 1], [], []>} : vector<256x128xbf16>, vector<128x128xbf16>, vector<256x128xf32> -> vector<256x128xf32>
    %110 = vector.broadcast %102 : vector<1x128xf32> to vector<256x128xf32>
    %111 = arith.addf %109, %110 : vector<256x128xf32>
    %cst_64 = arith.constant 0.000000e+00 : f32
    %112 = vector.broadcast %cst_64 : f32 to vector<256x128xf32>
    %113 = arith.maximumf %111, %112 : vector<256x128xf32>
    %114 = arith.truncf %113 : vector<256x128xf32> to vector<256x128xbf16>
    %c7 = arith.constant 7 : index
    %c0_65 = arith.constant 0 : index
    %c0_66 = arith.constant 0 : index
    %115 = vector.load %arg2[%c7, %c0_65, %c0_66] : memref<10x128x128xbf16, #tpu.memory_space<vmem>>, vector<1x128x128xbf16>
    %116 = vector.shape_cast %115 : vector<1x128x128xbf16> to vector<128x128xbf16>
    %c7_67 = arith.constant 7 : index
    %c0_68 = arith.constant 0 : index
    %c0_69 = arith.constant 0 : index
    %117 = vector.load %arg3[%c7_67, %c0_68, %c0_69] : memref<10x1x128xf32, #tpu.memory_space<vmem>>, vector<1x1x128xf32>
    %118 = vector.shape_cast %117 : vector<1x1x128xf32> to vector<1x128xf32>
    %cst_70 = arith.constant dense<0.000000e+00> : vector<256x128xf32>
    %119 = tpu.matmul %108, %116, %cst_70 {dimension_numbers = #tpu.dot_dimension_numbers<[1], [0], [0], [1], [0, 0, 1, 1], [], []>} : vector<256x128xbf16>, vector<128x128xbf16>, vector<256x128xf32> -> vector<256x128xf32>
    %120 = vector.broadcast %118 : vector<1x128xf32> to vector<256x128xf32>
    %121 = arith.addf %119, %120 : vector<256x128xf32>
    %cst_71 = arith.constant 0.000000e+00 : f32
    %122 = vector.broadcast %cst_71 : f32 to vector<256x128xf32>
    %123 = arith.maximumf %121, %122 : vector<256x128xf32>
    %124 = arith.truncf %123 : vector<256x128xf32> to vector<256x128xbf16>
    %cst_72 = arith.constant dense<0.000000e+00> : vector<256x128xf32>
    %125 = tpu.matmul %114, %116, %cst_72 {dimension_numbers = #tpu.dot_dimension_numbers<[1], [0], [0], [1], [0, 0, 1, 1], [], []>} : vector<256x128xbf16>, vector<128x128xbf16>, vector<256x128xf32> -> vector<256x128xf32>
    %126 = vector.broadcast %118 : vector<1x128xf32> to vector<256x128xf32>
    %127 = arith.addf %125, %126 : vector<256x128xf32>
    %cst_73 = arith.constant 0.000000e+00 : f32
    %128 = vector.broadcast %cst_73 : f32 to vector<256x128xf32>
    %129 = arith.maximumf %127, %128 : vector<256x128xf32>
    %130 = arith.truncf %129 : vector<256x128xf32> to vector<256x128xbf16>
    %c8 = arith.constant 8 : index
    %c0_74 = arith.constant 0 : index
    %c0_75 = arith.constant 0 : index
    %131 = vector.load %arg2[%c8, %c0_74, %c0_75] : memref<10x128x128xbf16, #tpu.memory_space<vmem>>, vector<1x128x128xbf16>
    %132 = vector.shape_cast %131 : vector<1x128x128xbf16> to vector<128x128xbf16>
    %c8_76 = arith.constant 8 : index
    %c0_77 = arith.constant 0 : index
    %c0_78 = arith.constant 0 : index
    %133 = vector.load %arg3[%c8_76, %c0_77, %c0_78] : memref<10x1x128xf32, #tpu.memory_space<vmem>>, vector<1x1x128xf32>
    %134 = vector.shape_cast %133 : vector<1x1x128xf32> to vector<1x128xf32>
    %cst_79 = arith.constant dense<0.000000e+00> : vector<256x128xf32>
    %135 = tpu.matmul %124, %132, %cst_79 {dimension_numbers = #tpu.dot_dimension_numbers<[1], [0], [0], [1], [0, 0, 1, 1], [], []>} : vector<256x128xbf16>, vector<128x128xbf16>, vector<256x128xf32> -> vector<256x128xf32>
    %136 = vector.broadcast %134 : vector<1x128xf32> to vector<256x128xf32>
    %137 = arith.addf %135, %136 : vector<256x128xf32>
    %cst_80 = arith.constant 0.000000e+00 : f32
    %138 = vector.broadcast %cst_80 : f32 to vector<256x128xf32>
    %139 = arith.maximumf %137, %138 : vector<256x128xf32>
    %140 = arith.truncf %139 : vector<256x128xf32> to vector<256x128xbf16>
    %cst_81 = arith.constant dense<0.000000e+00> : vector<256x128xf32>
    %141 = tpu.matmul %130, %132, %cst_81 {dimension_numbers = #tpu.dot_dimension_numbers<[1], [0], [0], [1], [0, 0, 1, 1], [], []>} : vector<256x128xbf16>, vector<128x128xbf16>, vector<256x128xf32> -> vector<256x128xf32>
    %142 = vector.broadcast %134 : vector<1x128xf32> to vector<256x128xf32>
    %143 = arith.addf %141, %142 : vector<256x128xf32>
    %cst_82 = arith.constant 0.000000e+00 : f32
    %144 = vector.broadcast %cst_82 : f32 to vector<256x128xf32>
    %145 = arith.maximumf %143, %144 : vector<256x128xf32>
    %146 = arith.truncf %145 : vector<256x128xf32> to vector<256x128xbf16>
    %c9 = arith.constant 9 : index
    %c0_83 = arith.constant 0 : index
    %c0_84 = arith.constant 0 : index
    %147 = vector.load %arg2[%c9, %c0_83, %c0_84] : memref<10x128x128xbf16, #tpu.memory_space<vmem>>, vector<1x128x128xbf16>
    %148 = vector.shape_cast %147 : vector<1x128x128xbf16> to vector<128x128xbf16>
    %c9_85 = arith.constant 9 : index
    %c0_86 = arith.constant 0 : index
    %c0_87 = arith.constant 0 : index
    %149 = vector.load %arg3[%c9_85, %c0_86, %c0_87] : memref<10x1x128xf32, #tpu.memory_space<vmem>>, vector<1x1x128xf32>
    %150 = vector.shape_cast %149 : vector<1x1x128xf32> to vector<1x128xf32>
    %cst_88 = arith.constant dense<0.000000e+00> : vector<256x128xf32>
    %151 = tpu.matmul %140, %148, %cst_88 {dimension_numbers = #tpu.dot_dimension_numbers<[1], [0], [0], [1], [0, 0, 1, 1], [], []>} : vector<256x128xbf16>, vector<128x128xbf16>, vector<256x128xf32> -> vector<256x128xf32>
    %152 = vector.broadcast %150 : vector<1x128xf32> to vector<256x128xf32>
    %153 = arith.addf %151, %152 : vector<256x128xf32>
    %cst_89 = arith.constant 0.000000e+00 : f32
    %154 = vector.broadcast %cst_89 : f32 to vector<256x128xf32>
    %155 = arith.subf %154, %153 : vector<256x128xf32>
    %156 = math.exp %155 : vector<256x128xf32>
    %cst_90 = arith.constant 1.000000e+00 : f32
    %157 = vector.broadcast %cst_90 : f32 to vector<256x128xf32>
    %158 = arith.addf %157, %156 : vector<256x128xf32>
    %159 = tpu.reciprocal %158 {approx = true} : vector<256x128xf32> -> vector<256x128xf32>
    %cst_91 = arith.constant dense<0.000000e+00> : vector<256x128xf32>
    %160 = tpu.matmul %146, %148, %cst_91 {dimension_numbers = #tpu.dot_dimension_numbers<[1], [0], [0], [1], [0, 0, 1, 1], [], []>} : vector<256x128xbf16>, vector<128x128xbf16>, vector<256x128xf32> -> vector<256x128xf32>
    %161 = vector.broadcast %150 : vector<1x128xf32> to vector<256x128xf32>
    %162 = arith.addf %160, %161 : vector<256x128xf32>
    %cst_92 = arith.constant 0.000000e+00 : f32
    %163 = vector.broadcast %cst_92 : f32 to vector<256x128xf32>
    %164 = arith.subf %163, %162 : vector<256x128xf32>
    %165 = math.exp %164 : vector<256x128xf32>
    %cst_93 = arith.constant 1.000000e+00 : f32
    %166 = vector.broadcast %cst_93 : f32 to vector<256x128xf32>
    %167 = arith.addf %166, %165 : vector<256x128xf32>
    %168 = tpu.reciprocal %167 {approx = true} : vector<256x128xf32> -> vector<256x128xf32>
    %c0_94 = arith.constant 0 : index
    %c0_95 = arith.constant 0 : index
    %169 = vector.load %arg4[%c0_94, %c0_95] : memref<512x128xf32, #tpu.memory_space<vmem>>, vector<256x128xf32>
    tpu.vector_store %arg4[%c0_94, %c0_95], %159 {strides = array<i32>} : memref<512x128xf32, #tpu.memory_space<vmem>>, vector<256x128xf32>,
    %c256_96 = arith.constant 256 : index
    %c0_97 = arith.constant 0 : index
    %170 = vector.load %arg4[%c256_96, %c0_97] : memref<512x128xf32, #tpu.memory_space<vmem>>, vector<256x128xf32>
    tpu.vector_store %arg4[%c256_96, %c0_97], %168 {strides = array<i32>} : memref<512x128xf32, #tpu.memory_space<vmem>>, vector<256x128xf32>,
    return
  }
  func.func @transform_0(%arg0: i32) -> (i32, i32) {
    %c0_i32 = arith.constant 0 : i32
    %c0_i32_0 = arith.constant 0 : i32
    return %arg0, %c0_i32 : i32, i32
  }
  func.func @transform_1(%arg0: i32) -> (i32, i32, i32) {
    %c0_i32 = arith.constant 0 : i32
    %c0_i32_0 = arith.constant 0 : i32
    %c0_i32_1 = arith.constant 0 : i32
    %c0_i32_2 = arith.constant 0 : i32
    return %c0_i32, %c0_i32_0, %c0_i32_1 : i32, i32, i32
  }
  func.func @transform_2(%arg0: i32) -> (i32, i32, i32) {
    %c0_i32 = arith.constant 0 : i32
    %c0_i32_0 = arith.constant 0 : i32
    %c0_i32_1 = arith.constant 0 : i32
    %c0_i32_2 = arith.constant 0 : i32
    return %c0_i32, %c0_i32_0, %c0_i32_1 : i32, i32, i32
  }
  func.func @transform_3(%arg0: i32) -> (i32, i32) {
    %c0_i32 = arith.constant 0 : i32
    %c0_i32_0 = arith.constant 0 : i32
    return %arg0, %c0_i32 : i32, i32
  }
}

</mosaic_0001>

<bundles_post_ra>
// kernel: ae_forward.1
= control target key start
LH: loop header
LB: loop body
LE: loop exit
PB: predicated region body
PF: predicated region fallthrough
CT: control target
= control target key end

     0   :  { %8 = vsyncpa [#allocation3], 0  ;;  %s7484_s12 = smov [#allocation2]   ;;  %s8522_s0 = inlined_call_operand.vmem [shape: bf16[512,64], index: 0, kind: input, shape index: {}]   ;;  %s8523_s1 = inlined_call_operand.hbm [shape: bf16[10,128,128], index: 1, kind: input, shape index: {}]   ;;  %s8524_s2 = inlined_call_operand.vmem [shape: f32[10,1,128], index: 2, kind: input, shape index: {}]   ;;  %s8525_s3 = inlined_call_operand.vmem [shape: f32[512,128], index: 3, kind: output, shape index: {}]  }
   0x1   :  { %s16_s13 = sshll.u32 %s7484_s12, 4  ;;  %s17_s13 = int_to_ptr.vmem [resolvable:$true] %s16_s13 }
   0x2   :  { %s7470_s14 = scalar_lea.vmem %s17_s13, 10240  ;;  %p7475_p1 = scmp.lt.s32.totalorder %s17_s13, %s17_s13 }
   0x3   :  { %p7471_p0 = scmp.ne.s32.totalorder %s17_s13, %s7470_s14  ;;  %p7476_p2 = scmp.lt.s32.totalorder %s7470_s14, %s7470_s14 }
   0x5   :  { %p7477_p3 = por %p7476_p2, %p7475_p1 }
   0x7   :  { %p7478_p4 = pnand %p7477_p3, %p7471_p0 }
   0x9   :  { %7481 = shalt.err (!%p7478_p4)
}
   0xa   :  { %s7485_s15 = smov 64   ;;  %s7486_s16 = smov 4  }
   0xb   :  { %22 = dma.hbm_to_vmem [thread:$0]  %s8523_s1, 10240, %s17_s13, [#allocation3], %s7485_s15, %s7485_s15, %s7486_s16  }
   0xc   :  { %7482 = dma.done.wait [#allocation3], 10240  }
   0xd   :  { %7483 = vsyncadd [#allocation3], 4294957056  ;;  %v7097_v0 = vld [vmem:[#allocation2 + $0x18] sm:$0xff]   ;;  %v7098_v1 = vld [vmem:[#allocation2 + $0x10] sm:$0xff]   ;;  %vm212_vm0 = vcmask 523264  }
   0xe   :  { %6150 = vmatprep.subr.bf16.mxu0 %v7097_v0  ;;  %6190 = vmatprep.subr.bf16.mxu1 %v7097_v0  ;;  %v7099_v2 = vld [vmem:[#allocation2 + $0x8] sm:$0xff]   ;;  %v7101_v3 = vld [vmem:[%s8522_s0] sm:$0xff]   ;;  %v7105_v8 = vld [vmem:[%s8522_s0 + $0x10] sm:$0xff]  }
   0xf   :  { %6151 = vmatpush3.bf16.msra.mxu0 %v7097_v0  ;;  %6191 = vmatpush3.bf16.msra.mxu1 %v7097_v0  ;;  %v7102_v4 = vld [vmem:[%s8522_s0 + $0x80] sm:$0xff]   ;;  %v7103_v6 = vld [vmem:[%s8522_s0 + $0x8] sm:$0xff]   ;;  %v7106_v9 = vld [vmem:[%s8522_s0 + $0x90] sm:$0xff]  }
  0x10   :  { %6152 = vmatprep.subr.bf16.mxu0 %v7098_v1  ;;  %6192 = vmatprep.subr.bf16.mxu1 %v7098_v1  ;;  %v7100_v5 = vld [vmem:[#allocation2] sm:$0xff]   ;;  %v7104_v7 = vld [vmem:[%s8522_s0 + $0x88] sm:$0xff]   ;;  %v7107_v10 = vld [vmem:[%s8522_s0 + $0x18] sm:$0xff]  }
  0x11   :  { %6158 = vmatprep.mubr.msk.bf16.mxu0 %vm212_vm0, %v7101_v3  ;;  %6198 = vmatprep.mubr.msk.bf16.mxu1 %vm212_vm0, %v7102_v4  ;;  %v7108_v11 = vld [vmem:[%s8522_s0 + $0x98] sm:$0xff]   ;;  %v7109_v12 = vld [vmem:[%s8522_s0 + $0x20] sm:$0xff]   ;;  %v7111_v14 = vld [vmem:[%s8522_s0 + $0x28] sm:$0xff]  }
  0x12   :  { %v7110_v13 = vld [vmem:[%s8522_s0 + $0xa0] sm:$0xff]   ;;  %v7112_v15 = vld [vmem:[%s8522_s0 + $0xa8] sm:$0xff]   ;;  %v7113_v16 = vld [vmem:[%s8522_s0 + $0x30] sm:$0xff]  }
  0x13   :  { %6153 = vmatpush3.bf16.msra.mxu0 %v7098_v1  ;;  %6193 = vmatpush3.bf16.msra.mxu1 %v7098_v1  ;;  %v7114_v17 = vld [vmem:[%s8522_s0 + $0xb0] sm:$0xff]   ;;  %v7115_v18 = vld [vmem:[%s8522_s0 + $0x38] sm:$0xff]   ;;  %v7117_v22 = vld [vmem:[%s8522_s0 + $0x40] sm:$0xff]  }
  0x14   :  { %6154 = vmatprep.subr.bf16.mxu0 %v7099_v2  ;;  %6194 = vmatprep.subr.bf16.mxu1 %v7099_v2  ;;  %v7116_v19 = vld [vmem:[%s8522_s0 + $0xb8] sm:$0xff]   ;;  %v7134_v21 = vld [vmem:[#allocation2 + $0x70] sm:$0xff]   ;;  %v7118_v23 = vld [vmem:[%s8522_s0 + $0xc0] sm:$0xff]  }
  0x15   :  { %v7133_v20 = vld [vmem:[#allocation2 + $0x78] sm:$0xff]   ;;  %v7135_v24 = vld [vmem:[#allocation2 + $0x68] sm:$0xff]   ;;  %v7136_v25 = vld [vmem:[#allocation2 + $0x60] sm:$0xff]  }
  0x16   :  { %v7119_v26 = vld [vmem:[%s8522_s0 + $0x48] sm:$0xff]   ;;  %v7121_v28 = vld [vmem:[%s8522_s0 + $0x50] sm:$0xff]   ;;  %v7137_v30 = vld [vmem:[#allocation2 + $0x58] sm:$0xff]  }
  0x17   :  { %6155 = vmatpush3.bf16.msra.mxu0 %v7099_v2  ;;  %6195 = vmatpush3.bf16.msra.mxu1 %v7099_v2  ;;  %v7120_v27 = vld [vmem:[%s8522_s0 + $0xc8] sm:$0xff]   ;;  %v7122_v29 = vld [vmem:[%s8522_s0 + $0xd0] sm:$0xff]   ;;  %v7123_v32 = vld [vmem:[%s8522_s0 + $0x58] sm:$0xff]  }
  0x18   :  { %6156 = vmatprep.subr.bf16.mxu0 %v7100_v5  ;;  %6196 = vmatprep.subr.bf16.mxu1 %v7100_v5  ;;  %v7138_v31 = vld [vmem:[#allocation2 + $0x50] sm:$0xff]   ;;  %v7124_v33 = vld [vmem:[%s8522_s0 + $0xd8] sm:$0xff]   ;;  %v7125_v34 = vld [vmem:[%s8522_s0 + $0x60] sm:$0xff]  }
  0x19   :  { %v7126_v35 = vld [vmem:[%s8522_s0 + $0xe0] sm:$0xff]   ;;  %v7139_v36 = vld [vmem:[#allocation2 + $0x48] sm:$0xff]   ;;  %v7129_v39 = vld [vmem:[%s8522_s0 + $0x70] sm:$0xff]  }
  0x1a   :  { %v7127_v37 = vld [vmem:[%s8522_s0 + $0x68] sm:$0xff]   ;;  %v7130_v40 = vld [vmem:[%s8522_s0 + $0xf0] sm:$0xff]   ;;  %v7131_v41 = vld [vmem:[%s8522_s0 + $0x78] sm:$0xff]  }
  0x1b   :  { %6157 = vmatpush3.bf16.msra.mxu0 %v7100_v5  ;;  %6197 = vmatpush3.bf16.msra.mxu1 %v7100_v5  ;;  %v7128_v38 = vld [vmem:[%s8522_s0 + $0xe8] sm:$0xff]   ;;  %v7132_v42 = vld [vmem:[%s8522_s0 + $0xf8] sm:$0xff]   ;;  %v7140_v43 = vld [vmem:[#allocation2 + $0x40] sm:$0xff]  }
  0x1c   :  { %6230 = vmatprep.subr.bf16.mxu0 %v7133_v20  ;;  %6278 = vmatprep.subr.bf16.mxu1 %v7133_v20  ;;  %v7141_v44 = vld [vmem:[#allocation2 + $0xb8] sm:$0xff]   ;;  %v7641_v49 = vld [vmem:[%s8524_s2] ss:$0 sm:$0xff] }
  0x1e   :  { %6159 = vmatmul.mubr.msk.bf16.vlgmr.msra.gmra.mxu0 %vm212_vm0, %v7103_v6  ;;  %6199 = vmatmul.mubr.msk.bf16.vlgmr.msra.gmra.mxu1 %vm212_vm0, %v7104_v7 }
  0x1f   :  { %6162 = vmatprep.mubr.msk.bf16.mxu0 %vm212_vm0, %v7105_v8  ;;  %6202 = vmatprep.mubr.msk.bf16.mxu1 %vm212_vm0, %v7106_v9 }
  0x20   :  { %6231 = vmatpush3.bf16.msra.mxu0 %v7133_v20  ;;  %6279 = vmatpush3.bf16.msra.mxu1 %v7133_v20 }
  0x21   :  { %6232 = vmatprep.subr.bf16.mxu0 %v7134_v21  ;;  %6280 = vmatprep.subr.bf16.mxu1 %v7134_v21 }
  0x24   :  { %6233 = vmatpush3.bf16.msra.mxu0 %v7134_v21  ;;  %6281 = vmatpush3.bf16.msra.mxu1 %v7134_v21 }
  0x25   :  { %6234 = vmatprep.subr.bf16.mxu0 %v7135_v24  ;;  %6282 = vmatprep.subr.bf16.mxu1 %v7135_v24 }
  0x26   :  { %6163 = vmatmul.mubr.msk.bf16.gmra.mxu0 %vm212_vm0, %v7107_v10  ;;  %6203 = vmatmul.mubr.msk.bf16.gmra.mxu1 %vm212_vm0, %v7108_v11 }
  0x27   :  { %6166 = vmatprep.mubr.msk.bf16.mxu0 %vm212_vm0, %v7109_v12  ;;  %6206 = vmatprep.mubr.msk.bf16.mxu1 %vm212_vm0, %v7110_v13 }
  0x28   :  { %6235 = vmatpush3.bf16.msra.mxu0 %v7135_v24  ;;  %6283 = vmatpush3.bf16.msra.mxu1 %v7135_v24 }
  0x29   :  { %6236 = vmatprep.subr.bf16.mxu0 %v7136_v25  ;;  %6284 = vmatprep.subr.bf16.mxu1 %v7136_v25 }
  0x2c   :  { %6237 = vmatpush3.bf16.msra.mxu0 %v7136_v25  ;;  %6285 = vmatpush3.bf16.msra.mxu1 %v7136_v25 }
  0x2d   :  { %6238 = vmatprep.subr.bf16.mxu0 %v7137_v30  ;;  %6286 = vmatprep.subr.bf16.mxu1 %v7137_v30 }
  0x2e   :  { %6167 = vmatmul.mubr.msk.bf16.gmra.mxu0 %vm212_vm0, %v7111_v14  ;;  %6207 = vmatmul.mubr.msk.bf16.gmra.mxu1 %vm212_vm0, %v7112_v15 }
  0x2f   :  { %6170 = vmatprep.mubr.msk.bf16.mxu0 %vm212_vm0, %v7113_v16  ;;  %6210 = vmatprep.mubr.msk.bf16.mxu1 %vm212_vm0, %v7114_v17  ;;  %v7142_v17 = vld [vmem:[#allocation2 + $0xb0] sm:$0xff]  }
  0x30   :  { %6239 = vmatpush3.bf16.msra.mxu0 %v7137_v30  ;;  %6287 = vmatpush3.bf16.msra.mxu1 %v7137_v30 }
  0x31   :  { %6240 = vmatprep.subr.bf16.mxu0 %v7138_v31  ;;  %6288 = vmatprep.subr.bf16.mxu1 %v7138_v31 }
  0x34   :  { %6241 = vmatpush3.bf16.msra.mxu0 %v7138_v31  ;;  %6289 = vmatpush3.bf16.msra.mxu1 %v7138_v31  ;;  %v7143_v31 = vld [vmem:[#allocation2 + $0xa8] sm:$0xff]  }
  0x35   :  { %6242 = vmatprep.subr.bf16.mxu0 %v7139_v36  ;;  %6290 = vmatprep.subr.bf16.mxu1 %v7139_v36 }
  0x36   :  { %6171 = vmatmul.mubr.msk.bf16.gmra.mxu0 %vm212_vm0, %v7115_v18  ;;  %6211 = vmatmul.mubr.msk.bf16.gmra.mxu1 %vm212_vm0, %v7116_v19 }
  0x37   :  { %6174 = vmatprep.mubr.msk.bf16.mxu0 %vm212_vm0, %v7117_v22  ;;  %6214 = vmatprep.mubr.msk.bf16.mxu1 %vm212_vm0, %v7118_v23 }
  0x38   :  { %6243 = vmatpush3.bf16.msra.mxu0 %v7139_v36  ;;  %6291 = vmatpush3.bf16.msra.mxu1 %v7139_v36 }
  0x39   :  { %6244 = vmatprep.subr.bf16.mxu0 %v7140_v43  ;;  %6292 = vmatprep.subr.bf16.mxu1 %v7140_v43 }
  0x3c   :  { %6245 = vmatpush3.bf16.msra.mxu0 %v7140_v43  ;;  %6293 = vmatpush3.bf16.msra.mxu1 %v7140_v43 }
  0x3d   :  { %6326 = vmatprep.subr.bf16.mxu0 %v7141_v44  ;;  %6374 = vmatprep.subr.bf16.mxu1 %v7141_v44 }
  0x3e   :  { %6175 = vmatmul.mubr.msk.bf16.gmra.mxu0 %vm212_vm0, %v7119_v26  ;;  %6215 = vmatmul.mubr.msk.bf16.gmra.mxu1 %vm212_vm0, %v7120_v27 }
  0x3f   :  { %6178 = vmatprep.mubr.msk.bf16.mxu0 %vm212_vm0, %v7121_v28  ;;  %6218 = vmatprep.mubr.msk.bf16.mxu1 %vm212_vm0, %v7122_v29 }
  0x46   :  { %6179 = vmatmul.mubr.msk.bf16.gmra.mxu0 %vm212_vm0, %v7123_v32  ;;  %6219 = vmatmul.mubr.msk.bf16.gmra.mxu1 %vm212_vm0, %v7124_v33 }
  0x47   :  { %6182 = vmatprep.mubr.msk.bf16.mxu0 %vm212_vm0, %v7125_v34  ;;  %6222 = vmatprep.mubr.msk.bf16.mxu1 %vm212_vm0, %v7126_v35 }
  0x4e   :  { %6183 = vmatmul.mubr.msk.bf16.gmra.mxu0 %vm212_vm0, %v7127_v37  ;;  %6223 = vmatmul.mubr.msk.bf16.gmra.mxu1 %vm212_vm0, %v7128_v38 }
  0x4f   :  { %6186 = vmatprep.mubr.msk.bf16.mxu0 %vm212_vm0, %v7129_v39  ;;  %6226 = vmatprep.mubr.msk.bf16.mxu1 %vm212_vm0, %v7130_v40 }
  0x56   :  { %6187 = vmatmul.mubr.msk.bf16.gmra.mxu0 %vm212_vm0, %v7131_v41  ;;  %6227 = vmatmul.mubr.msk.bf16.gmra.mxu1 %vm212_vm0, %v7132_v42 }
  0xde   :  { %v6160_v45 = vpop.f32.mrf.mxu0  ;;  %v6200_v46 = vpop.f32.mrf.mxu1 }
  0xdf   :  { %v304_v56 = vadd.f32 %v6160_v45, %v7641_v49  ;;  %v641_v57 = vadd.f32 %v6200_v46, %v7641_v49 }
  0xe0   :  { %v295_v47 = vpop.f32.mrf.mxu0  ;;  %v632_v48 = vpop.f32.mrf.mxu1 }
  0xe1   :  { %v296_v52 = vadd.f32 %v7641_v49, %v295_v47  ;;  %v633_v53 = vadd.f32 %v7641_v49, %v632_v48  ;;  %v424_v6 = vmax.f32 %v304_v56, 0.0  ;;  %v761_v7 = vmax.f32 %v641_v57, 0.0  ;;  %v7144_v47 = vld [vmem:[#allocation2 + $0xa0] sm:$0xff]  }
  0xe2   :  { %v6161_v50 = vpop.f32.mrf.mxu0  ;;  %v6201_v51 = vpop.f32.mrf.mxu1 }
  0xe3   :  { %v307_v54 = vadd.f32 %v6161_v50, %v7641_v49  ;;  %v644_v55 = vadd.f32 %v6201_v51, %v7641_v49  ;;  %v422_v2 = vmax.f32 %v296_v52, 0.0  ;;  %v759_v3 = vmax.f32 %v633_v53, 0.0 }
  0xe4   :  { %v298_v58 = vpop.f32.mrf.mxu0  ;;  %v635_v59 = vpop.f32.mrf.mxu1 }
  0xe5   :  { %v299_v60 = vadd.f32 %v7641_v49, %v298_v58  ;;  %v636_v61 = vadd.f32 %v7641_v49, %v635_v59  ;;  %v425_v62 = vmax.f32 %v307_v54, 0.0  ;;  %v762_v63 = vmax.f32 %v644_v55, 0.0 }
  0xe6   :  { %v6164_v0 = vpop.f32.mrf.mxu0  ;;  %v6204_v1 = vpop.f32.mrf.mxu1 }
  0xe7   :  { %v423_v4 = vmax.f32 %v299_v60, 0.0  ;;  %v760_v5 = vmax.f32 %v636_v61, 0.0  ;;  %v455_v12 = vpack.c.bf16 %v425_v62, %v424_v6  ;;  %v792_v13 = vpack.c.bf16 %v762_v63, %v761_v7  ;;  %v7145_v62 = vld [vmem:[#allocation2 + $0x98] sm:$0xff]  }
  0xe8   :  { %v311_v8 = vpop.f32.mrf.mxu0  ;;  %v648_v9 = vpop.f32.mrf.mxu1  ;;  %v320_v21 = vadd.f32 %v6164_v0, %v7641_v49  ;;  %v657_v22 = vadd.f32 %v6204_v1, %v7641_v49 }
  0xe9   :  { %v454_v10 = vpack.c.bf16 %v423_v4, %v422_v2  ;;  %v791_v11 = vpack.c.bf16 %v760_v5, %v759_v3  ;;  %v312_v14 = vadd.f32 %v7641_v49, %v311_v8  ;;  %v649_v18 = vadd.f32 %v7641_v49, %v648_v9 }
  0xea   :  { %v6165_v15 = vpop.f32.mrf.mxu0  ;;  %v6205_v16 = vpop.f32.mrf.mxu1  ;;  %v428_v36 = vmax.f32 %v320_v21, 0.0  ;;  %v765_v37 = vmax.f32 %v657_v22, 0.0 }
  0xeb   :  { %v323_v19 = vadd.f32 %v6165_v15, %v7641_v49  ;;  %v660_v20 = vadd.f32 %v6205_v16, %v7641_v49  ;;  %6246 = vmatprep.mubr.bf16.mxu0 %v454_v10  ;;  %6294 = vmatprep.mubr.bf16.mxu1 %v791_v11  ;;  %v426_v32 = vmax.f32 %v312_v14, 0.0  ;;  %v763_v33 = vmax.f32 %v649_v18, 0.0  ;;  %v7146_v14 = vld [vmem:[#allocation2 + $0x90] sm:$0xff]  }
  0xec   :  { %v314_v23 = vpop.f32.mrf.mxu0  ;;  %v651_v24 = vpop.f32.mrf.mxu1  ;;  %6247 = vmatmul.mubr.bf16.vlgmr.msra.gmra.mxu0 %v455_v12  ;;  %6295 = vmatmul.mubr.bf16.vlgmr.msra.gmra.mxu1 %v792_v13 }
  0xed   :  { %v315_v25 = vadd.f32 %v7641_v49, %v314_v23  ;;  %v652_v26 = vadd.f32 %v7641_v49, %v651_v24  ;;  %6327 = vmatpush3.bf16.msra.mxu0 %v7141_v44  ;;  %6375 = vmatpush3.bf16.msra.mxu1 %v7141_v44  ;;  %v429_v27 = vmax.f32 %v323_v19, 0.0  ;;  %v766_v28 = vmax.f32 %v660_v20, 0.0 }
  0xee   :  { %v6168_v29 = vpop.f32.mrf.mxu0  ;;  %v6208_v30 = vpop.f32.mrf.mxu1  ;;  %6328 = vmatprep.subr.bf16.mxu0 %v7142_v17  ;;  %6376 = vmatprep.subr.bf16.mxu1 %v7142_v17 }
  0xef   :  { %v427_v34 = vmax.f32 %v315_v25, 0.0  ;;  %v764_v35 = vmax.f32 %v652_v26, 0.0  ;;  %v457_v42 = vpack.c.bf16 %v429_v27, %v428_v36  ;;  %v794_v43 = vpack.c.bf16 %v766_v28, %v765_v37  ;;  %v7147_v28 = vld [vmem:[#allocation2 + $0x88] sm:$0xff]  }
  0xf0   :  { %v327_v38 = vpop.f32.mrf.mxu0  ;;  %v664_v39 = vpop.f32.mrf.mxu1  ;;  %v336_v52 = vadd.f32 %v6168_v29, %v7641_v49  ;;  %v673_v53 = vadd.f32 %v6208_v30, %v7641_v49 }
  0xf1   :  { %v456_v40 = vpack.c.bf16 %v427_v34, %v426_v32  ;;  %v793_v41 = vpack.c.bf16 %v764_v35, %v763_v33  ;;  %6329 = vmatpush3.bf16.msra.mxu0 %v7142_v17  ;;  %v328_v44 = vadd.f32 %v7641_v49, %v327_v38  ;;  %6377 = vmatpush3.bf16.msra.mxu1 %v7142_v17 }
  0xf2   :  { %v6169_v45 = vpop.f32.mrf.mxu0  ;;  %v6209_v46 = vpop.f32.mrf.mxu1  ;;  %6330 = vmatprep.subr.bf16.mxu0 %v7143_v31  ;;  %v665_v48 = vadd.f32 %v7641_v49, %v664_v39  ;;  %6378 = vmatprep.subr.bf16.mxu1 %v7143_v31  ;;  %v432_v3 = vmax.f32 %v336_v52, 0.0  ;;  %v769_v4 = vmax.f32 %v673_v53, 0.0 }
  0xf3   :  { %v339_v50 = vadd.f32 %v6169_v45, %v7641_v49  ;;  %v676_v51 = vadd.f32 %v6209_v46, %v7641_v49  ;;  %6250 = vmatprep.mubr.bf16.mxu0 %v456_v40  ;;  %6298 = vmatprep.mubr.bf16.mxu1 %v793_v41  ;;  %v430_v63 = vmax.f32 %v328_v44, 0.0 }
  0xf4   :  { %v330_v54 = vpop.f32.mrf.mxu0  ;;  %v667_v55 = vpop.f32.mrf.mxu1  ;;  %6251 = vmatmul.mubr.bf16.gmra.mxu0 %v457_v42  ;;  %6299 = vmatmul.mubr.bf16.gmra.mxu1 %v794_v43  ;;  %v767_v0 = vmax.f32 %v665_v48, 0.0 }
  0xf5   :  { %v331_v56 = vadd.f32 %v7641_v49, %v330_v54  ;;  %v668_v57 = vadd.f32 %v7641_v49, %v667_v55  ;;  %6331 = vmatpush3.bf16.msra.mxu0 %v7143_v31  ;;  %v433_v58 = vmax.f32 %v339_v50, 0.0  ;;  %v770_v59 = vmax.f32 %v676_v51, 0.0  ;;  %6379 = vmatpush3.bf16.msra.mxu1 %v7143_v31 }
  0xf6   :  { %v6172_v60 = vpop.f32.mrf.mxu0  ;;  %v6212_v61 = vpop.f32.mrf.mxu1  ;;  %6332 = vmatprep.subr.bf16.mxu0 %v7144_v47  ;;  %6380 = vmatprep.subr.bf16.mxu1 %v7144_v47 }
  0xf7   :  { %v431_v1 = vmax.f32 %v331_v56, 0.0  ;;  %v768_v2 = vmax.f32 %v668_v57, 0.0  ;;  %v459_v9 = vpack.c.bf16 %v433_v58, %v432_v3  ;;  %v796_v10 = vpack.c.bf16 %v770_v59, %v769_v4 }
  0xf8   :  { %v343_v5 = vpop.f32.mrf.mxu0  ;;  %v680_v6 = vpop.f32.mrf.mxu1  ;;  %v352_v18 = vadd.f32 %v6172_v60, %v7641_v49  ;;  %v689_v19 = vadd.f32 %v6212_v61, %v7641_v49 }
  0xf9   :  { %v458_v7 = vpack.c.bf16 %v431_v1, %v430_v63  ;;  %v795_v8 = vpack.c.bf16 %v768_v2, %v767_v0  ;;  %6333 = vmatpush3.bf16.msra.mxu0 %v7144_v47  ;;  %v344_v11 = vadd.f32 %v7641_v49, %v343_v5  ;;  %6381 = vmatpush3.bf16.msra.mxu1 %v7144_v47 }
  0xfa   :  { %v6173_v12 = vpop.f32.mrf.mxu0  ;;  %v6213_v13 = vpop.f32.mrf.mxu1  ;;  %6334 = vmatprep.subr.bf16.mxu0 %v7145_v62  ;;  %v681_v15 = vadd.f32 %v7641_v49, %v680_v6  ;;  %6382 = vmatprep.subr.bf16.mxu1 %v7145_v62  ;;  %v436_v33 = vmax.f32 %v352_v18, 0.0  ;;  %v773_v34 = vmax.f32 %v689_v19, 0.0 }
  0xfb   :  { %v355_v16 = vadd.f32 %v6173_v12, %v7641_v49  ;;  %v692_v17 = vadd.f32 %v6213_v13, %v7641_v49  ;;  %6254 = vmatprep.mubr.bf16.mxu0 %v458_v7  ;;  %6302 = vmatprep.mubr.bf16.mxu1 %v795_v8  ;;  %v434_v29 = vmax.f32 %v344_v11, 0.0 }
  0xfc   :  { %v346_v20 = vpop.f32.mrf.mxu0  ;;  %v683_v21 = vpop.f32.mrf.mxu1  ;;  %6255 = vmatmul.mubr.bf16.gmra.mxu0 %v459_v9  ;;  %6303 = vmatmul.mubr.bf16.gmra.mxu1 %v796_v10  ;;  %v771_v30 = vmax.f32 %v681_v15, 0.0 }
  0xfd   :  { %v347_v22 = vadd.f32 %v7641_v49, %v346_v20  ;;  %v684_v23 = vadd.f32 %v7641_v49, %v683_v21  ;;  %6335 = vmatpush3.bf16.msra.mxu0 %v7145_v62  ;;  %v437_v24 = vmax.f32 %v355_v16, 0.0  ;;  %v774_v25 = vmax.f32 %v692_v17, 0.0  ;;  %6383 = vmatpush3.bf16.msra.mxu1 %v7145_v62 }
  0xfe   :  { %v6176_v26 = vpop.f32.mrf.mxu0  ;;  %v6216_v27 = vpop.f32.mrf.mxu1  ;;  %6336 = vmatprep.subr.bf16.mxu0 %v7146_v14  ;;  %6384 = vmatprep.subr.bf16.mxu1 %v7146_v14 }
  0xff   :  { %v435_v31 = vmax.f32 %v347_v22, 0.0  ;;  %v772_v32 = vmax.f32 %v684_v23, 0.0  ;;  %v461_v39 = vpack.c.bf16 %v437_v24, %v436_v33  ;;  %v798_v40 = vpack.c.bf16 %v774_v25, %v773_v34 }
 0x100   :  { %v359_v35 = vpop.f32.mrf.mxu0  ;;  %v696_v36 = vpop.f32.mrf.mxu1  ;;  %v368_v47 = vadd.f32 %v6176_v26, %v7641_v49  ;;  %v705_v48 = vadd.f32 %v6216_v27, %v7641_v49 }
 0x101   :  { %v460_v37 = vpack.c.bf16 %v435_v31, %v434_v29  ;;  %v797_v38 = vpack.c.bf16 %v772_v32, %v771_v30  ;;  %6337 = vmatpush3.bf16.msra.mxu0 %v7146_v14  ;;  %v360_v41 = vadd.f32 %v7641_v49, %v359_v35  ;;  %6385 = vmatpush3.bf16.msra.mxu1 %v7146_v14 }
 0x102   :  { %v6177_v42 = vpop.f32.mrf.mxu0  ;;  %v6217_v43 = vpop.f32.mrf.mxu1  ;;  %6338 = vmatprep.subr.bf16.mxu0 %v7147_v28  ;;  %v697_v44 = vadd.f32 %v7641_v49, %v696_v36  ;;  %6386 = vmatprep.subr.bf16.mxu1 %v7147_v28  ;;  %v440_v62 = vmax.f32 %v368_v47, 0.0  ;;  %v777_v63 = vmax.f32 %v705_v48, 0.0 }
 0x103   :  { %v371_v45 = vadd.f32 %v6177_v42, %v7641_v49  ;;  %v708_v46 = vadd.f32 %v6217_v43, %v7641_v49  ;;  %6258 = vmatprep.mubr.bf16.mxu0 %v460_v37  ;;  %6306 = vmatprep.mubr.bf16.mxu1 %v797_v38  ;;  %v438_v58 = vmax.f32 %v360_v41, 0.0 }
 0x104   :  { %v362_v50 = vpop.f32.mrf.mxu0  ;;  %v699_v51 = vpop.f32.mrf.mxu1  ;;  %6259 = vmatmul.mubr.bf16.gmra.mxu0 %v461_v39  ;;  %6307 = vmatmul.mubr.bf16.gmra.mxu1 %v798_v40  ;;  %v775_v59 = vmax.f32 %v697_v44, 0.0 }
 0x105   :  { %v363_v52 = vadd.f32 %v7641_v49, %v362_v50  ;;  %v700_v53 = vadd.f32 %v7641_v49, %v699_v51  ;;  %6339 = vmatpush3.bf16.msra.mxu0 %v7147_v28  ;;  %v441_v54 = vmax.f32 %v371_v45, 0.0  ;;  %v778_v55 = vmax.f32 %v708_v46, 0.0  ;;  %6387 = vmatpush3.bf16.msra.mxu1 %v7147_v28 }
 0x106   :  { %v6180_v56 = vpop.f32.mrf.mxu0  ;;  %v6220_v57 = vpop.f32.mrf.mxu1 }
 0x107   :  { %v439_v60 = vmax.f32 %v363_v52, 0.0  ;;  %v776_v61 = vmax.f32 %v700_v53, 0.0  ;;  %v463_v4 = vpack.c.bf16 %v441_v54, %v440_v62  ;;  %v800_v5 = vpack.c.bf16 %v778_v55, %v777_v63 }
 0x108   :  { %v375_v0 = vpop.f32.mrf.mxu0  ;;  %v712_v1 = vpop.f32.mrf.mxu1  ;;  %v384_v12 = vadd.f32 %v6180_v56, %v7641_v49  ;;  %v721_v13 = vadd.f32 %v6220_v57, %v7641_v49 }
 0x109   :  { %v462_v2 = vpack.c.bf16 %v439_v60, %v438_v58  ;;  %v799_v3 = vpack.c.bf16 %v776_v61, %v775_v59  ;;  %v376_v6 = vadd.f32 %v7641_v49, %v375_v0  ;;  %v713_v9 = vadd.f32 %v7641_v49, %v712_v1 }
 0x10a   :  { %v6181_v7 = vpop.f32.mrf.mxu0  ;;  %v6221_v8 = vpop.f32.mrf.mxu1  ;;  %v444_v26 = vmax.f32 %v384_v12, 0.0  ;;  %v781_v27 = vmax.f32 %v721_v13, 0.0 }
 0x10b   :  { %v387_v10 = vadd.f32 %v6181_v7, %v7641_v49  ;;  %v724_v11 = vadd.f32 %v6221_v8, %v7641_v49  ;;  %6262 = vmatprep.mubr.bf16.mxu0 %v462_v2  ;;  %6310 = vmatprep.mubr.bf16.mxu1 %v799_v3  ;;  %v442_v22 = vmax.f32 %v376_v6, 0.0  ;;  %v779_v23 = vmax.f32 %v713_v9, 0.0 }
 0x10c   :  { %v378_v14 = vpop.f32.mrf.mxu0  ;;  %v715_v15 = vpop.f32.mrf.mxu1  ;;  %6263 = vmatmul.mubr.bf16.gmra.mxu0 %v463_v4  ;;  %6311 = vmatmul.mubr.bf16.gmra.mxu1 %v800_v5 }
 0x10d   :  { %v379_v16 = vadd.f32 %v7641_v49, %v378_v14  ;;  %v716_v17 = vadd.f32 %v7641_v49, %v715_v15  ;;  %v445_v18 = vmax.f32 %v387_v10, 0.0  ;;  %v782_v19 = vmax.f32 %v724_v11, 0.0 }
 0x10e   :  { %v6184_v20 = vpop.f32.mrf.mxu0  ;;  %v6224_v21 = vpop.f32.mrf.mxu1 }
 0x10f   :  { %v443_v24 = vmax.f32 %v379_v16, 0.0  ;;  %v780_v25 = vmax.f32 %v716_v17, 0.0  ;;  %v465_v32 = vpack.c.bf16 %v445_v18, %v444_v26  ;;  %v802_v33 = vpack.c.bf16 %v782_v19, %v781_v27 }
 0x110   :  { %v391_v28 = vpop.f32.mrf.mxu0  ;;  %v728_v29 = vpop.f32.mrf.mxu1  ;;  %v400_v40 = vadd.f32 %v6184_v20, %v7641_v49  ;;  %v737_v41 = vadd.f32 %v6224_v21, %v7641_v49 }
 0x111   :  { %v464_v30 = vpack.c.bf16 %v443_v24, %v442_v22  ;;  %v801_v31 = vpack.c.bf16 %v780_v25, %v779_v23  ;;  %v392_v34 = vadd.f32 %v7641_v49, %v391_v28  ;;  %v729_v37 = vadd.f32 %v7641_v49, %v728_v29  ;;  %v7148_v23 = vld [vmem:[#allocation2 + $0x80] sm:$0xff]  }
 0x112   :  { %v6185_v35 = vpop.f32.mrf.mxu0  ;;  %v6225_v36 = vpop.f32.mrf.mxu1  ;;  %v448_v55 = vmax.f32 %v400_v40, 0.0  ;;  %v785_v56 = vmax.f32 %v737_v41, 0.0  ;;  %6340 = vmatprep.subr.bf16.mxu0 %v7148_v23  ;;  %6388 = vmatprep.subr.bf16.mxu1 %v7148_v23  ;;  %v7710_v28 = vld [vmem:[%s8524_s2 + $0x1] ss:$0 sm:$0xff] }
 0x113   :  { %v403_v38 = vadd.f32 %v6185_v35, %v7641_v49  ;;  %v740_v39 = vadd.f32 %v6225_v36, %v7641_v49  ;;  %6266 = vmatprep.mubr.bf16.mxu0 %v464_v30  ;;  %6314 = vmatprep.mubr.bf16.mxu1 %v801_v31  ;;  %v446_v51 = vmax.f32 %v392_v34, 0.0  ;;  %v783_v52 = vmax.f32 %v729_v37, 0.0 }
 0x114   :  { %v394_v42 = vpop.f32.mrf.mxu0  ;;  %v731_v43 = vpop.f32.mrf.mxu1  ;;  %6267 = vmatmul.mubr.bf16.gmra.mxu0 %v465_v32  ;;  %6315 = vmatmul.mubr.bf16.gmra.mxu1 %v802_v33 }
 0x115   :  { %v395_v44 = vadd.f32 %v7641_v49, %v394_v42  ;;  %v732_v45 = vadd.f32 %v7641_v49, %v731_v43  ;;  %v449_v46 = vmax.f32 %v403_v38, 0.0  ;;  %v786_v47 = vmax.f32 %v740_v39, 0.0  ;;  %6341 = vmatpush3.bf16.msra.mxu0 %v7148_v23  ;;  %6389 = vmatpush3.bf16.msra.mxu1 %v7148_v23 }
 0x116   :  { %v6188_v48 = vpop.f32.mrf.mxu0  ;;  %v6228_v50 = vpop.f32.mrf.mxu1 }
 0x117   :  { %v447_v53 = vmax.f32 %v395_v44, 0.0  ;;  %v784_v54 = vmax.f32 %v732_v45, 0.0  ;;  %v467_v61 = vpack.c.bf16 %v449_v46, %v448_v55  ;;  %v804_v62 = vpack.c.bf16 %v786_v47, %v785_v56 }
 0x118   :  { %v407_v57 = vpop.f32.mrf.mxu0  ;;  %v744_v58 = vpop.f32.mrf.mxu1  ;;  %v416_v5 = vadd.f32 %v6188_v48, %v7641_v49  ;;  %v753_v6 = vadd.f32 %v6228_v50, %v7641_v49 }
 0x119   :  { %v466_v59 = vpack.c.bf16 %v447_v53, %v446_v51  ;;  %v803_v60 = vpack.c.bf16 %v784_v54, %v783_v52  ;;  %v408_v63 = vadd.f32 %v7641_v49, %v407_v57  ;;  %v745_v2 = vadd.f32 %v7641_v49, %v744_v58 }
 0x11a   :  { %v6189_v0 = vpop.f32.mrf.mxu0  ;;  %v6229_v1 = vpop.f32.mrf.mxu1  ;;  %v452_v17 = vmax.f32 %v416_v5, 0.0  ;;  %v789_v18 = vmax.f32 %v753_v6, 0.0 }
 0x11b   :  { %v419_v3 = vadd.f32 %v6189_v0, %v7641_v49  ;;  %v756_v4 = vadd.f32 %v6229_v1, %v7641_v49  ;;  %6270 = vmatprep.mubr.bf16.mxu0 %v466_v59  ;;  %6318 = vmatprep.mubr.bf16.mxu1 %v803_v60  ;;  %v450_v13 = vmax.f32 %v408_v63, 0.0  ;;  %v787_v14 = vmax.f32 %v745_v2, 0.0 }
 0x11c   :  { %v410_v7 = vpop.f32.mrf.mxu0  ;;  %v747_v8 = vpop.f32.mrf.mxu1  ;;  %6271 = vmatmul.mubr.bf16.gmra.mxu0 %v467_v61  ;;  %6319 = vmatmul.mubr.bf16.gmra.mxu1 %v804_v62  ;;  %v7150_v61 = vld [vmem:[#allocation2 + $0xf0] sm:$0xff]  }
 0x11d   :  { %v411_v9 = vadd.f32 %v7641_v49, %v410_v7  ;;  %v748_v10 = vadd.f32 %v7641_v49, %v747_v8  ;;  %v453_v11 = vmax.f32 %v419_v3, 0.0  ;;  %v790_v12 = vmax.f32 %v756_v4, 0.0  ;;  %v7149_v49 = vld [vmem:[#allocation2 + $0xf8] sm:$0xff]  }
 0x11e   :  { %6422 = vmatprep.subr.bf16.mxu0 %v7149_v49  ;;  %6470 = vmatprep.subr.bf16.mxu1 %v7149_v49 }
 0x11f   :  { %v451_v15 = vmax.f32 %v411_v9, 0.0  ;;  %v788_v16 = vmax.f32 %v748_v10, 0.0  ;;  %v469_v21 = vpack.c.bf16 %v453_v11, %v452_v17  ;;  %v806_v22 = vpack.c.bf16 %v790_v12, %v789_v18  ;;  %v7151_v11 = vld [vmem:[#allocation2 + $0xe8] sm:$0xff]  }
 0x121   :  { %v468_v19 = vpack.c.bf16 %v451_v15, %v450_v13  ;;  %v805_v20 = vpack.c.bf16 %v788_v16, %v787_v14 }
 0x123   :  { %6274 = vmatprep.mubr.bf16.mxu0 %v468_v19  ;;  %6322 = vmatprep.mubr.bf16.mxu1 %v805_v20 }
 0x124   :  { %6275 = vmatmul.mubr.bf16.gmra.mxu0 %v469_v21  ;;  %6323 = vmatmul.mubr.bf16.gmra.mxu1 %v806_v22 }
 0x1ac   :  { %v6248_v24 = vpop.f32.mrf.mxu0  ;;  %v6296_v25 = vpop.f32.mrf.mxu1 }
 0x1ad   :  { %v923_v35 = vadd.f32 %v6248_v24, %v7710_v28  ;;  %v1132_v36 = vadd.f32 %v6296_v25, %v7710_v28 }
 0x1ae   :  { %v914_v26 = vpop.f32.mrf.mxu0  ;;  %v1123_v27 = vpop.f32.mrf.mxu1 }
 0x1af   :  { %v915_v31 = vadd.f32 %v7710_v28, %v914_v26  ;;  %v1124_v32 = vadd.f32 %v7710_v28, %v1123_v27  ;;  %v1043_v50 = vmax.f32 %v923_v35, 0.0  ;;  %v1252_v51 = vmax.f32 %v1132_v36, 0.0  ;;  %v7152_v26 = vld [vmem:[#allocation2 + $0xe0] sm:$0xff]  }
 0x1b0   :  { %v6249_v29 = vpop.f32.mrf.mxu0  ;;  %v6297_v30 = vpop.f32.mrf.mxu1 }
 0x1b1   :  { %v926_v33 = vadd.f32 %v6249_v29, %v7710_v28  ;;  %v1135_v34 = vadd.f32 %v6297_v30, %v7710_v28  ;;  %v1041_v45 = vmax.f32 %v915_v31, 0.0  ;;  %v1250_v46 = vmax.f32 %v1124_v32, 0.0 }
 0x1b2   :  { %v917_v37 = vpop.f32.mrf.mxu0  ;;  %v1126_v38 = vpop.f32.mrf.mxu1 }
 0x1b3   :  { %v918_v39 = vadd.f32 %v7710_v28, %v917_v37  ;;  %v1127_v40 = vadd.f32 %v7710_v28, %v1126_v38  ;;  %v1044_v41 = vmax.f32 %v926_v33, 0.0  ;;  %v1253_v42 = vmax.f32 %v1135_v34, 0.0 }
 0x1b4   :  { %v6252_v43 = vpop.f32.mrf.mxu0  ;;  %v6300_v44 = vpop.f32.mrf.mxu1 }
 0x1b5   :  { %v1042_v47 = vmax.f32 %v918_v39, 0.0  ;;  %v1251_v48 = vmax.f32 %v1127_v40, 0.0  ;;  %v1074_v56 = vpack.c.bf16 %v1044_v41, %v1043_v50  ;;  %v1283_v57 = vpack.c.bf16 %v1253_v42, %v1252_v51  ;;  %v7153_v41 = vld [vmem:[#allocation2 + $0xd8] sm:$0xff]  }
 0x1b6   :  { %v930_v52 = vpop.f32.mrf.mxu0  ;;  %v1139_v53 = vpop.f32.mrf.mxu1  ;;  %v939_v1 = vadd.f32 %v6252_v43, %v7710_v28  ;;  %v1148_v2 = vadd.f32 %v6300_v44, %v7710_v28 }
 0x1b7   :  { %v1073_v54 = vpack.c.bf16 %v1042_v47, %v1041_v45  ;;  %v1282_v55 = vpack.c.bf16 %v1251_v48, %v1250_v46  ;;  %v931_v58 = vadd.f32 %v7710_v28, %v930_v52  ;;  %v1140_v62 = vadd.f32 %v7710_v28, %v1139_v53 }
 0x1b8   :  { %v6253_v59 = vpop.f32.mrf.mxu0  ;;  %v6301_v60 = vpop.f32.mrf.mxu1  ;;  %v1047_v16 = vmax.f32 %v939_v1, 0.0  ;;  %v1256_v17 = vmax.f32 %v1148_v2, 0.0 }
 0x1b9   :  { %v942_v63 = vadd.f32 %v6253_v59, %v7710_v28  ;;  %v1151_v0 = vadd.f32 %v6301_v60, %v7710_v28  ;;  %6342 = vmatprep.mubr.bf16.mxu0 %v1073_v54  ;;  %6390 = vmatprep.mubr.bf16.mxu1 %v1282_v55  ;;  %v1045_v12 = vmax.f32 %v931_v58, 0.0  ;;  %v1254_v13 = vmax.f32 %v1140_v62, 0.0  ;;  %v7154_v58 = vld [vmem:[#allocation2 + $0xd0] sm:$0xff]  }
 0x1ba   :  { %v933_v3 = vpop.f32.mrf.mxu0  ;;  %v1142_v4 = vpop.f32.mrf.mxu1  ;;  %6343 = vmatmul.mubr.bf16.vlgmr.msra.gmra.mxu0 %v1074_v56  ;;  %6391 = vmatmul.mubr.bf16.vlgmr.msra.gmra.mxu1 %v1283_v57 }
 0x1bb   :  { %v934_v5 = vadd.f32 %v7710_v28, %v933_v3  ;;  %v1143_v6 = vadd.f32 %v7710_v28, %v1142_v4  ;;  %6423 = vmatpush3.bf16.msra.mxu0 %v7149_v49  ;;  %6471 = vmatpush3.bf16.msra.mxu1 %v7149_v49  ;;  %v1048_v7 = vmax.f32 %v942_v63, 0.0  ;;  %v1257_v8 = vmax.f32 %v1151_v0, 0.0 }
 0x1bc   :  { %v6256_v9 = vpop.f32.mrf.mxu0  ;;  %v6304_v10 = vpop.f32.mrf.mxu1  ;;  %6424 = vmatprep.subr.bf16.mxu0 %v7150_v61  ;;  %6472 = vmatprep.subr.bf16.mxu1 %v7150_v61 }
 0x1bd   :  { %v1046_v14 = vmax.f32 %v934_v5, 0.0  ;;  %v1255_v15 = vmax.f32 %v1143_v6, 0.0  ;;  %v1076_v22 = vpack.c.bf16 %v1048_v7, %v1047_v16  ;;  %v1285_v23 = vpack.c.bf16 %v1257_v8, %v1256_v17  ;;  %v7155_v8 = vld [vmem:[#allocation2 + $0xc8] sm:$0xff]  }
 0x1be   :  { %v946_v18 = vpop.f32.mrf.mxu0  ;;  %v1155_v19 = vpop.f32.mrf.mxu1  ;;  %v955_v31 = vadd.f32 %v6256_v9, %v7710_v28  ;;  %v1164_v32 = vadd.f32 %v6304_v10, %v7710_v28 }
 0x1bf   :  { %v1075_v20 = vpack.c.bf16 %v1046_v14, %v1045_v12  ;;  %v1284_v21 = vpack.c.bf16 %v1255_v15, %v1254_v13  ;;  %6425 = vmatpush3.bf16.msra.mxu0 %v7150_v61  ;;  %v947_v49 = vadd.f32 %v7710_v28, %v946_v18  ;;  %6473 = vmatpush3.bf16.msra.mxu1 %v7150_v61 }
 0x1c0   :  { %v6257_v24 = vpop.f32.mrf.mxu0  ;;  %v6305_v25 = vpop.f32.mrf.mxu1  ;;  %6426 = vmatprep.subr.bf16.mxu0 %v7151_v11  ;;  %v1156_v27 = vadd.f32 %v7710_v28, %v1155_v19  ;;  %6474 = vmatprep.subr.bf16.mxu1 %v7151_v11  ;;  %v1051_v46 = vmax.f32 %v955_v31, 0.0  ;;  %v1260_v47 = vmax.f32 %v1164_v32, 0.0 }
 0x1c1   :  { %v958_v29 = vadd.f32 %v6257_v24, %v7710_v28  ;;  %v1167_v30 = vadd.f32 %v6305_v25, %v7710_v28  ;;  %6346 = vmatprep.mubr.bf16.mxu0 %v1075_v20  ;;  %6394 = vmatprep.mubr.bf16.mxu1 %v1284_v21  ;;  %v1049_v42 = vmax.f32 %v947_v49, 0.0 }
 0x1c2   :  { %v949_v33 = vpop.f32.mrf.mxu0  ;;  %v1158_v34 = vpop.f32.mrf.mxu1  ;;  %6347 = vmatmul.mubr.bf16.gmra.mxu0 %v1076_v22  ;;  %6395 = vmatmul.mubr.bf16.gmra.mxu1 %v1285_v23  ;;  %v1258_v43 = vmax.f32 %v1156_v27, 0.0 }
 0x1c3   :  { %v950_v35 = vadd.f32 %v7710_v28, %v949_v33  ;;  %v1159_v36 = vadd.f32 %v7710_v28, %v1158_v34  ;;  %6427 = vmatpush3.bf16.msra.mxu0 %v7151_v11  ;;  %v1052_v37 = vmax.f32 %v958_v29, 0.0  ;;  %v1261_v38 = vmax.f32 %v1167_v30, 0.0  ;;  %6475 = vmatpush3.bf16.msra.mxu1 %v7151_v11 }
 0x1c4   :  { %v6260_v39 = vpop.f32.mrf.mxu0  ;;  %v6308_v40 = vpop.f32.mrf.mxu1  ;;  %6428 = vmatprep.subr.bf16.mxu0 %v7152_v26  ;;  %6476 = vmatprep.subr.bf16.mxu1 %v7152_v26 }
 0x1c5   :  { %v1050_v44 = vmax.f32 %v950_v35, 0.0  ;;  %v1259_v45 = vmax.f32 %v1159_v36, 0.0  ;;  %v1078_v53 = vpack.c.bf16 %v1052_v37, %v1051_v46  ;;  %v1287_v54 = vpack.c.bf16 %v1261_v38, %v1260_v47 }
 0x1c6   :  { %v962_v48 = vpop.f32.mrf.mxu0  ;;  %v1171_v50 = vpop.f32.mrf.mxu1  ;;  %v971_v62 = vadd.f32 %v6260_v39, %v7710_v28  ;;  %v1180_v63 = vadd.f32 %v6308_v40, %v7710_v28 }
 0x1c7   :  { %v1077_v51 = vpack.c.bf16 %v1050_v44, %v1049_v42  ;;  %v1286_v52 = vpack.c.bf16 %v1259_v45, %v1258_v43  ;;  %6429 = vmatpush3.bf16.msra.mxu0 %v7152_v26  ;;  %v963_v55 = vadd.f32 %v7710_v28, %v962_v48  ;;  %6477 = vmatpush3.bf16.msra.mxu1 %v7152_v26 }
 0x1c8   :  { %v6261_v56 = vpop.f32.mrf.mxu0  ;;  %v6309_v57 = vpop.f32.mrf.mxu1  ;;  %6430 = vmatprep.subr.bf16.mxu0 %v7153_v41  ;;  %v1172_v59 = vadd.f32 %v7710_v28, %v1171_v50  ;;  %6478 = vmatprep.subr.bf16.mxu1 %v7153_v41  ;;  %v1055_v13 = vmax.f32 %v971_v62, 0.0  ;;  %v1264_v14 = vmax.f32 %v1180_v63, 0.0 }
 0x1c9   :  { %v974_v60 = vadd.f32 %v6261_v56, %v7710_v28  ;;  %v1183_v61 = vadd.f32 %v6309_v57, %v7710_v28  ;;  %6350 = vmatprep.mubr.bf16.mxu0 %v1077_v51  ;;  %6398 = vmatprep.mubr.bf16.mxu1 %v1286_v52  ;;  %v1053_v9 = vmax.f32 %v963_v55, 0.0 }
 0x1ca   :  { %v965_v0 = vpop.f32.mrf.mxu0  ;;  %v1174_v1 = vpop.f32.mrf.mxu1  ;;  %6351 = vmatmul.mubr.bf16.gmra.mxu0 %v1078_v53  ;;  %6399 = vmatmul.mubr.bf16.gmra.mxu1 %v1287_v54  ;;  %v1262_v10 = vmax.f32 %v1172_v59, 0.0 }
 0x1cb   :  { %v966_v2 = vadd.f32 %v7710_v28, %v965_v0  ;;  %v1175_v3 = vadd.f32 %v7710_v28, %v1174_v1  ;;  %6431 = vmatpush3.bf16.msra.mxu0 %v7153_v41  ;;  %v1056_v4 = vmax.f32 %v974_v60, 0.0  ;;  %v1265_v5 = vmax.f32 %v1183_v61, 0.0  ;;  %6479 = vmatpush3.bf16.msra.mxu1 %v7153_v41 }
 0x1cc   :  { %v6264_v6 = vpop.f32.mrf.mxu0  ;;  %v6312_v7 = vpop.f32.mrf.mxu1  ;;  %6432 = vmatprep.subr.bf16.mxu0 %v7154_v58  ;;  %6480 = vmatprep.subr.bf16.mxu1 %v7154_v58 }
 0x1cd   :  { %v1054_v11 = vmax.f32 %v966_v2, 0.0  ;;  %v1263_v12 = vmax.f32 %v1175_v3, 0.0  ;;  %v1080_v19 = vpack.c.bf16 %v1056_v4, %v1055_v13  ;;  %v1289_v20 = vpack.c.bf16 %v1265_v5, %v1264_v14 }
 0x1ce   :  { %v978_v15 = vpop.f32.mrf.mxu0  ;;  %v1187_v16 = vpop.f32.mrf.mxu1  ;;  %v987_v26 = vadd.f32 %v6264_v6, %v7710_v28  ;;  %v1196_v27 = vadd.f32 %v6312_v7, %v7710_v28 }
 0x1cf   :  { %v1079_v17 = vpack.c.bf16 %v1054_v11, %v1053_v9  ;;  %v1288_v18 = vpack.c.bf16 %v1263_v12, %v1262_v10  ;;  %6433 = vmatpush3.bf16.msra.mxu0 %v7154_v58  ;;  %v979_v21 = vadd.f32 %v7710_v28, %v978_v15  ;;  %6481 = vmatpush3.bf16.msra.mxu1 %v7154_v58 }
 0x1d0   :  { %v6265_v22 = vpop.f32.mrf.mxu0  ;;  %v6313_v23 = vpop.f32.mrf.mxu1  ;;  %6434 = vmatprep.subr.bf16.mxu0 %v7155_v8  ;;  %v1188_v49 = vadd.f32 %v7710_v28, %v1187_v16  ;;  %6482 = vmatprep.subr.bf16.mxu1 %v7155_v8  ;;  %v1059_v41 = vmax.f32 %v987_v26, 0.0  ;;  %v1268_v42 = vmax.f32 %v1196_v27, 0.0 }
 0x1d1   :  { %v990_v24 = vadd.f32 %v6265_v22, %v7710_v28  ;;  %v1199_v25 = vadd.f32 %v6313_v23, %v7710_v28  ;;  %6354 = vmatprep.mubr.bf16.mxu0 %v1079_v17  ;;  %6402 = vmatprep.mubr.bf16.mxu1 %v1288_v18  ;;  %v1057_v37 = vmax.f32 %v979_v21, 0.0 }
 0x1d2   :  { %v981_v29 = vpop.f32.mrf.mxu0  ;;  %v1190_v30 = vpop.f32.mrf.mxu1  ;;  %6355 = vmatmul.mubr.bf16.gmra.mxu0 %v1080_v19  ;;  %6403 = vmatmul.mubr.bf16.gmra.mxu1 %v1289_v20  ;;  %v1266_v38 = vmax.f32 %v1188_v49, 0.0 }
 0x1d3   :  { %v982_v31 = vadd.f32 %v7710_v28, %v981_v29  ;;  %v1191_v32 = vadd.f32 %v7710_v28, %v1190_v30  ;;  %6435 = vmatpush3.bf16.msra.mxu0 %v7155_v8  ;;  %v1060_v33 = vmax.f32 %v990_v24, 0.0  ;;  %v1269_v34 = vmax.f32 %v1199_v25, 0.0  ;;  %6483 = vmatpush3.bf16.msra.mxu1 %v7155_v8 }
 0x1d4   :  { %v6268_v35 = vpop.f32.mrf.mxu0  ;;  %v6316_v36 = vpop.f32.mrf.mxu1 }
 0x1d5   :  { %v1058_v39 = vmax.f32 %v982_v31, 0.0  ;;  %v1267_v40 = vmax.f32 %v1191_v32, 0.0  ;;  %v1082_v47 = vpack.c.bf16 %v1060_v33, %v1059_v41  ;;  %v1291_v48 = vpack.c.bf16 %v1269_v34, %v1268_v42 }
 0x1d6   :  { %v994_v43 = vpop.f32.mrf.mxu0  ;;  %v1203_v44 = vpop.f32.mrf.mxu1  ;;  %v1003_v56 = vadd.f32 %v6268_v35, %v7710_v28  ;;  %v1212_v57 = vadd.f32 %v6316_v36, %v7710_v28 }
 0x1d7   :  { %v1081_v45 = vpack.c.bf16 %v1058_v39, %v1057_v37  ;;  %v1290_v46 = vpack.c.bf16 %v1267_v40, %v1266_v38  ;;  %v995_v50 = vadd.f32 %v7710_v28, %v994_v43  ;;  %v1204_v53 = vadd.f32 %v7710_v28, %v1203_v44 }
 0x1d8   :  { %v6269_v51 = vpop.f32.mrf.mxu0  ;;  %v6317_v52 = vpop.f32.mrf.mxu1  ;;  %v1063_v6 = vmax.f32 %v1003_v56, 0.0  ;;  %v1272_v7 = vmax.f32 %v1212_v57, 0.0 }
 0x1d9   :  { %v1006_v54 = vadd.f32 %v6269_v51, %v7710_v28  ;;  %v1215_v55 = vadd.f32 %v6317_v52, %v7710_v28  ;;  %6358 = vmatprep.mubr.bf16.mxu0 %v1081_v45  ;;  %6406 = vmatprep.mubr.bf16.mxu1 %v1290_v46  ;;  %v1061_v2 = vmax.f32 %v995_v50, 0.0  ;;  %v1270_v3 = vmax.f32 %v1204_v53, 0.0 }
 0x1da   :  { %v997_v58 = vpop.f32.mrf.mxu0  ;;  %v1206_v59 = vpop.f32.mrf.mxu1  ;;  %6359 = vmatmul.mubr.bf16.gmra.mxu0 %v1082_v47  ;;  %6407 = vmatmul.mubr.bf16.gmra.mxu1 %v1291_v48 }
 0x1db   :  { %v998_v60 = vadd.f32 %v7710_v28, %v997_v58  ;;  %v1207_v61 = vadd.f32 %v7710_v28, %v1206_v59  ;;  %v1064_v62 = vmax.f32 %v1006_v54, 0.0  ;;  %v1273_v63 = vmax.f32 %v1215_v55, 0.0 }
 0x1dc   :  { %v6272_v0 = vpop.f32.mrf.mxu0  ;;  %v6320_v1 = vpop.f32.mrf.mxu1 }
 0x1dd   :  { %v1062_v4 = vmax.f32 %v998_v60, 0.0  ;;  %v1271_v5 = vmax.f32 %v1207_v61, 0.0  ;;  %v1084_v12 = vpack.c.bf16 %v1064_v62, %v1063_v6  ;;  %v1293_v13 = vpack.c.bf16 %v1273_v63, %v1272_v7 }
 0x1de   :  { %v1010_v8 = vpop.f32.mrf.mxu0  ;;  %v1219_v9 = vpop.f32.mrf.mxu1  ;;  %v1019_v20 = vadd.f32 %v6272_v0, %v7710_v28  ;;  %v1228_v21 = vadd.f32 %v6320_v1, %v7710_v28 }
 0x1df   :  { %v1083_v10 = vpack.c.bf16 %v1062_v4, %v1061_v2  ;;  %v1292_v11 = vpack.c.bf16 %v1271_v5, %v1270_v3  ;;  %v1011_v14 = vadd.f32 %v7710_v28, %v1010_v8  ;;  %v1220_v17 = vadd.f32 %v7710_v28, %v1219_v9  ;;  %v7156_v3 = vld [vmem:[#allocation2 + $0xc0] sm:$0xff]  }
 0x1e0   :  { %v6273_v15 = vpop.f32.mrf.mxu0  ;;  %v6321_v16 = vpop.f32.mrf.mxu1  ;;  %v1067_v34 = vmax.f32 %v1019_v20, 0.0  ;;  %v1276_v35 = vmax.f32 %v1228_v21, 0.0  ;;  %6436 = vmatprep.subr.bf16.mxu0 %v7156_v3  ;;  %6484 = vmatprep.subr.bf16.mxu1 %v7156_v3  ;;  %v7779_v8 = vld [vmem:[%s8524_s2 + $0x2] ss:$0 sm:$0xff] }
 0x1e1   :  { %v1022_v18 = vadd.f32 %v6273_v15, %v7710_v28  ;;  %v1231_v19 = vadd.f32 %v6321_v16, %v7710_v28  ;;  %6362 = vmatprep.mubr.bf16.mxu0 %v1083_v10  ;;  %6410 = vmatprep.mubr.bf16.mxu1 %v1292_v11  ;;  %v1065_v30 = vmax.f32 %v1011_v14, 0.0  ;;  %v1274_v31 = vmax.f32 %v1220_v17, 0.0 }
 0x1e2   :  { %v1013_v22 = vpop.f32.mrf.mxu0  ;;  %v1222_v23 = vpop.f32.mrf.mxu1  ;;  %6363 = vmatmul.mubr.bf16.gmra.mxu0 %v1084_v12  ;;  %6411 = vmatmul.mubr.bf16.gmra.mxu1 %v1293_v13 }
 0x1e3   :  { %v1014_v49 = vadd.f32 %v7710_v28, %v1013_v22  ;;  %v1223_v24 = vadd.f32 %v7710_v28, %v1222_v23  ;;  %v1068_v25 = vmax.f32 %v1022_v18, 0.0  ;;  %v1277_v26 = vmax.f32 %v1231_v19, 0.0  ;;  %6437 = vmatpush3.bf16.msra.mxu0 %v7156_v3  ;;  %6485 = vmatpush3.bf16.msra.mxu1 %v7156_v3 }
 0x1e4   :  { %v6276_v27 = vpop.f32.mrf.mxu0  ;;  %v6324_v29 = vpop.f32.mrf.mxu1 }
 0x1e5   :  { %v1066_v32 = vmax.f32 %v1014_v49, 0.0  ;;  %v1275_v33 = vmax.f32 %v1223_v24, 0.0  ;;  %v1086_v40 = vpack.c.bf16 %v1068_v25, %v1067_v34  ;;  %v1295_v41 = vpack.c.bf16 %v1277_v26, %v1276_v35 }
 0x1e6   :  { %v1026_v36 = vpop.f32.mrf.mxu0  ;;  %v1235_v37 = vpop.f32.mrf.mxu1  ;;  %v1035_v48 = vadd.f32 %v6276_v27, %v7710_v28  ;;  %v1244_v50 = vadd.f32 %v6324_v29, %v7710_v28 }
 0x1e7   :  { %v1085_v38 = vpack.c.bf16 %v1066_v32, %v1065_v30  ;;  %v1294_v39 = vpack.c.bf16 %v1275_v33, %v1274_v31  ;;  %v1027_v42 = vadd.f32 %v7710_v28, %v1026_v36  ;;  %v1236_v45 = vadd.f32 %v7710_v28, %v1235_v37 }
 0x1e8   :  { %v6277_v43 = vpop.f32.mrf.mxu0  ;;  %v6325_v44 = vpop.f32.mrf.mxu1  ;;  %v1071_v61 = vmax.f32 %v1035_v48, 0.0  ;;  %v1280_v62 = vmax.f32 %v1244_v50, 0.0 }
 0x1e9   :  { %v1038_v46 = vadd.f32 %v6277_v43, %v7710_v28  ;;  %v1247_v47 = vadd.f32 %v6325_v44, %v7710_v28  ;;  %6366 = vmatprep.mubr.bf16.mxu0 %v1085_v38  ;;  %6414 = vmatprep.mubr.bf16.mxu1 %v1294_v39  ;;  %v1069_v57 = vmax.f32 %v1027_v42, 0.0  ;;  %v1278_v58 = vmax.f32 %v1236_v45, 0.0 }
 0x1ea   :  { %v1029_v51 = vpop.f32.mrf.mxu0  ;;  %v1238_v52 = vpop.f32.mrf.mxu1  ;;  %6367 = vmatmul.mubr.bf16.gmra.mxu0 %v1086_v40  ;;  %6415 = vmatmul.mubr.bf16.gmra.mxu1 %v1295_v41  ;;  %v7158_v40 = vld [vmem:[#allocation2 + $0x130] sm:$0xff]  }
 0x1eb   :  { %v1030_v53 = vadd.f32 %v7710_v28, %v1029_v51  ;;  %v1239_v54 = vadd.f32 %v7710_v28, %v1238_v52  ;;  %v1072_v55 = vmax.f32 %v1038_v46, 0.0  ;;  %v1281_v56 = vmax.f32 %v1247_v47, 0.0  ;;  %v7157_v28 = vld [vmem:[#allocation2 + $0x138] sm:$0xff]  }
 0x1ec   :  { %6518 = vmatprep.subr.bf16.mxu0 %v7157_v28  ;;  %6566 = vmatprep.subr.bf16.mxu1 %v7157_v28 }
 0x1ed   :  { %v1070_v59 = vmax.f32 %v1030_v53, 0.0  ;;  %v1279_v60 = vmax.f32 %v1239_v54, 0.0  ;;  %v1088_v1 = vpack.c.bf16 %v1072_v55, %v1071_v61  ;;  %v1297_v2 = vpack.c.bf16 %v1281_v56, %v1280_v62  ;;  %v7159_v55 = vld [vmem:[#allocation2 + $0x128] sm:$0xff]  }
 0x1ef   :  { %v1087_v63 = vpack.c.bf16 %v1070_v59, %v1069_v57  ;;  %v1296_v0 = vpack.c.bf16 %v1279_v60, %v1278_v58 }
 0x1f1   :  { %6370 = vmatprep.mubr.bf16.mxu0 %v1087_v63  ;;  %6418 = vmatprep.mubr.bf16.mxu1 %v1296_v0 }
 0x1f2   :  { %6371 = vmatmul.mubr.bf16.gmra.mxu0 %v1088_v1  ;;  %6419 = vmatmul.mubr.bf16.gmra.mxu1 %v1297_v2 }
 0x27a   :  { %v6344_v4 = vpop.f32.mrf.mxu0  ;;  %v6392_v5 = vpop.f32.mrf.mxu1 }
 0x27b   :  { %v1414_v15 = vadd.f32 %v6344_v4, %v7779_v8  ;;  %v1623_v16 = vadd.f32 %v6392_v5, %v7779_v8 }
 0x27c   :  { %v1405_v6 = vpop.f32.mrf.mxu0  ;;  %v1614_v7 = vpop.f32.mrf.mxu1 }
 0x27d   :  { %v1406_v11 = vadd.f32 %v7779_v8, %v1405_v6  ;;  %v1615_v12 = vadd.f32 %v7779_v8, %v1614_v7  ;;  %v1534_v29 = vmax.f32 %v1414_v15, 0.0  ;;  %v1743_v30 = vmax.f32 %v1623_v16, 0.0  ;;  %v7160_v6 = vld [vmem:[#allocation2 + $0x120] sm:$0xff]  }
 0x27e   :  { %v6345_v9 = vpop.f32.mrf.mxu0  ;;  %v6393_v10 = vpop.f32.mrf.mxu1 }
 0x27f   :  { %v1417_v13 = vadd.f32 %v6345_v9, %v7779_v8  ;;  %v1626_v14 = vadd.f32 %v6393_v10, %v7779_v8  ;;  %v1532_v24 = vmax.f32 %v1406_v11, 0.0  ;;  %v1741_v25 = vmax.f32 %v1615_v12, 0.0 }
 0x280   :  { %v1408_v17 = vpop.f32.mrf.mxu0  ;;  %v1617_v18 = vpop.f32.mrf.mxu1 }
 0x281   :  { %v1409_v19 = vadd.f32 %v7779_v8, %v1408_v17  ;;  %v1618_v20 = vadd.f32 %v7779_v8, %v1617_v18  ;;  %v1535_v21 = vmax.f32 %v1417_v13, 0.0  ;;  %v1744_v22 = vmax.f32 %v1626_v14, 0.0 }
 0x282   :  { %v6348_v23 = vpop.f32.mrf.mxu0  ;;  %v6396_v49 = vpop.f32.mrf.mxu1 }
 0x283   :  { %v1533_v26 = vmax.f32 %v1409_v19, 0.0  ;;  %v1742_v27 = vmax.f32 %v1618_v20, 0.0  ;;  %v1565_v35 = vpack.c.bf16 %v1535_v21, %v1534_v29  ;;  %v1774_v36 = vpack.c.bf16 %v1744_v22, %v1743_v30  ;;  %v7161_v21 = vld [vmem:[#allocation2 + $0x118] sm:$0xff]  }
 0x284   :  { %v1421_v31 = vpop.f32.mrf.mxu0  ;;  %v1630_v32 = vpop.f32.mrf.mxu1  ;;  %v1430_v44 = vadd.f32 %v6348_v23, %v7779_v8  ;;  %v1639_v45 = vadd.f32 %v6396_v49, %v7779_v8 }
 0x285   :  { %v1564_v33 = vpack.c.bf16 %v1533_v26, %v1532_v24  ;;  %v1773_v34 = vpack.c.bf16 %v1742_v27, %v1741_v25  ;;  %v1422_v37 = vadd.f32 %v7779_v8, %v1421_v31  ;;  %v1631_v41 = vadd.f32 %v7779_v8, %v1630_v32 }
 0x286   :  { %v6349_v38 = vpop.f32.mrf.mxu0  ;;  %v6397_v39 = vpop.f32.mrf.mxu1  ;;  %v1538_v60 = vmax.f32 %v1430_v44, 0.0  ;;  %v1747_v61 = vmax.f32 %v1639_v45, 0.0 }
 0x287   :  { %v1433_v42 = vadd.f32 %v6349_v38, %v7779_v8  ;;  %v1642_v43 = vadd.f32 %v6397_v39, %v7779_v8  ;;  %6438 = vmatprep.mubr.bf16.mxu0 %v1564_v33  ;;  %6486 = vmatprep.mubr.bf16.mxu1 %v1773_v34  ;;  %v1536_v56 = vmax.f32 %v1422_v37, 0.0  ;;  %v1745_v57 = vmax.f32 %v1631_v41, 0.0  ;;  %v7162_v37 = vld [vmem:[#allocation2 + $0x110] sm:$0xff]  }
 0x288   :  { %v1424_v46 = vpop.f32.mrf.mxu0  ;;  %v1633_v47 = vpop.f32.mrf.mxu1  ;;  %6439 = vmatmul.mubr.bf16.vlgmr.msra.gmra.mxu0 %v1565_v35  ;;  %6487 = vmatmul.mubr.bf16.vlgmr.msra.gmra.mxu1 %v1774_v36 }
 0x289   :  { %v1425_v48 = vadd.f32 %v7779_v8, %v1424_v46  ;;  %v1634_v50 = vadd.f32 %v7779_v8, %v1633_v47  ;;  %6519 = vmatpush3.bf16.msra.mxu0 %v7157_v28  ;;  %6567 = vmatpush3.bf16.msra.mxu1 %v7157_v28  ;;  %v1539_v51 = vmax.f32 %v1433_v42, 0.0  ;;  %v1748_v52 = vmax.f32 %v1642_v43, 0.0 }
 0x28a   :  { %v6352_v53 = vpop.f32.mrf.mxu0  ;;  %v6400_v54 = vpop.f32.mrf.mxu1  ;;  %6520 = vmatprep.subr.bf16.mxu0 %v7158_v40  ;;  %6568 = vmatprep.subr.bf16.mxu1 %v7158_v40 }
 0x28b   :  { %v1537_v58 = vmax.f32 %v1425_v48, 0.0  ;;  %v1746_v59 = vmax.f32 %v1634_v50, 0.0  ;;  %v1567_v2 = vpack.c.bf16 %v1539_v51, %v1538_v60  ;;  %v1776_v3 = vpack.c.bf16 %v1748_v52, %v1747_v61  ;;  %v7163_v52 = vld [vmem:[#allocation2 + $0x108] sm:$0xff]  }
 0x28c   :  { %v1437_v62 = vpop.f32.mrf.mxu0  ;;  %v1646_v63 = vpop.f32.mrf.mxu1  ;;  %v1446_v11 = vadd.f32 %v6352_v53, %v7779_v8  ;;  %v1655_v12 = vadd.f32 %v6400_v54, %v7779_v8 }
 0x28d   :  { %v1566_v0 = vpack.c.bf16 %v1537_v58, %v1536_v56  ;;  %v1775_v1 = vpack.c.bf16 %v1746_v59, %v1745_v57  ;;  %6521 = vmatpush3.bf16.msra.mxu0 %v7158_v40  ;;  %v1438_v28 = vadd.f32 %v7779_v8, %v1437_v62  ;;  %6569 = vmatpush3.bf16.msra.mxu1 %v7158_v40 }
 0x28e   :  { %v6353_v4 = vpop.f32.mrf.mxu0  ;;  %v6401_v5 = vpop.f32.mrf.mxu1  ;;  %6522 = vmatprep.subr.bf16.mxu0 %v7159_v55  ;;  %v1647_v7 = vadd.f32 %v7779_v8, %v1646_v63  ;;  %6570 = vmatprep.subr.bf16.mxu1 %v7159_v55  ;;  %v1542_v25 = vmax.f32 %v1446_v11, 0.0  ;;  %v1751_v26 = vmax.f32 %v1655_v12, 0.0 }
 0x28f   :  { %v1449_v9 = vadd.f32 %v6353_v4, %v7779_v8  ;;  %v1658_v10 = vadd.f32 %v6401_v5, %v7779_v8  ;;  %6442 = vmatprep.mubr.bf16.mxu0 %v1566_v0  ;;  %6490 = vmatprep.mubr.bf16.mxu1 %v1775_v1  ;;  %v1540_v22 = vmax.f32 %v1438_v28, 0.0 }
 0x290   :  { %v1440_v13 = vpop.f32.mrf.mxu0  ;;  %v1649_v14 = vpop.f32.mrf.mxu1  ;;  %6443 = vmatmul.mubr.bf16.gmra.mxu0 %v1567_v2  ;;  %6491 = vmatmul.mubr.bf16.gmra.mxu1 %v1776_v3  ;;  %v1749_v23 = vmax.f32 %v1647_v7, 0.0 }
 0x291   :  { %v1441_v15 = vadd.f32 %v7779_v8, %v1440_v13  ;;  %v1650_v16 = vadd.f32 %v7779_v8, %v1649_v14  ;;  %6523 = vmatpush3.bf16.msra.mxu0 %v7159_v55  ;;  %v1543_v17 = vmax.f32 %v1449_v9, 0.0  ;;  %v1752_v18 = vmax.f32 %v1658_v10, 0.0  ;;  %6571 = vmatpush3.bf16.msra.mxu1 %v7159_v55 }
 0x292   :  { %v6356_v19 = vpop.f32.mrf.mxu0  ;;  %v6404_v20 = vpop.f32.mrf.mxu1  ;;  %6524 = vmatprep.subr.bf16.mxu0 %v7160_v6  ;;  %6572 = vmatprep.subr.bf16.mxu1 %v7160_v6 }
 0x293   :  { %v1541_v49 = vmax.f32 %v1441_v15, 0.0  ;;  %v1750_v24 = vmax.f32 %v1650_v16, 0.0  ;;  %v1569_v32 = vpack.c.bf16 %v1543_v17, %v1542_v25  ;;  %v1778_v33 = vpack.c.bf16 %v1752_v18, %v1751_v26 }
 0x294   :  { %v1453_v27 = vpop.f32.mrf.mxu0  ;;  %v1662_v29 = vpop.f32.mrf.mxu1  ;;  %v1462_v41 = vadd.f32 %v6356_v19, %v7779_v8  ;;  %v1671_v42 = vadd.f32 %v6404_v20, %v7779_v8 }
 0x295   :  { %v1568_v30 = vpack.c.bf16 %v1541_v49, %v1540_v22  ;;  %v1777_v31 = vpack.c.bf16 %v1750_v24, %v1749_v23  ;;  %6525 = vmatpush3.bf16.msra.mxu0 %v7160_v6  ;;  %v1454_v34 = vadd.f32 %v7779_v8, %v1453_v27  ;;  %6573 = vmatpush3.bf16.msra.mxu1 %v7160_v6 }
 0x296   :  { %v6357_v35 = vpop.f32.mrf.mxu0  ;;  %v6405_v36 = vpop.f32.mrf.mxu1  ;;  %6526 = vmatprep.subr.bf16.mxu0 %v7161_v21  ;;  %v1663_v38 = vadd.f32 %v7779_v8, %v1662_v29  ;;  %6574 = vmatprep.subr.bf16.mxu1 %v7161_v21  ;;  %v1546_v57 = vmax.f32 %v1462_v41, 0.0  ;;  %v1755_v58 = vmax.f32 %v1671_v42, 0.0 }
 0x297   :  { %v1465_v39 = vadd.f32 %v6357_v35, %v7779_v8  ;;  %v1674_v40 = vadd.f32 %v6405_v36, %v7779_v8  ;;  %6446 = vmatprep.mubr.bf16.mxu0 %v1568_v30  ;;  %6494 = vmatprep.mubr.bf16.mxu1 %v1777_v31  ;;  %v1544_v53 = vmax.f32 %v1454_v34, 0.0 }
 0x298   :  { %v1456_v43 = vpop.f32.mrf.mxu0  ;;  %v1665_v44 = vpop.f32.mrf.mxu1  ;;  %6447 = vmatmul.mubr.bf16.gmra.mxu0 %v1569_v32  ;;  %6495 = vmatmul.mubr.bf16.gmra.mxu1 %v1778_v33  ;;  %v1753_v54 = vmax.f32 %v1663_v38, 0.0 }
 0x299   :  { %v1457_v45 = vadd.f32 %v7779_v8, %v1456_v43  ;;  %v1666_v46 = vadd.f32 %v7779_v8, %v1665_v44  ;;  %6527 = vmatpush3.bf16.msra.mxu0 %v7161_v21  ;;  %v1547_v47 = vmax.f32 %v1465_v39, 0.0  ;;  %v1756_v48 = vmax.f32 %v1674_v40, 0.0  ;;  %6575 = vmatpush3.bf16.msra.mxu1 %v7161_v21 }
 0x29a   :  { %v6360_v50 = vpop.f32.mrf.mxu0  ;;  %v6408_v51 = vpop.f32.mrf.mxu1  ;;  %6528 = vmatprep.subr.bf16.mxu0 %v7162_v37  ;;  %6576 = vmatprep.subr.bf16.mxu1 %v7162_v37 }
 0x29b   :  { %v1545_v55 = vmax.f32 %v1457_v45, 0.0  ;;  %v1754_v56 = vmax.f32 %v1666_v46, 0.0  ;;  %v1571_v63 = vpack.c.bf16 %v1547_v47, %v1546_v57  ;;  %v1780_v0 = vpack.c.bf16 %v1756_v48, %v1755_v58 }
 0x29c   :  { %v1469_v59 = vpop.f32.mrf.mxu0  ;;  %v1678_v60 = vpop.f32.mrf.mxu1  ;;  %v1478_v6 = vadd.f32 %v6360_v50, %v7779_v8  ;;  %v1687_v7 = vadd.f32 %v6408_v51, %v7779_v8 }
 0x29d   :  { %v1570_v61 = vpack.c.bf16 %v1545_v55, %v1544_v53  ;;  %v1779_v62 = vpack.c.bf16 %v1754_v56, %v1753_v54  ;;  %6529 = vmatpush3.bf16.msra.mxu0 %v7162_v37  ;;  %v1470_v1 = vadd.f32 %v7779_v8, %v1469_v59  ;;  %6577 = vmatpush3.bf16.msra.mxu1 %v7162_v37 }
 0x29e   :  { %v6361_v2 = vpop.f32.mrf.mxu0  ;;  %v6409_v3 = vpop.f32.mrf.mxu1  ;;  %6530 = vmatprep.subr.bf16.mxu0 %v7163_v52  ;;  %v1679_v28 = vadd.f32 %v7779_v8, %v1678_v60  ;;  %6578 = vmatprep.subr.bf16.mxu1 %v7163_v52  ;;  %v1550_v21 = vmax.f32 %v1478_v6, 0.0  ;;  %v1759_v22 = vmax.f32 %v1687_v7, 0.0 }
 0x29f   :  { %v1481_v4 = vadd.f32 %v6361_v2, %v7779_v8  ;;  %v1690_v5 = vadd.f32 %v6409_v3, %v7779_v8  ;;  %6450 = vmatprep.mubr.bf16.mxu0 %v1570_v61  ;;  %6498 = vmatprep.mubr.bf16.mxu1 %v1779_v62  ;;  %v1548_v17 = vmax.f32 %v1470_v1, 0.0 }
 0x2a0   :  { %v1472_v9 = vpop.f32.mrf.mxu0  ;;  %v1681_v10 = vpop.f32.mrf.mxu1  ;;  %6451 = vmatmul.mubr.bf16.gmra.mxu0 %v1571_v63  ;;  %6499 = vmatmul.mubr.bf16.gmra.mxu1 %v1780_v0  ;;  %v1757_v18 = vmax.f32 %v1679_v28, 0.0 }
 0x2a1   :  { %v1473_v11 = vadd.f32 %v7779_v8, %v1472_v9  ;;  %v1682_v12 = vadd.f32 %v7779_v8, %v1681_v10  ;;  %6531 = vmatpush3.bf16.msra.mxu0 %v7163_v52  ;;  %v1551_v13 = vmax.f32 %v1481_v4, 0.0  ;;  %v1760_v14 = vmax.f32 %v1690_v5, 0.0  ;;  %6579 = vmatpush3.bf16.msra.mxu1 %v7163_v52 }
 0x2a2   :  { %v6364_v15 = vpop.f32.mrf.mxu0  ;;  %v6412_v16 = vpop.f32.mrf.mxu1 }
 0x2a3   :  { %v1549_v19 = vmax.f32 %v1473_v11, 0.0  ;;  %v1758_v20 = vmax.f32 %v1682_v12, 0.0  ;;  %v1573_v26 = vpack.c.bf16 %v1551_v13, %v1550_v21  ;;  %v1782_v27 = vpack.c.bf16 %v1760_v14, %v1759_v22 }
 0x2a4   :  { %v1485_v23 = vpop.f32.mrf.mxu0  ;;  %v1694_v49 = vpop.f32.mrf.mxu1  ;;  %v1494_v35 = vadd.f32 %v6364_v15, %v7779_v8  ;;  %v1703_v36 = vadd.f32 %v6412_v16, %v7779_v8 }
 0x2a5   :  { %v1572_v24 = vpack.c.bf16 %v1549_v19, %v1548_v17  ;;  %v1781_v25 = vpack.c.bf16 %v1758_v20, %v1757_v18  ;;  %v1486_v29 = vadd.f32 %v7779_v8, %v1485_v23  ;;  %v1695_v32 = vadd.f32 %v7779_v8, %v1694_v49 }
 0x2a6   :  { %v6365_v30 = vpop.f32.mrf.mxu0  ;;  %v6413_v31 = vpop.f32.mrf.mxu1  ;;  %v1554_v50 = vmax.f32 %v1494_v35, 0.0  ;;  %v1763_v51 = vmax.f32 %v1703_v36, 0.0 }
 0x2a7   :  { %v1497_v33 = vadd.f32 %v6365_v30, %v7779_v8  ;;  %v1706_v34 = vadd.f32 %v6413_v31, %v7779_v8  ;;  %6454 = vmatprep.mubr.bf16.mxu0 %v1572_v24  ;;  %6502 = vmatprep.mubr.bf16.mxu1 %v1781_v25  ;;  %v1552_v45 = vmax.f32 %v1486_v29, 0.0  ;;  %v1761_v46 = vmax.f32 %v1695_v32, 0.0 }
 0x2a8   :  { %v1488_v37 = vpop.f32.mrf.mxu0  ;;  %v1697_v38 = vpop.f32.mrf.mxu1  ;;  %6455 = vmatmul.mubr.bf16.gmra.mxu0 %v1573_v26  ;;  %6503 = vmatmul.mubr.bf16.gmra.mxu1 %v1782_v27 }
 0x2a9   :  { %v1489_v39 = vadd.f32 %v7779_v8, %v1488_v37  ;;  %v1698_v40 = vadd.f32 %v7779_v8, %v1697_v38  ;;  %v1555_v41 = vmax.f32 %v1497_v33, 0.0  ;;  %v1764_v42 = vmax.f32 %v1706_v34, 0.0 }
 0x2aa   :  { %v6368_v43 = vpop.f32.mrf.mxu0  ;;  %v6416_v44 = vpop.f32.mrf.mxu1 }
 0x2ab   :  { %v1553_v47 = vmax.f32 %v1489_v39, 0.0  ;;  %v1762_v48 = vmax.f32 %v1698_v40, 0.0  ;;  %v1575_v56 = vpack.c.bf16 %v1555_v41, %v1554_v50  ;;  %v1784_v57 = vpack.c.bf16 %v1764_v42, %v1763_v51 }
 0x2ac   :  { %v1501_v52 = vpop.f32.mrf.mxu0  ;;  %v1710_v53 = vpop.f32.mrf.mxu1  ;;  %v1510_v0 = vadd.f32 %v6368_v43, %v7779_v8  ;;  %v1719_v1 = vadd.f32 %v6416_v44, %v7779_v8 }
 0x2ad   :  { %v1574_v54 = vpack.c.bf16 %v1553_v47, %v1552_v45  ;;  %v1783_v55 = vpack.c.bf16 %v1762_v48, %v1761_v46  ;;  %v1502_v58 = vadd.f32 %v7779_v8, %v1501_v52  ;;  %v1711_v61 = vadd.f32 %v7779_v8, %v1710_v53  ;;  %v7164_v46 = vld [vmem:[#allocation2 + $0x100] sm:$0xff]  }
 0x2ae   :  { %v6369_v59 = vpop.f32.mrf.mxu0  ;;  %v6417_v60 = vpop.f32.mrf.mxu1  ;;  %v1558_v14 = vmax.f32 %v1510_v0, 0.0  ;;  %v1767_v15 = vmax.f32 %v1719_v1, 0.0  ;;  %6532 = vmatprep.subr.bf16.mxu0 %v7164_v46  ;;  %6580 = vmatprep.subr.bf16.mxu1 %v7164_v46  ;;  %v7848_v52 = vld [vmem:[%s8524_s2 + $0x3] ss:$0 sm:$0xff] }
 0x2af   :  { %v1513_v62 = vadd.f32 %v6369_v59, %v7779_v8  ;;  %v1722_v63 = vadd.f32 %v6417_v60, %v7779_v8  ;;  %6458 = vmatprep.mubr.bf16.mxu0 %v1574_v54  ;;  %6506 = vmatprep.mubr.bf16.mxu1 %v1783_v55  ;;  %v1556_v10 = vmax.f32 %v1502_v58, 0.0  ;;  %v1765_v11 = vmax.f32 %v1711_v61, 0.0 }
 0x2b0   :  { %v1504_v2 = vpop.f32.mrf.mxu0  ;;  %v1713_v3 = vpop.f32.mrf.mxu1  ;;  %6459 = vmatmul.mubr.bf16.gmra.mxu0 %v1575_v56  ;;  %6507 = vmatmul.mubr.bf16.gmra.mxu1 %v1784_v57 }
 0x2b1   :  { %v1505_v28 = vadd.f32 %v7779_v8, %v1504_v2  ;;  %v1714_v4 = vadd.f32 %v7779_v8, %v1713_v3  ;;  %v1559_v5 = vmax.f32 %v1513_v62, 0.0  ;;  %v1768_v6 = vmax.f32 %v1722_v63, 0.0  ;;  %6533 = vmatpush3.bf16.msra.mxu0 %v7164_v46  ;;  %6581 = vmatpush3.bf16.msra.mxu1 %v7164_v46 }
 0x2b2   :  { %v6372_v7 = vpop.f32.mrf.mxu0  ;;  %v6420_v9 = vpop.f32.mrf.mxu1 }
 0x2b3   :  { %v1557_v12 = vmax.f32 %v1505_v28, 0.0  ;;  %v1766_v13 = vmax.f32 %v1714_v4, 0.0  ;;  %v1577_v20 = vpack.c.bf16 %v1559_v5, %v1558_v14  ;;  %v1786_v21 = vpack.c.bf16 %v1768_v6, %v1767_v15 }
 0x2b4   :  { %v1517_v16 = vpop.f32.mrf.mxu0  ;;  %v1726_v17 = vpop.f32.mrf.mxu1  ;;  %v1526_v27 = vadd.f32 %v6372_v7, %v7779_v8  ;;  %v1735_v29 = vadd.f32 %v6420_v9, %v7779_v8 }
 0x2b5   :  { %v1576_v18 = vpack.c.bf16 %v1557_v12, %v1556_v10  ;;  %v1785_v19 = vpack.c.bf16 %v1766_v13, %v1765_v11  ;;  %v1518_v22 = vadd.f32 %v7779_v8, %v1517_v16  ;;  %v1727_v24 = vadd.f32 %v7779_v8, %v1726_v17 }
 0x2b6   :  { %v6373_v23 = vpop.f32.mrf.mxu0  ;;  %v6421_v49 = vpop.f32.mrf.mxu1  ;;  %v1562_v40 = vmax.f32 %v1526_v27, 0.0  ;;  %v1771_v41 = vmax.f32 %v1735_v29, 0.0 }
 0x2b7   :  { %v1529_v25 = vadd.f32 %v6373_v23, %v7779_v8  ;;  %v1738_v26 = vadd.f32 %v6421_v49, %v7779_v8  ;;  %6462 = vmatprep.mubr.bf16.mxu0 %v1576_v18  ;;  %6510 = vmatprep.mubr.bf16.mxu1 %v1785_v19  ;;  %v1560_v36 = vmax.f32 %v1518_v22, 0.0  ;;  %v1769_v37 = vmax.f32 %v1727_v24, 0.0 }
 0x2b8   :  { %v1520_v30 = vpop.f32.mrf.mxu0  ;;  %v1729_v31 = vpop.f32.mrf.mxu1  ;;  %6463 = vmatmul.mubr.bf16.gmra.mxu0 %v1577_v20  ;;  %6511 = vmatmul.mubr.bf16.gmra.mxu1 %v1786_v21  ;;  %v7166_v20 = vld [vmem:[#allocation2 + $0x170] sm:$0xff]  }
 0x2b9   :  { %v1521_v32 = vadd.f32 %v7779_v8, %v1520_v30  ;;  %v1730_v33 = vadd.f32 %v7779_v8, %v1729_v31  ;;  %v1563_v34 = vmax.f32 %v1529_v25, 0.0  ;;  %v1772_v35 = vmax.f32 %v1738_v26, 0.0  ;;  %v7165_v8 = vld [vmem:[#allocation2 + $0x178] sm:$0xff]  }
 0x2ba   :  { %6614 = vmatprep.subr.bf16.mxu0 %v7165_v8  ;;  %6662 = vmatprep.subr.bf16.mxu1 %v7165_v8 }
 0x2bb   :  { %v1561_v38 = vmax.f32 %v1521_v32, 0.0  ;;  %v1770_v39 = vmax.f32 %v1730_v33, 0.0  ;;  %v1579_v44 = vpack.c.bf16 %v1563_v34, %v1562_v40  ;;  %v1788_v45 = vpack.c.bf16 %v1772_v35, %v1771_v41  ;;  %v7167_v34 = vld [vmem:[#allocation2 + $0x168] sm:$0xff]  }
 0x2bd   :  { %v1578_v42 = vpack.c.bf16 %v1561_v38, %v1560_v36  ;;  %v1787_v43 = vpack.c.bf16 %v1770_v39, %v1769_v37 }
 0x2bf   :  { %6466 = vmatprep.mubr.bf16.mxu0 %v1578_v42  ;;  %6514 = vmatprep.mubr.bf16.mxu1 %v1787_v43 }
 0x2c0   :  { %6467 = vmatmul.mubr.bf16.gmra.mxu0 %v1579_v44  ;;  %6515 = vmatmul.mubr.bf16.gmra.mxu1 %v1788_v45 }
 0x348   :  { %v6440_v47 = vpop.f32.mrf.mxu0  ;;  %v6488_v48 = vpop.f32.mrf.mxu1 }
 0x349   :  { %v1905_v59 = vadd.f32 %v6440_v47, %v7848_v52  ;;  %v2114_v60 = vadd.f32 %v6488_v48, %v7848_v52 }
 0x34a   :  { %v1896_v50 = vpop.f32.mrf.mxu0  ;;  %v2105_v51 = vpop.f32.mrf.mxu1 }
 0x34b   :  { %v1897_v55 = vadd.f32 %v7848_v52, %v1896_v50  ;;  %v2106_v56 = vadd.f32 %v7848_v52, %v2105_v51  ;;  %v2025_v9 = vmax.f32 %v1905_v59, 0.0  ;;  %v2234_v10 = vmax.f32 %v2114_v60, 0.0  ;;  %v7168_v50 = vld [vmem:[#allocation2 + $0x160] sm:$0xff]  }
 0x34c   :  { %v6441_v53 = vpop.f32.mrf.mxu0  ;;  %v6489_v54 = vpop.f32.mrf.mxu1 }
 0x34d   :  { %v1908_v57 = vadd.f32 %v6441_v53, %v7848_v52  ;;  %v2117_v58 = vadd.f32 %v6489_v54, %v7848_v52  ;;  %v2023_v4 = vmax.f32 %v1897_v55, 0.0  ;;  %v2232_v5 = vmax.f32 %v2106_v56, 0.0 }
 0x34e   :  { %v1899_v61 = vpop.f32.mrf.mxu0  ;;  %v2108_v62 = vpop.f32.mrf.mxu1 }
 0x34f   :  { %v1900_v63 = vadd.f32 %v7848_v52, %v1899_v61  ;;  %v2109_v0 = vadd.f32 %v7848_v52, %v2108_v62  ;;  %v2026_v1 = vmax.f32 %v1908_v57, 0.0  ;;  %v2235_v2 = vmax.f32 %v2117_v58, 0.0 }
 0x350   :  { %v6444_v3 = vpop.f32.mrf.mxu0  ;;  %v6492_v28 = vpop.f32.mrf.mxu1 }
 0x351   :  { %v2024_v6 = vmax.f32 %v1900_v63, 0.0  ;;  %v2233_v7 = vmax.f32 %v2109_v0, 0.0  ;;  %v2056_v15 = vpack.c.bf16 %v2026_v1, %v2025_v9  ;;  %v2265_v16 = vpack.c.bf16 %v2235_v2, %v2234_v10  ;;  %v7169_v1 = vld [vmem:[#allocation2 + $0x158] sm:$0xff]  }
 0x352   :  { %v1912_v11 = vpop.f32.mrf.mxu0  ;;  %v2121_v12 = vpop.f32.mrf.mxu1  ;;  %v1921_v49 = vadd.f32 %v6444_v3, %v7848_v52  ;;  %v2130_v24 = vadd.f32 %v6492_v28, %v7848_v52 }
 0x353   :  { %v2055_v13 = vpack.c.bf16 %v2024_v6, %v2023_v4  ;;  %v2264_v14 = vpack.c.bf16 %v2233_v7, %v2232_v5  ;;  %v1913_v17 = vadd.f32 %v7848_v52, %v1912_v11  ;;  %v2122_v21 = vadd.f32 %v7848_v52, %v2121_v12 }
 0x354   :  { %v6445_v18 = vpop.f32.mrf.mxu0  ;;  %v6493_v19 = vpop.f32.mrf.mxu1  ;;  %v2029_v39 = vmax.f32 %v1921_v49, 0.0  ;;  %v2238_v40 = vmax.f32 %v2130_v24, 0.0 }
 0x355   :  { %v1924_v22 = vadd.f32 %v6445_v18, %v7848_v52  ;;  %v2133_v23 = vadd.f32 %v6493_v19, %v7848_v52  ;;  %6534 = vmatprep.mubr.bf16.mxu0 %v2055_v13  ;;  %6582 = vmatprep.mubr.bf16.mxu1 %v2264_v14  ;;  %v2027_v35 = vmax.f32 %v1913_v17, 0.0  ;;  %v2236_v36 = vmax.f32 %v2122_v21, 0.0  ;;  %v7170_v17 = vld [vmem:[#allocation2 + $0x150] sm:$0xff]  }
 0x356   :  { %v1915_v25 = vpop.f32.mrf.mxu0  ;;  %v2124_v26 = vpop.f32.mrf.mxu1  ;;  %6535 = vmatmul.mubr.bf16.vlgmr.msra.gmra.mxu0 %v2056_v15  ;;  %6583 = vmatmul.mubr.bf16.vlgmr.msra.gmra.mxu1 %v2265_v16 }
 0x357   :  { %v1916_v27 = vadd.f32 %v7848_v52, %v1915_v25  ;;  %v2125_v29 = vadd.f32 %v7848_v52, %v2124_v26  ;;  %6615 = vmatpush3.bf16.msra.mxu0 %v7165_v8  ;;  %6663 = vmatpush3.bf16.msra.mxu1 %v7165_v8  ;;  %v2030_v30 = vmax.f32 %v1924_v22, 0.0  ;;  %v2239_v31 = vmax.f32 %v2133_v23, 0.0 }
 0x358   :  { %v6448_v32 = vpop.f32.mrf.mxu0  ;;  %v6496_v33 = vpop.f32.mrf.mxu1  ;;  %6616 = vmatprep.subr.bf16.mxu0 %v7166_v20  ;;  %6664 = vmatprep.subr.bf16.mxu1 %v7166_v20 }
 0x359   :  { %v2028_v37 = vmax.f32 %v1916_v27, 0.0  ;;  %v2237_v38 = vmax.f32 %v2125_v29, 0.0  ;;  %v2058_v45 = vpack.c.bf16 %v2030_v30, %v2029_v39  ;;  %v2267_v46 = vpack.c.bf16 %v2239_v31, %v2238_v40  ;;  %v7171_v31 = vld [vmem:[#allocation2 + $0x148] sm:$0xff]  }
 0x35a   :  { %v1928_v41 = vpop.f32.mrf.mxu0  ;;  %v2137_v42 = vpop.f32.mrf.mxu1  ;;  %v1937_v55 = vadd.f32 %v6448_v32, %v7848_v52  ;;  %v2146_v56 = vadd.f32 %v6496_v33, %v7848_v52 }
 0x35b   :  { %v2057_v43 = vpack.c.bf16 %v2028_v37, %v2027_v35  ;;  %v2266_v44 = vpack.c.bf16 %v2237_v38, %v2236_v36  ;;  %6617 = vmatpush3.bf16.msra.mxu0 %v7166_v20  ;;  %v1929_v8 = vadd.f32 %v7848_v52, %v1928_v41  ;;  %6665 = vmatpush3.bf16.msra.mxu1 %v7166_v20 }
 0x35c   :  { %v6449_v47 = vpop.f32.mrf.mxu0  ;;  %v6497_v48 = vpop.f32.mrf.mxu1  ;;  %6618 = vmatprep.subr.bf16.mxu0 %v7167_v34  ;;  %v2138_v51 = vadd.f32 %v7848_v52, %v2137_v42  ;;  %6666 = vmatprep.subr.bf16.mxu1 %v7167_v34  ;;  %v2033_v5 = vmax.f32 %v1937_v55, 0.0  ;;  %v2242_v6 = vmax.f32 %v2146_v56, 0.0 }
 0x35d   :  { %v1940_v53 = vadd.f32 %v6449_v47, %v7848_v52  ;;  %v2149_v54 = vadd.f32 %v6497_v48, %v7848_v52  ;;  %6538 = vmatprep.mubr.bf16.mxu0 %v2057_v43  ;;  %6586 = vmatprep.mubr.bf16.mxu1 %v2266_v44  ;;  %v2031_v2 = vmax.f32 %v1929_v8, 0.0 }
 0x35e   :  { %v1931_v57 = vpop.f32.mrf.mxu0  ;;  %v2140_v58 = vpop.f32.mrf.mxu1  ;;  %6539 = vmatmul.mubr.bf16.gmra.mxu0 %v2058_v45  ;;  %6587 = vmatmul.mubr.bf16.gmra.mxu1 %v2267_v46  ;;  %v2240_v3 = vmax.f32 %v2138_v51, 0.0 }
 0x35f   :  { %v1932_v59 = vadd.f32 %v7848_v52, %v1931_v57  ;;  %v2141_v60 = vadd.f32 %v7848_v52, %v2140_v58  ;;  %6619 = vmatpush3.bf16.msra.mxu0 %v7167_v34  ;;  %v2034_v61 = vmax.f32 %v1940_v53, 0.0  ;;  %v2243_v62 = vmax.f32 %v2149_v54, 0.0  ;;  %6667 = vmatpush3.bf16.msra.mxu1 %v7167_v34 }
 0x360   :  { %v6452_v63 = vpop.f32.mrf.mxu0  ;;  %v6500_v0 = vpop.f32.mrf.mxu1  ;;  %6620 = vmatprep.subr.bf16.mxu0 %v7168_v50  ;;  %6668 = vmatprep.subr.bf16.mxu1 %v7168_v50 }
 0x361   :  { %v2032_v28 = vmax.f32 %v1932_v59, 0.0  ;;  %v2241_v4 = vmax.f32 %v2141_v60, 0.0  ;;  %v2060_v12 = vpack.c.bf16 %v2034_v61, %v2033_v5  ;;  %v2269_v13 = vpack.c.bf16 %v2243_v62, %v2242_v6 }
 0x362   :  { %v1944_v7 = vpop.f32.mrf.mxu0  ;;  %v2153_v9 = vpop.f32.mrf.mxu1  ;;  %v1953_v21 = vadd.f32 %v6452_v63, %v7848_v52  ;;  %v2162_v22 = vadd.f32 %v6500_v0, %v7848_v52 }
 0x363   :  { %v2059_v10 = vpack.c.bf16 %v2032_v28, %v2031_v2  ;;  %v2268_v11 = vpack.c.bf16 %v2241_v4, %v2240_v3  ;;  %6621 = vmatpush3.bf16.msra.mxu0 %v7168_v50  ;;  %v1945_v14 = vadd.f32 %v7848_v52, %v1944_v7  ;;  %6669 = vmatpush3.bf16.msra.mxu1 %v7168_v50 }
 0x364   :  { %v6453_v15 = vpop.f32.mrf.mxu0  ;;  %v6501_v16 = vpop.f32.mrf.mxu1  ;;  %6622 = vmatprep.subr.bf16.mxu0 %v7169_v1  ;;  %v2154_v18 = vadd.f32 %v7848_v52, %v2153_v9  ;;  %6670 = vmatprep.subr.bf16.mxu1 %v7169_v1  ;;  %v2037_v36 = vmax.f32 %v1953_v21, 0.0  ;;  %v2246_v37 = vmax.f32 %v2162_v22, 0.0 }
 0x365   :  { %v1956_v19 = vadd.f32 %v6453_v15, %v7848_v52  ;;  %v2165_v20 = vadd.f32 %v6501_v16, %v7848_v52  ;;  %6542 = vmatprep.mubr.bf16.mxu0 %v2059_v10  ;;  %6590 = vmatprep.mubr.bf16.mxu1 %v2268_v11  ;;  %v2035_v32 = vmax.f32 %v1945_v14, 0.0 }
 0x366   :  { %v1947_v23 = vpop.f32.mrf.mxu0  ;;  %v2156_v49 = vpop.f32.mrf.mxu1  ;;  %6543 = vmatmul.mubr.bf16.gmra.mxu0 %v2060_v12  ;;  %6591 = vmatmul.mubr.bf16.gmra.mxu1 %v2269_v13  ;;  %v2244_v33 = vmax.f32 %v2154_v18, 0.0 }
 0x367   :  { %v1948_v24 = vadd.f32 %v7848_v52, %v1947_v23  ;;  %v2157_v25 = vadd.f32 %v7848_v52, %v2156_v49  ;;  %6623 = vmatpush3.bf16.msra.mxu0 %v7169_v1  ;;  %v2038_v26 = vmax.f32 %v1956_v19, 0.0  ;;  %v2247_v27 = vmax.f32 %v2165_v20, 0.0  ;;  %6671 = vmatpush3.bf16.msra.mxu1 %v7169_v1 }
 0x368   :  { %v6456_v29 = vpop.f32.mrf.mxu0  ;;  %v6504_v30 = vpop.f32.mrf.mxu1  ;;  %6624 = vmatprep.subr.bf16.mxu0 %v7170_v17  ;;  %6672 = vmatprep.subr.bf16.mxu1 %v7170_v17 }
 0x369   :  { %v2036_v34 = vmax.f32 %v1948_v24, 0.0  ;;  %v2245_v35 = vmax.f32 %v2157_v25, 0.0  ;;  %v2062_v42 = vpack.c.bf16 %v2038_v26, %v2037_v36  ;;  %v2271_v43 = vpack.c.bf16 %v2247_v27, %v2246_v37 }
 0x36a   :  { %v1960_v38 = vpop.f32.mrf.mxu0  ;;  %v2169_v39 = vpop.f32.mrf.mxu1  ;;  %v1969_v50 = vadd.f32 %v6456_v29, %v7848_v52  ;;  %v2178_v51 = vadd.f32 %v6504_v30, %v7848_v52 }
 0x36b   :  { %v2061_v40 = vpack.c.bf16 %v2036_v34, %v2035_v32  ;;  %v2270_v41 = vpack.c.bf16 %v2245_v35, %v2244_v33  ;;  %6625 = vmatpush3.bf16.msra.mxu0 %v7170_v17  ;;  %v1961_v44 = vadd.f32 %v7848_v52, %v1960_v38  ;;  %6673 = vmatpush3.bf16.msra.mxu1 %v7170_v17 }
 0x36c   :  { %v6457_v45 = vpop.f32.mrf.mxu0  ;;  %v6505_v46 = vpop.f32.mrf.mxu1  ;;  %6626 = vmatprep.subr.bf16.mxu0 %v7171_v31  ;;  %v2170_v8 = vadd.f32 %v7848_v52, %v2169_v39  ;;  %6674 = vmatprep.subr.bf16.mxu1 %v7171_v31  ;;  %v2041_v1 = vmax.f32 %v1969_v50, 0.0  ;;  %v2250_v2 = vmax.f32 %v2178_v51, 0.0 }
 0x36d   :  { %v1972_v47 = vadd.f32 %v6457_v45, %v7848_v52  ;;  %v2181_v48 = vadd.f32 %v6505_v46, %v7848_v52  ;;  %6546 = vmatprep.mubr.bf16.mxu0 %v2061_v40  ;;  %6594 = vmatprep.mubr.bf16.mxu1 %v2270_v41  ;;  %v2039_v61 = vmax.f32 %v1961_v44, 0.0 }
 0x36e   :  { %v1963_v53 = vpop.f32.mrf.mxu0  ;;  %v2172_v54 = vpop.f32.mrf.mxu1  ;;  %6547 = vmatmul.mubr.bf16.gmra.mxu0 %v2062_v42  ;;  %6595 = vmatmul.mubr.bf16.gmra.mxu1 %v2271_v43  ;;  %v2248_v62 = vmax.f32 %v2170_v8, 0.0 }
 0x36f   :  { %v1964_v55 = vadd.f32 %v7848_v52, %v1963_v53  ;;  %v2173_v56 = vadd.f32 %v7848_v52, %v2172_v54  ;;  %6627 = vmatpush3.bf16.msra.mxu0 %v7171_v31  ;;  %v2042_v57 = vmax.f32 %v1972_v47, 0.0  ;;  %v2251_v58 = vmax.f32 %v2181_v48, 0.0  ;;  %6675 = vmatpush3.bf16.msra.mxu1 %v7171_v31 }
 0x370   :  { %v6460_v59 = vpop.f32.mrf.mxu0  ;;  %v6508_v60 = vpop.f32.mrf.mxu1 }
 0x371   :  { %v2040_v63 = vmax.f32 %v1964_v55, 0.0  ;;  %v2249_v0 = vmax.f32 %v2173_v56, 0.0  ;;  %v2064_v6 = vpack.c.bf16 %v2042_v57, %v2041_v1  ;;  %v2273_v7 = vpack.c.bf16 %v2251_v58, %v2250_v2 }
 0x372   :  { %v1976_v3 = vpop.f32.mrf.mxu0  ;;  %v2185_v28 = vpop.f32.mrf.mxu1  ;;  %v1985_v15 = vadd.f32 %v6460_v59, %v7848_v52  ;;  %v2194_v16 = vadd.f32 %v6508_v60, %v7848_v52 }
 0x373   :  { %v2063_v4 = vpack.c.bf16 %v2040_v63, %v2039_v61  ;;  %v2272_v5 = vpack.c.bf16 %v2249_v0, %v2248_v62  ;;  %v1977_v9 = vadd.f32 %v7848_v52, %v1976_v3  ;;  %v2186_v12 = vadd.f32 %v7848_v52, %v2185_v28 }
 0x374   :  { %v6461_v10 = vpop.f32.mrf.mxu0  ;;  %v6509_v11 = vpop.f32.mrf.mxu1  ;;  %v2045_v29 = vmax.f32 %v1985_v15, 0.0  ;;  %v2254_v30 = vmax.f32 %v2194_v16, 0.0 }
 0x375   :  { %v1988_v13 = vadd.f32 %v6461_v10, %v7848_v52  ;;  %v2197_v14 = vadd.f32 %v6509_v11, %v7848_v52  ;;  %6550 = vmatprep.mubr.bf16.mxu0 %v2063_v4  ;;  %6598 = vmatprep.mubr.bf16.mxu1 %v2272_v5  ;;  %v2043_v24 = vmax.f32 %v1977_v9, 0.0  ;;  %v2252_v25 = vmax.f32 %v2186_v12, 0.0 }
 0x376   :  { %v1979_v17 = vpop.f32.mrf.mxu0  ;;  %v2188_v18 = vpop.f32.mrf.mxu1  ;;  %6551 = vmatmul.mubr.bf16.gmra.mxu0 %v2064_v6  ;;  %6599 = vmatmul.mubr.bf16.gmra.mxu1 %v2273_v7 }
 0x377   :  { %v1980_v19 = vadd.f32 %v7848_v52, %v1979_v17  ;;  %v2189_v20 = vadd.f32 %v7848_v52, %v2188_v18  ;;  %v2046_v21 = vmax.f32 %v1988_v13, 0.0  ;;  %v2255_v22 = vmax.f32 %v2197_v14, 0.0 }
 0x378   :  { %v6464_v23 = vpop.f32.mrf.mxu0  ;;  %v6512_v49 = vpop.f32.mrf.mxu1 }
 0x379   :  { %v2044_v26 = vmax.f32 %v1980_v19, 0.0  ;;  %v2253_v27 = vmax.f32 %v2189_v20, 0.0  ;;  %v2066_v35 = vpack.c.bf16 %v2046_v21, %v2045_v29  ;;  %v2275_v36 = vpack.c.bf16 %v2255_v22, %v2254_v30 }
 0x37a   :  { %v1992_v31 = vpop.f32.mrf.mxu0  ;;  %v2201_v32 = vpop.f32.mrf.mxu1  ;;  %v2001_v43 = vadd.f32 %v6464_v23, %v7848_v52  ;;  %v2210_v44 = vadd.f32 %v6512_v49, %v7848_v52 }
 0x37b   :  { %v2065_v33 = vpack.c.bf16 %v2044_v26, %v2043_v24  ;;  %v2274_v34 = vpack.c.bf16 %v2253_v27, %v2252_v25  ;;  %v1993_v37 = vadd.f32 %v7848_v52, %v1992_v31  ;;  %v2202_v40 = vadd.f32 %v7848_v52, %v2201_v32  ;;  %v7172_v25 = vld [vmem:[#allocation2 + $0x140] sm:$0xff]  }
 0x37c   :  { %v6465_v38 = vpop.f32.mrf.mxu0  ;;  %v6513_v39 = vpop.f32.mrf.mxu1  ;;  %v2049_v58 = vmax.f32 %v2001_v43, 0.0  ;;  %v2258_v59 = vmax.f32 %v2210_v44, 0.0  ;;  %6628 = vmatprep.subr.bf16.mxu0 %v7172_v25  ;;  %6676 = vmatprep.subr.bf16.mxu1 %v7172_v25  ;;  %v7917_v31 = vld [vmem:[%s8524_s2 + $0x4] ss:$0 sm:$0xff] }
 0x37d   :  { %v2004_v41 = vadd.f32 %v6465_v38, %v7848_v52  ;;  %v2213_v42 = vadd.f32 %v6513_v39, %v7848_v52  ;;  %6554 = vmatprep.mubr.bf16.mxu0 %v2065_v33  ;;  %6602 = vmatprep.mubr.bf16.mxu1 %v2274_v34  ;;  %v2047_v54 = vmax.f32 %v1993_v37, 0.0  ;;  %v2256_v55 = vmax.f32 %v2202_v40, 0.0 }
 0x37e   :  { %v1995_v45 = vpop.f32.mrf.mxu0  ;;  %v2204_v46 = vpop.f32.mrf.mxu1  ;;  %6555 = vmatmul.mubr.bf16.gmra.mxu0 %v2066_v35  ;;  %6603 = vmatmul.mubr.bf16.gmra.mxu1 %v2275_v36 }
 0x37f   :  { %v1996_v8 = vadd.f32 %v7848_v52, %v1995_v45  ;;  %v2205_v47 = vadd.f32 %v7848_v52, %v2204_v46  ;;  %v2050_v48 = vmax.f32 %v2004_v41, 0.0  ;;  %v2259_v50 = vmax.f32 %v2213_v42, 0.0  ;;  %6629 = vmatpush3.bf16.msra.mxu0 %v7172_v25  ;;  %6677 = vmatpush3.bf16.msra.mxu1 %v7172_v25 }
 0x380   :  { %v6468_v51 = vpop.f32.mrf.mxu0  ;;  %v6516_v53 = vpop.f32.mrf.mxu1 }
 0x381   :  { %v2048_v56 = vmax.f32 %v1996_v8, 0.0  ;;  %v2257_v57 = vmax.f32 %v2205_v47, 0.0  ;;  %v2068_v0 = vpack.c.bf16 %v2050_v48, %v2049_v58  ;;  %v2277_v1 = vpack.c.bf16 %v2259_v50, %v2258_v59 }
 0x382   :  { %v2008_v60 = vpop.f32.mrf.mxu0  ;;  %v2217_v61 = vpop.f32.mrf.mxu1  ;;  %v2017_v7 = vadd.f32 %v6468_v51, %v7848_v52  ;;  %v2226_v9 = vadd.f32 %v6516_v53, %v7848_v52 }
 0x383   :  { %v2067_v62 = vpack.c.bf16 %v2048_v56, %v2047_v54  ;;  %v2276_v63 = vpack.c.bf16 %v2257_v57, %v2256_v55  ;;  %v2009_v2 = vadd.f32 %v7848_v52, %v2008_v60  ;;  %v2218_v4 = vadd.f32 %v7848_v52, %v2217_v61 }
 0x384   :  { %v6469_v3 = vpop.f32.mrf.mxu0  ;;  %v6517_v28 = vpop.f32.mrf.mxu1  ;;  %v2053_v20 = vmax.f32 %v2017_v7, 0.0  ;;  %v2262_v21 = vmax.f32 %v2226_v9, 0.0 }
 0x385   :  { %v2020_v5 = vadd.f32 %v6469_v3, %v7848_v52  ;;  %v2229_v6 = vadd.f32 %v6517_v28, %v7848_v52  ;;  %6558 = vmatprep.mubr.bf16.mxu0 %v2067_v62  ;;  %6606 = vmatprep.mubr.bf16.mxu1 %v2276_v63  ;;  %v2051_v16 = vmax.f32 %v2009_v2, 0.0  ;;  %v2260_v17 = vmax.f32 %v2218_v4, 0.0 }
 0x386   :  { %v2011_v10 = vpop.f32.mrf.mxu0  ;;  %v2220_v11 = vpop.f32.mrf.mxu1  ;;  %6559 = vmatmul.mubr.bf16.gmra.mxu0 %v2068_v0  ;;  %6607 = vmatmul.mubr.bf16.gmra.mxu1 %v2277_v1  ;;  %v7174_v0 = vld [vmem:[#allocation2 + $0x1b0] sm:$0xff]  }
 0x387   :  { %v2012_v12 = vadd.f32 %v7848_v52, %v2011_v10  ;;  %v2221_v13 = vadd.f32 %v7848_v52, %v2220_v11  ;;  %v2054_v14 = vmax.f32 %v2020_v5, 0.0  ;;  %v2263_v15 = vmax.f32 %v2229_v6, 0.0  ;;  %v7173_v52 = vld [vmem:[#allocation2 + $0x1b8] sm:$0xff]  }
 0x388   :  { %6710 = vmatprep.subr.bf16.mxu0 %v7173_v52  ;;  %6758 = vmatprep.subr.bf16.mxu1 %v7173_v52 }
 0x389   :  { %v2052_v18 = vmax.f32 %v2012_v12, 0.0  ;;  %v2261_v19 = vmax.f32 %v2221_v13, 0.0  ;;  %v2070_v49 = vpack.c.bf16 %v2054_v14, %v2053_v20  ;;  %v2279_v24 = vpack.c.bf16 %v2263_v15, %v2262_v21  ;;  %v7175_v14 = vld [vmem:[#allocation2 + $0x1a8] sm:$0xff]  }
 0x38b   :  { %v2069_v22 = vpack.c.bf16 %v2052_v18, %v2051_v16  ;;  %v2278_v23 = vpack.c.bf16 %v2261_v19, %v2260_v17 }
 0x38d   :  { %6562 = vmatprep.mubr.bf16.mxu0 %v2069_v22  ;;  %6610 = vmatprep.mubr.bf16.mxu1 %v2278_v23 }
 0x38e   :  { %6563 = vmatmul.mubr.bf16.gmra.mxu0 %v2070_v49  ;;  %6611 = vmatmul.mubr.bf16.gmra.mxu1 %v2279_v24 }
 0x416   :  { %v6536_v26 = vpop.f32.mrf.mxu0  ;;  %v6584_v27 = vpop.f32.mrf.mxu1 }
 0x417   :  { %v2396_v38 = vadd.f32 %v6536_v26, %v7917_v31  ;;  %v2605_v39 = vadd.f32 %v6584_v27, %v7917_v31 }
 0x418   :  { %v2387_v29 = vpop.f32.mrf.mxu0  ;;  %v2596_v30 = vpop.f32.mrf.mxu1 }
 0x419   :  { %v2388_v34 = vadd.f32 %v7917_v31, %v2387_v29  ;;  %v2597_v35 = vadd.f32 %v7917_v31, %v2596_v30  ;;  %v2516_v53 = vmax.f32 %v2396_v38, 0.0  ;;  %v2725_v54 = vmax.f32 %v2605_v39, 0.0  ;;  %v7176_v29 = vld [vmem:[#allocation2 + $0x1a0] sm:$0xff]  }
 0x41a   :  { %v6537_v32 = vpop.f32.mrf.mxu0  ;;  %v6585_v33 = vpop.f32.mrf.mxu1 }
 0x41b   :  { %v2399_v36 = vadd.f32 %v6537_v32, %v7917_v31  ;;  %v2608_v37 = vadd.f32 %v6585_v33, %v7917_v31  ;;  %v2514_v47 = vmax.f32 %v2388_v34, 0.0  ;;  %v2723_v48 = vmax.f32 %v2597_v35, 0.0 }
 0x41c   :  { %v2390_v40 = vpop.f32.mrf.mxu0  ;;  %v2599_v41 = vpop.f32.mrf.mxu1 }
 0x41d   :  { %v2391_v42 = vadd.f32 %v7917_v31, %v2390_v40  ;;  %v2600_v43 = vadd.f32 %v7917_v31, %v2599_v41  ;;  %v2517_v44 = vmax.f32 %v2399_v36, 0.0  ;;  %v2726_v45 = vmax.f32 %v2608_v37, 0.0 }
 0x41e   :  { %v6540_v46 = vpop.f32.mrf.mxu0  ;;  %v6588_v8 = vpop.f32.mrf.mxu1 }
 0x41f   :  { %v2515_v50 = vmax.f32 %v2391_v42, 0.0  ;;  %v2724_v51 = vmax.f32 %v2600_v43, 0.0  ;;  %v2547_v59 = vpack.c.bf16 %v2517_v44, %v2516_v53  ;;  %v2756_v60 = vpack.c.bf16 %v2726_v45, %v2725_v54  ;;  %v7177_v44 = vld [vmem:[#allocation2 + $0x198] sm:$0xff]  }
 0x420   :  { %v2403_v55 = vpop.f32.mrf.mxu0  ;;  %v2612_v56 = vpop.f32.mrf.mxu1  ;;  %v2412_v28 = vadd.f32 %v6540_v46, %v7917_v31  ;;  %v2621_v4 = vadd.f32 %v6588_v8, %v7917_v31 }
 0x421   :  { %v2546_v57 = vpack.c.bf16 %v2515_v50, %v2514_v47  ;;  %v2755_v58 = vpack.c.bf16 %v2724_v51, %v2723_v48  ;;  %v2404_v61 = vadd.f32 %v7917_v31, %v2403_v55  ;;  %v2613_v1 = vadd.f32 %v7917_v31, %v2612_v56 }
 0x422   :  { %v6541_v62 = vpop.f32.mrf.mxu0  ;;  %v6589_v63 = vpop.f32.mrf.mxu1  ;;  %v2520_v19 = vmax.f32 %v2412_v28, 0.0  ;;  %v2729_v20 = vmax.f32 %v2621_v4, 0.0 }
 0x423   :  { %v2415_v2 = vadd.f32 %v6541_v62, %v7917_v31  ;;  %v2624_v3 = vadd.f32 %v6589_v63, %v7917_v31  ;;  %6630 = vmatprep.mubr.bf16.mxu0 %v2546_v57  ;;  %6678 = vmatprep.mubr.bf16.mxu1 %v2755_v58  ;;  %v2518_v15 = vmax.f32 %v2404_v61, 0.0  ;;  %v2727_v16 = vmax.f32 %v2613_v1, 0.0  ;;  %v7178_v61 = vld [vmem:[#allocation2 + $0x190] sm:$0xff]  }
 0x424   :  { %v2406_v5 = vpop.f32.mrf.mxu0  ;;  %v2615_v6 = vpop.f32.mrf.mxu1  ;;  %6631 = vmatmul.mubr.bf16.vlgmr.msra.gmra.mxu0 %v2547_v59  ;;  %6679 = vmatmul.mubr.bf16.vlgmr.msra.gmra.mxu1 %v2756_v60 }
 0x425   :  { %v2407_v7 = vadd.f32 %v7917_v31, %v2406_v5  ;;  %v2616_v9 = vadd.f32 %v7917_v31, %v2615_v6  ;;  %6711 = vmatpush3.bf16.msra.mxu0 %v7173_v52  ;;  %6759 = vmatpush3.bf16.msra.mxu1 %v7173_v52  ;;  %v2521_v10 = vmax.f32 %v2415_v2, 0.0  ;;  %v2730_v11 = vmax.f32 %v2624_v3, 0.0 }
 0x426   :  { %v6544_v12 = vpop.f32.mrf.mxu0  ;;  %v6592_v13 = vpop.f32.mrf.mxu1  ;;  %6712 = vmatprep.subr.bf16.mxu0 %v7174_v0  ;;  %6760 = vmatprep.subr.bf16.mxu1 %v7174_v0 }
 0x427   :  { %v2519_v17 = vmax.f32 %v2407_v7, 0.0  ;;  %v2728_v18 = vmax.f32 %v2616_v9, 0.0  ;;  %v2549_v24 = vpack.c.bf16 %v2521_v10, %v2520_v19  ;;  %v2758_v25 = vpack.c.bf16 %v2730_v11, %v2729_v20  ;;  %v7179_v11 = vld [vmem:[#allocation2 + $0x188] sm:$0xff]  }
 0x428   :  { %v2419_v21 = vpop.f32.mrf.mxu0  ;;  %v2628_v22 = vpop.f32.mrf.mxu1  ;;  %v2428_v34 = vadd.f32 %v6544_v12, %v7917_v31  ;;  %v2637_v35 = vadd.f32 %v6592_v13, %v7917_v31 }
 0x429   :  { %v2548_v23 = vpack.c.bf16 %v2519_v17, %v2518_v15  ;;  %v2757_v49 = vpack.c.bf16 %v2728_v18, %v2727_v16  ;;  %6713 = vmatpush3.bf16.msra.mxu0 %v7174_v0  ;;  %v2420_v52 = vadd.f32 %v7917_v31, %v2419_v21  ;;  %6761 = vmatpush3.bf16.msra.mxu1 %v7174_v0 }
 0x42a   :  { %v6545_v26 = vpop.f32.mrf.mxu0  ;;  %v6593_v27 = vpop.f32.mrf.mxu1  ;;  %6714 = vmatprep.subr.bf16.mxu0 %v7175_v14  ;;  %v2629_v30 = vadd.f32 %v7917_v31, %v2628_v22  ;;  %6762 = vmatprep.subr.bf16.mxu1 %v7175_v14  ;;  %v2524_v48 = vmax.f32 %v2428_v34, 0.0  ;;  %v2733_v50 = vmax.f32 %v2637_v35, 0.0 }
 0x42b   :  { %v2431_v32 = vadd.f32 %v6545_v26, %v7917_v31  ;;  %v2640_v33 = vadd.f32 %v6593_v27, %v7917_v31  ;;  %6634 = vmatprep.mubr.bf16.mxu0 %v2548_v23  ;;  %6682 = vmatprep.mubr.bf16.mxu1 %v2757_v49  ;;  %v2522_v45 = vmax.f32 %v2420_v52, 0.0 }
 0x42c   :  { %v2422_v36 = vpop.f32.mrf.mxu0  ;;  %v2631_v37 = vpop.f32.mrf.mxu1  ;;  %6635 = vmatmul.mubr.bf16.gmra.mxu0 %v2549_v24  ;;  %6683 = vmatmul.mubr.bf16.gmra.mxu1 %v2758_v25  ;;  %v2731_v46 = vmax.f32 %v2629_v30, 0.0 }
 0x42d   :  { %v2423_v38 = vadd.f32 %v7917_v31, %v2422_v36  ;;  %v2632_v39 = vadd.f32 %v7917_v31, %v2631_v37  ;;  %6715 = vmatpush3.bf16.msra.mxu0 %v7175_v14  ;;  %v2525_v40 = vmax.f32 %v2431_v32, 0.0  ;;  %v2734_v41 = vmax.f32 %v2640_v33, 0.0  ;;  %6763 = vmatpush3.bf16.msra.mxu1 %v7175_v14 }
 0x42e   :  { %v6548_v42 = vpop.f32.mrf.mxu0  ;;  %v6596_v43 = vpop.f32.mrf.mxu1  ;;  %6716 = vmatprep.subr.bf16.mxu0 %v7176_v29  ;;  %6764 = vmatprep.subr.bf16.mxu1 %v7176_v29 }
 0x42f   :  { %v2523_v8 = vmax.f32 %v2423_v38, 0.0  ;;  %v2732_v47 = vmax.f32 %v2632_v39, 0.0  ;;  %v2551_v56 = vpack.c.bf16 %v2525_v40, %v2524_v48  ;;  %v2760_v57 = vpack.c.bf16 %v2734_v41, %v2733_v50 }
 0x430   :  { %v2435_v51 = vpop.f32.mrf.mxu0  ;;  %v2644_v53 = vpop.f32.mrf.mxu1  ;;  %v2444_v1 = vadd.f32 %v6548_v42, %v7917_v31  ;;  %v2653_v2 = vadd.f32 %v6596_v43, %v7917_v31 }
 0x431   :  { %v2550_v54 = vpack.c.bf16 %v2523_v8, %v2522_v45  ;;  %v2759_v55 = vpack.c.bf16 %v2732_v47, %v2731_v46  ;;  %6717 = vmatpush3.bf16.msra.mxu0 %v7176_v29  ;;  %v2436_v58 = vadd.f32 %v7917_v31, %v2435_v51  ;;  %6765 = vmatpush3.bf16.msra.mxu1 %v7176_v29 }
 0x432   :  { %v6549_v59 = vpop.f32.mrf.mxu0  ;;  %v6597_v60 = vpop.f32.mrf.mxu1  ;;  %6718 = vmatprep.subr.bf16.mxu0 %v7177_v44  ;;  %v2645_v62 = vadd.f32 %v7917_v31, %v2644_v53  ;;  %6766 = vmatprep.subr.bf16.mxu1 %v7177_v44  ;;  %v2528_v16 = vmax.f32 %v2444_v1, 0.0  ;;  %v2737_v17 = vmax.f32 %v2653_v2, 0.0 }
 0x433   :  { %v2447_v63 = vadd.f32 %v6549_v59, %v7917_v31  ;;  %v2656_v0 = vadd.f32 %v6597_v60, %v7917_v31  ;;  %6638 = vmatprep.mubr.bf16.mxu0 %v2550_v54  ;;  %6686 = vmatprep.mubr.bf16.mxu1 %v2759_v55  ;;  %v2526_v12 = vmax.f32 %v2436_v58, 0.0 }
 0x434   :  { %v2438_v3 = vpop.f32.mrf.mxu0  ;;  %v2647_v28 = vpop.f32.mrf.mxu1  ;;  %6639 = vmatmul.mubr.bf16.gmra.mxu0 %v2551_v56  ;;  %6687 = vmatmul.mubr.bf16.gmra.mxu1 %v2760_v57  ;;  %v2735_v13 = vmax.f32 %v2645_v62, 0.0 }
 0x435   :  { %v2439_v4 = vadd.f32 %v7917_v31, %v2438_v3  ;;  %v2648_v5 = vadd.f32 %v7917_v31, %v2647_v28  ;;  %6719 = vmatpush3.bf16.msra.mxu0 %v7177_v44  ;;  %v2529_v6 = vmax.f32 %v2447_v63, 0.0  ;;  %v2738_v7 = vmax.f32 %v2656_v0, 0.0  ;;  %6767 = vmatpush3.bf16.msra.mxu1 %v7177_v44 }
 0x436   :  { %v6552_v9 = vpop.f32.mrf.mxu0  ;;  %v6600_v10 = vpop.f32.mrf.mxu1  ;;  %6720 = vmatprep.subr.bf16.mxu0 %v7178_v61  ;;  %6768 = vmatprep.subr.bf16.mxu1 %v7178_v61 }
 0x437   :  { %v2527_v14 = vmax.f32 %v2439_v4, 0.0  ;;  %v2736_v15 = vmax.f32 %v2648_v5, 0.0  ;;  %v2553_v22 = vpack.c.bf16 %v2529_v6, %v2528_v16  ;;  %v2762_v23 = vpack.c.bf16 %v2738_v7, %v2737_v17 }
 0x438   :  { %v2451_v18 = vpop.f32.mrf.mxu0  ;;  %v2660_v19 = vpop.f32.mrf.mxu1  ;;  %v2460_v29 = vadd.f32 %v6552_v9, %v7917_v31  ;;  %v2669_v30 = vadd.f32 %v6600_v10, %v7917_v31 }
 0x439   :  { %v2552_v20 = vpack.c.bf16 %v2527_v14, %v2526_v12  ;;  %v2761_v21 = vpack.c.bf16 %v2736_v15, %v2735_v13  ;;  %6721 = vmatpush3.bf16.msra.mxu0 %v7178_v61  ;;  %v2452_v49 = vadd.f32 %v7917_v31, %v2451_v18  ;;  %6769 = vmatpush3.bf16.msra.mxu1 %v7178_v61 }
 0x43a   :  { %v6553_v24 = vpop.f32.mrf.mxu0  ;;  %v6601_v25 = vpop.f32.mrf.mxu1  ;;  %6722 = vmatprep.subr.bf16.mxu0 %v7179_v11  ;;  %v2661_v52 = vadd.f32 %v7917_v31, %v2660_v19  ;;  %6770 = vmatprep.subr.bf16.mxu1 %v7179_v11  ;;  %v2532_v44 = vmax.f32 %v2460_v29, 0.0  ;;  %v2741_v45 = vmax.f32 %v2669_v30, 0.0 }
 0x43b   :  { %v2463_v26 = vadd.f32 %v6553_v24, %v7917_v31  ;;  %v2672_v27 = vadd.f32 %v6601_v25, %v7917_v31  ;;  %6642 = vmatprep.mubr.bf16.mxu0 %v2552_v20  ;;  %6690 = vmatprep.mubr.bf16.mxu1 %v2761_v21  ;;  %v2530_v40 = vmax.f32 %v2452_v49, 0.0 }
 0x43c   :  { %v2454_v32 = vpop.f32.mrf.mxu0  ;;  %v2663_v33 = vpop.f32.mrf.mxu1  ;;  %6643 = vmatmul.mubr.bf16.gmra.mxu0 %v2553_v22  ;;  %6691 = vmatmul.mubr.bf16.gmra.mxu1 %v2762_v23  ;;  %v2739_v41 = vmax.f32 %v2661_v52, 0.0 }
 0x43d   :  { %v2455_v34 = vadd.f32 %v7917_v31, %v2454_v32  ;;  %v2664_v35 = vadd.f32 %v7917_v31, %v2663_v33  ;;  %6723 = vmatpush3.bf16.msra.mxu0 %v7179_v11  ;;  %v2533_v36 = vmax.f32 %v2463_v26, 0.0  ;;  %v2742_v37 = vmax.f32 %v2672_v27, 0.0  ;;  %6771 = vmatpush3.bf16.msra.mxu1 %v7179_v11 }
 0x43e   :  { %v6556_v38 = vpop.f32.mrf.mxu0  ;;  %v6604_v39 = vpop.f32.mrf.mxu1 }
 0x43f   :  { %v2531_v42 = vmax.f32 %v2455_v34, 0.0  ;;  %v2740_v43 = vmax.f32 %v2664_v35, 0.0  ;;  %v2555_v50 = vpack.c.bf16 %v2533_v36, %v2532_v44  ;;  %v2764_v51 = vpack.c.bf16 %v2742_v37, %v2741_v45 }
 0x440   :  { %v2467_v46 = vpop.f32.mrf.mxu0  ;;  %v2676_v8 = vpop.f32.mrf.mxu1  ;;  %v2476_v59 = vadd.f32 %v6556_v38, %v7917_v31  ;;  %v2685_v60 = vadd.f32 %v6604_v39, %v7917_v31 }
 0x441   :  { %v2554_v47 = vpack.c.bf16 %v2531_v42, %v2530_v40  ;;  %v2763_v48 = vpack.c.bf16 %v2740_v43, %v2739_v41  ;;  %v2468_v53 = vadd.f32 %v7917_v31, %v2467_v46  ;;  %v2677_v56 = vadd.f32 %v7917_v31, %v2676_v8 }
 0x442   :  { %v6557_v54 = vpop.f32.mrf.mxu0  ;;  %v6605_v55 = vpop.f32.mrf.mxu1  ;;  %v2536_v9 = vmax.f32 %v2476_v59, 0.0  ;;  %v2745_v10 = vmax.f32 %v2685_v60, 0.0 }
 0x443   :  { %v2479_v57 = vadd.f32 %v6557_v54, %v7917_v31  ;;  %v2688_v58 = vadd.f32 %v6605_v55, %v7917_v31  ;;  %6646 = vmatprep.mubr.bf16.mxu0 %v2554_v47  ;;  %6694 = vmatprep.mubr.bf16.mxu1 %v2763_v48  ;;  %v2534_v4 = vmax.f32 %v2468_v53, 0.0  ;;  %v2743_v5 = vmax.f32 %v2677_v56, 0.0 }
 0x444   :  { %v2470_v61 = vpop.f32.mrf.mxu0  ;;  %v2679_v62 = vpop.f32.mrf.mxu1  ;;  %6647 = vmatmul.mubr.bf16.gmra.mxu0 %v2555_v50  ;;  %6695 = vmatmul.mubr.bf16.gmra.mxu1 %v2764_v51 }
 0x445   :  { %v2471_v63 = vadd.f32 %v7917_v31, %v2470_v61  ;;  %v2680_v0 = vadd.f32 %v7917_v31, %v2679_v62  ;;  %v2537_v1 = vmax.f32 %v2479_v57, 0.0  ;;  %v2746_v2 = vmax.f32 %v2688_v58, 0.0 }
 0x446   :  { %v6560_v3 = vpop.f32.mrf.mxu0  ;;  %v6608_v28 = vpop.f32.mrf.mxu1 }
 0x447   :  { %v2535_v6 = vmax.f32 %v2471_v63, 0.0  ;;  %v2744_v7 = vmax.f32 %v2680_v0, 0.0  ;;  %v2557_v15 = vpack.c.bf16 %v2537_v1, %v2536_v9  ;;  %v2766_v16 = vpack.c.bf16 %v2746_v2, %v2745_v10 }
 0x448   :  { %v2483_v11 = vpop.f32.mrf.mxu0  ;;  %v2692_v12 = vpop.f32.mrf.mxu1  ;;  %v2492_v23 = vadd.f32 %v6560_v3, %v7917_v31  ;;  %v2701_v49 = vadd.f32 %v6608_v28, %v7917_v31 }
 0x449   :  { %v2556_v13 = vpack.c.bf16 %v2535_v6, %v2534_v4  ;;  %v2765_v14 = vpack.c.bf16 %v2744_v7, %v2743_v5  ;;  %v2484_v17 = vadd.f32 %v7917_v31, %v2483_v11  ;;  %v2693_v20 = vadd.f32 %v7917_v31, %v2692_v12  ;;  %v7180_v5 = vld [vmem:[#allocation2 + $0x180] sm:$0xff]  }
 0x44a   :  { %v6561_v18 = vpop.f32.mrf.mxu0  ;;  %v6609_v19 = vpop.f32.mrf.mxu1  ;;  %v2540_v37 = vmax.f32 %v2492_v23, 0.0  ;;  %v2749_v38 = vmax.f32 %v2701_v49, 0.0  ;;  %6724 = vmatprep.subr.bf16.mxu0 %v7180_v5  ;;  %6772 = vmatprep.subr.bf16.mxu1 %v7180_v5  ;;  %v7986_v11 = vld [vmem:[%s8524_s2 + $0x5] ss:$0 sm:$0xff] }
 0x44b   :  { %v2495_v21 = vadd.f32 %v6561_v18, %v7917_v31  ;;  %v2704_v22 = vadd.f32 %v6609_v19, %v7917_v31  ;;  %6650 = vmatprep.mubr.bf16.mxu0 %v2556_v13  ;;  %6698 = vmatprep.mubr.bf16.mxu1 %v2765_v14  ;;  %v2538_v33 = vmax.f32 %v2484_v17, 0.0  ;;  %v2747_v34 = vmax.f32 %v2693_v20, 0.0 }
 0x44c   :  { %v2486_v24 = vpop.f32.mrf.mxu0  ;;  %v2695_v25 = vpop.f32.mrf.mxu1  ;;  %6651 = vmatmul.mubr.bf16.gmra.mxu0 %v2557_v15  ;;  %6699 = vmatmul.mubr.bf16.gmra.mxu1 %v2766_v16 }
 0x44d   :  { %v2487_v52 = vadd.f32 %v7917_v31, %v2486_v24  ;;  %v2696_v26 = vadd.f32 %v7917_v31, %v2695_v25  ;;  %v2541_v27 = vmax.f32 %v2495_v21, 0.0  ;;  %v2750_v29 = vmax.f32 %v2704_v22, 0.0  ;;  %6725 = vmatpush3.bf16.msra.mxu0 %v7180_v5  ;;  %6773 = vmatpush3.bf16.msra.mxu1 %v7180_v5 }
 0x44e   :  { %v6564_v30 = vpop.f32.mrf.mxu0  ;;  %v6612_v32 = vpop.f32.mrf.mxu1 }
 0x44f   :  { %v2539_v35 = vmax.f32 %v2487_v52, 0.0  ;;  %v2748_v36 = vmax.f32 %v2696_v26, 0.0  ;;  %v2559_v43 = vpack.c.bf16 %v2541_v27, %v2540_v37  ;;  %v2768_v44 = vpack.c.bf16 %v2750_v29, %v2749_v38 }
 0x450   :  { %v2499_v39 = vpop.f32.mrf.mxu0  ;;  %v2708_v40 = vpop.f32.mrf.mxu1  ;;  %v2508_v51 = vadd.f32 %v6564_v30, %v7917_v31  ;;  %v2717_v53 = vadd.f32 %v6612_v32, %v7917_v31 }
 0x451   :  { %v2558_v41 = vpack.c.bf16 %v2539_v35, %v2538_v33  ;;  %v2767_v42 = vpack.c.bf16 %v2748_v36, %v2747_v34  ;;  %v2500_v45 = vadd.f32 %v7917_v31, %v2499_v39  ;;  %v2709_v47 = vadd.f32 %v7917_v31, %v2708_v40 }
 0x452   :  { %v6565_v46 = vpop.f32.mrf.mxu0  ;;  %v6613_v8 = vpop.f32.mrf.mxu1  ;;  %v2544_v0 = vmax.f32 %v2508_v51, 0.0  ;;  %v2753_v1 = vmax.f32 %v2717_v53, 0.0 }
 0x453   :  { %v2511_v48 = vadd.f32 %v6565_v46, %v7917_v31  ;;  %v2720_v50 = vadd.f32 %v6613_v8, %v7917_v31  ;;  %6654 = vmatprep.mubr.bf16.mxu0 %v2558_v41  ;;  %6702 = vmatprep.mubr.bf16.mxu1 %v2767_v42  ;;  %v2542_v60 = vmax.f32 %v2500_v45, 0.0  ;;  %v2751_v61 = vmax.f32 %v2709_v47, 0.0 }
 0x454   :  { %v2502_v54 = vpop.f32.mrf.mxu0  ;;  %v2711_v55 = vpop.f32.mrf.mxu1  ;;  %6655 = vmatmul.mubr.bf16.gmra.mxu0 %v2559_v43  ;;  %6703 = vmatmul.mubr.bf16.gmra.mxu1 %v2768_v44  ;;  %v7182_v43 = vld [vmem:[#allocation2 + $0x1f0] sm:$0xff]  }
 0x455   :  { %v2503_v56 = vadd.f32 %v7917_v31, %v2502_v54  ;;  %v2712_v57 = vadd.f32 %v7917_v31, %v2711_v55  ;;  %v2545_v58 = vmax.f32 %v2511_v48, 0.0  ;;  %v2754_v59 = vmax.f32 %v2720_v50, 0.0  ;;  %v7181_v31 = vld [vmem:[#allocation2 + $0x1f8] sm:$0xff]  }
 0x456   :  { %6806 = vmatprep.subr.bf16.mxu0 %v7181_v31  ;;  %6854 = vmatprep.subr.bf16.mxu1 %v7181_v31 }
 0x457   :  { %v2543_v62 = vmax.f32 %v2503_v56, 0.0  ;;  %v2752_v63 = vmax.f32 %v2712_v57, 0.0  ;;  %v2561_v28 = vpack.c.bf16 %v2545_v58, %v2544_v0  ;;  %v2770_v4 = vpack.c.bf16 %v2754_v59, %v2753_v1  ;;  %v7183_v58 = vld [vmem:[#allocation2 + $0x1e8] sm:$0xff]  }
 0x459   :  { %v2560_v2 = vpack.c.bf16 %v2543_v62, %v2542_v60  ;;  %v2769_v3 = vpack.c.bf16 %v2752_v63, %v2751_v61 }
 0x45b   :  { %6658 = vmatprep.mubr.bf16.mxu0 %v2560_v2  ;;  %6706 = vmatprep.mubr.bf16.mxu1 %v2769_v3 }
 0x45c   :  { %6659 = vmatmul.mubr.bf16.gmra.mxu0 %v2561_v28  ;;  %6707 = vmatmul.mubr.bf16.gmra.mxu1 %v2770_v4 }
 0x4e4   :  { %v6632_v6 = vpop.f32.mrf.mxu0  ;;  %v6680_v7 = vpop.f32.mrf.mxu1 }
 0x4e5   :  { %v2887_v18 = vadd.f32 %v6632_v6, %v7986_v11  ;;  %v3096_v19 = vadd.f32 %v6680_v7, %v7986_v11 }
 0x4e6   :  { %v2878_v9 = vpop.f32.mrf.mxu0  ;;  %v3087_v10 = vpop.f32.mrf.mxu1 }
 0x4e7   :  { %v2879_v14 = vadd.f32 %v7986_v11, %v2878_v9  ;;  %v3088_v15 = vadd.f32 %v7986_v11, %v3087_v10  ;;  %v3007_v32 = vmax.f32 %v2887_v18, 0.0  ;;  %v3216_v33 = vmax.f32 %v3096_v19, 0.0  ;;  %v7184_v9 = vld [vmem:[#allocation2 + $0x1e0] sm:$0xff]  }
 0x4e8   :  { %v6633_v12 = vpop.f32.mrf.mxu0  ;;  %v6681_v13 = vpop.f32.mrf.mxu1 }
 0x4e9   :  { %v2890_v16 = vadd.f32 %v6633_v12, %v7986_v11  ;;  %v3099_v17 = vadd.f32 %v6681_v13, %v7986_v11  ;;  %v3005_v26 = vmax.f32 %v2879_v14, 0.0  ;;  %v3214_v27 = vmax.f32 %v3088_v15, 0.0 }
 0x4ea   :  { %v2881_v20 = vpop.f32.mrf.mxu0  ;;  %v3090_v21 = vpop.f32.mrf.mxu1 }
 0x4eb   :  { %v2882_v22 = vadd.f32 %v7986_v11, %v2881_v20  ;;  %v3091_v23 = vadd.f32 %v7986_v11, %v3090_v21  ;;  %v3008_v49 = vmax.f32 %v2890_v16, 0.0  ;;  %v3217_v24 = vmax.f32 %v3099_v17, 0.0 }
 0x4ec   :  { %v6636_v25 = vpop.f32.mrf.mxu0  ;;  %v6684_v52 = vpop.f32.mrf.mxu1 }
 0x4ed   :  { %v3006_v29 = vmax.f32 %v2882_v22, 0.0  ;;  %v3215_v30 = vmax.f32 %v3091_v23, 0.0  ;;  %v3038_v38 = vpack.c.bf16 %v3008_v49, %v3007_v32  ;;  %v3247_v39 = vpack.c.bf16 %v3217_v24, %v3216_v33  ;;  %v7185_v49 = vld [vmem:[#allocation2 + $0x1d8] sm:$0xff]  }
 0x4ee   :  { %v2894_v34 = vpop.f32.mrf.mxu0  ;;  %v3103_v35 = vpop.f32.mrf.mxu1  ;;  %v2903_v8 = vadd.f32 %v6636_v25, %v7986_v11  ;;  %v3112_v47 = vadd.f32 %v6684_v52, %v7986_v11 }
 0x4ef   :  { %v3037_v36 = vpack.c.bf16 %v3006_v29, %v3005_v26  ;;  %v3246_v37 = vpack.c.bf16 %v3215_v30, %v3214_v27  ;;  %v2895_v40 = vadd.f32 %v7986_v11, %v2894_v34  ;;  %v3104_v44 = vadd.f32 %v7986_v11, %v3103_v35 }
 0x4f0   :  { %v6637_v41 = vpop.f32.mrf.mxu0  ;;  %v6685_v42 = vpop.f32.mrf.mxu1  ;;  %v3011_v63 = vmax.f32 %v2903_v8, 0.0  ;;  %v3220_v0 = vmax.f32 %v3112_v47, 0.0 }
 0x4f1   :  { %v2906_v45 = vadd.f32 %v6637_v41, %v7986_v11  ;;  %v3115_v46 = vadd.f32 %v6685_v42, %v7986_v11  ;;  %6726 = vmatprep.mubr.bf16.mxu0 %v3037_v36  ;;  %6774 = vmatprep.mubr.bf16.mxu1 %v3246_v37  ;;  %v3009_v59 = vmax.f32 %v2895_v40, 0.0  ;;  %v3218_v60 = vmax.f32 %v3104_v44, 0.0  ;;  %v7186_v40 = vld [vmem:[#allocation2 + $0x1d0] sm:$0xff]  }
 0x4f2   :  { %v2897_v48 = vpop.f32.mrf.mxu0  ;;  %v3106_v50 = vpop.f32.mrf.mxu1  ;;  %6727 = vmatmul.mubr.bf16.vlgmr.msra.gmra.mxu0 %v3038_v38  ;;  %6775 = vmatmul.mubr.bf16.vlgmr.msra.gmra.mxu1 %v3247_v39 }
 0x4f3   :  { %v2898_v51 = vadd.f32 %v7986_v11, %v2897_v48  ;;  %v3107_v53 = vadd.f32 %v7986_v11, %v3106_v50  ;;  %6807 = vmatpush3.bf16.msra.mxu0 %v7181_v31  ;;  %6855 = vmatpush3.bf16.msra.mxu1 %v7181_v31  ;;  %v3012_v54 = vmax.f32 %v2906_v45, 0.0  ;;  %v3221_v55 = vmax.f32 %v3115_v46, 0.0 }
 0x4f4   :  { %v6640_v56 = vpop.f32.mrf.mxu0  ;;  %v6688_v57 = vpop.f32.mrf.mxu1  ;;  %6808 = vmatprep.subr.bf16.mxu0 %v7182_v43  ;;  %6856 = vmatprep.subr.bf16.mxu1 %v7182_v43 }
 0x4f5   :  { %v3010_v61 = vmax.f32 %v2898_v51, 0.0  ;;  %v3219_v62 = vmax.f32 %v3107_v53, 0.0  ;;  %v3040_v4 = vpack.c.bf16 %v3012_v54, %v3011_v63  ;;  %v3249_v5 = vpack.c.bf16 %v3221_v55, %v3220_v0  ;;  %v7187_v55 = vld [vmem:[#allocation2 + $0x1c8] sm:$0xff]  }
 0x4f6   :  { %v2910_v1 = vpop.f32.mrf.mxu0  ;;  %v3119_v2 = vpop.f32.mrf.mxu1  ;;  %v2919_v14 = vadd.f32 %v6640_v56, %v7986_v11  ;;  %v3128_v15 = vadd.f32 %v6688_v57, %v7986_v11 }
 0x4f7   :  { %v3039_v3 = vpack.c.bf16 %v3010_v61, %v3009_v59  ;;  %v3248_v28 = vpack.c.bf16 %v3219_v62, %v3218_v60  ;;  %6809 = vmatpush3.bf16.msra.mxu0 %v7182_v43  ;;  %v2911_v31 = vadd.f32 %v7986_v11, %v2910_v1  ;;  %6857 = vmatpush3.bf16.msra.mxu1 %v7182_v43 }
 0x4f8   :  { %v6641_v6 = vpop.f32.mrf.mxu0  ;;  %v6689_v7 = vpop.f32.mrf.mxu1  ;;  %6810 = vmatprep.subr.bf16.mxu0 %v7183_v58  ;;  %v3120_v10 = vadd.f32 %v7986_v11, %v3119_v2  ;;  %6858 = vmatprep.subr.bf16.mxu1 %v7183_v58  ;;  %v3015_v27 = vmax.f32 %v2919_v14, 0.0  ;;  %v3224_v29 = vmax.f32 %v3128_v15, 0.0 }
 0x4f9   :  { %v2922_v12 = vadd.f32 %v6641_v6, %v7986_v11  ;;  %v3131_v13 = vadd.f32 %v6689_v7, %v7986_v11  ;;  %6730 = vmatprep.mubr.bf16.mxu0 %v3039_v3  ;;  %6778 = vmatprep.mubr.bf16.mxu1 %v3248_v28  ;;  %v3013_v24 = vmax.f32 %v2911_v31, 0.0 }
 0x4fa   :  { %v2913_v16 = vpop.f32.mrf.mxu0  ;;  %v3122_v17 = vpop.f32.mrf.mxu1  ;;  %6731 = vmatmul.mubr.bf16.gmra.mxu0 %v3040_v4  ;;  %6779 = vmatmul.mubr.bf16.gmra.mxu1 %v3249_v5  ;;  %v3222_v25 = vmax.f32 %v3120_v10, 0.0 }
 0x4fb   :  { %v2914_v18 = vadd.f32 %v7986_v11, %v2913_v16  ;;  %v3123_v19 = vadd.f32 %v7986_v11, %v3122_v17  ;;  %6811 = vmatpush3.bf16.msra.mxu0 %v7183_v58  ;;  %v3016_v20 = vmax.f32 %v2922_v12, 0.0  ;;  %v3225_v21 = vmax.f32 %v3131_v13, 0.0  ;;  %6859 = vmatpush3.bf16.msra.mxu1 %v7183_v58 }
 0x4fc   :  { %v6644_v22 = vpop.f32.mrf.mxu0  ;;  %v6692_v23 = vpop.f32.mrf.mxu1  ;;  %6812 = vmatprep.subr.bf16.mxu0 %v7184_v9  ;;  %6860 = vmatprep.subr.bf16.mxu1 %v7184_v9 }
 0x4fd   :  { %v3014_v52 = vmax.f32 %v2914_v18, 0.0  ;;  %v3223_v26 = vmax.f32 %v3123_v19, 0.0  ;;  %v3042_v35 = vpack.c.bf16 %v3016_v20, %v3015_v27  ;;  %v3251_v36 = vpack.c.bf16 %v3225_v21, %v3224_v29 }
 0x4fe   :  { %v2926_v30 = vpop.f32.mrf.mxu0  ;;  %v3135_v32 = vpop.f32.mrf.mxu1  ;;  %v2935_v44 = vadd.f32 %v6644_v22, %v7986_v11  ;;  %v3144_v45 = vadd.f32 %v6692_v23, %v7986_v11 }
 0x4ff   :  { %v3041_v33 = vpack.c.bf16 %v3014_v52, %v3013_v24  ;;  %v3250_v34 = vpack.c.bf16 %v3223_v26, %v3222_v25  ;;  %6813 = vmatpush3.bf16.msra.mxu0 %v7184_v9  ;;  %v2927_v37 = vadd.f32 %v7986_v11, %v2926_v30  ;;  %6861 = vmatpush3.bf16.msra.mxu1 %v7184_v9 }
 0x500   :  { %v6645_v38 = vpop.f32.mrf.mxu0  ;;  %v6693_v39 = vpop.f32.mrf.mxu1  ;;  %6814 = vmatprep.subr.bf16.mxu0 %v7185_v49  ;;  %v3136_v41 = vadd.f32 %v7986_v11, %v3135_v32  ;;  %6862 = vmatprep.subr.bf16.mxu1 %v7185_v49  ;;  %v3019_v60 = vmax.f32 %v2935_v44, 0.0  ;;  %v3228_v61 = vmax.f32 %v3144_v45, 0.0 }
 0x501   :  { %v2938_v42 = vadd.f32 %v6645_v38, %v7986_v11  ;;  %v3147_v43 = vadd.f32 %v6693_v39, %v7986_v11  ;;  %6734 = vmatprep.mubr.bf16.mxu0 %v3041_v33  ;;  %6782 = vmatprep.mubr.bf16.mxu1 %v3250_v34  ;;  %v3017_v56 = vmax.f32 %v2927_v37, 0.0 }
 0x502   :  { %v2929_v46 = vpop.f32.mrf.mxu0  ;;  %v3138_v8 = vpop.f32.mrf.mxu1  ;;  %6735 = vmatmul.mubr.bf16.gmra.mxu0 %v3042_v35  ;;  %6783 = vmatmul.mubr.bf16.gmra.mxu1 %v3251_v36  ;;  %v3226_v57 = vmax.f32 %v3136_v41, 0.0 }
 0x503   :  { %v2930_v47 = vadd.f32 %v7986_v11, %v2929_v46  ;;  %v3139_v48 = vadd.f32 %v7986_v11, %v3138_v8  ;;  %6815 = vmatpush3.bf16.msra.mxu0 %v7185_v49  ;;  %v3020_v50 = vmax.f32 %v2938_v42, 0.0  ;;  %v3229_v51 = vmax.f32 %v3147_v43, 0.0  ;;  %6863 = vmatpush3.bf16.msra.mxu1 %v7185_v49 }
 0x504   :  { %v6648_v53 = vpop.f32.mrf.mxu0  ;;  %v6696_v54 = vpop.f32.mrf.mxu1  ;;  %6816 = vmatprep.subr.bf16.mxu0 %v7186_v40  ;;  %6864 = vmatprep.subr.bf16.mxu1 %v7186_v40 }
 0x505   :  { %v3018_v58 = vmax.f32 %v2930_v47, 0.0  ;;  %v3227_v59 = vmax.f32 %v3139_v48, 0.0  ;;  %v3044_v2 = vpack.c.bf16 %v3020_v50, %v3019_v60  ;;  %v3253_v3 = vpack.c.bf16 %v3229_v51, %v3228_v61 }
 0x506   :  { %v2942_v62 = vpop.f32.mrf.mxu0  ;;  %v3151_v63 = vpop.f32.mrf.mxu1  ;;  %v2951_v9 = vadd.f32 %v6648_v53, %v7986_v11  ;;  %v3160_v10 = vadd.f32 %v6696_v54, %v7986_v11 }
 0x507   :  { %v3043_v0 = vpack.c.bf16 %v3018_v58, %v3017_v56  ;;  %v3252_v1 = vpack.c.bf16 %v3227_v59, %v3226_v57  ;;  %6817 = vmatpush3.bf16.msra.mxu0 %v7186_v40  ;;  %v2943_v28 = vadd.f32 %v7986_v11, %v2942_v62  ;;  %6865 = vmatpush3.bf16.msra.mxu1 %v7186_v40 }
 0x508   :  { %v6649_v4 = vpop.f32.mrf.mxu0  ;;  %v6697_v5 = vpop.f32.mrf.mxu1  ;;  %6818 = vmatprep.subr.bf16.mxu0 %v7187_v55  ;;  %v3152_v31 = vadd.f32 %v7986_v11, %v3151_v63  ;;  %6866 = vmatprep.subr.bf16.mxu1 %v7187_v55  ;;  %v3023_v49 = vmax.f32 %v2951_v9, 0.0  ;;  %v3232_v24 = vmax.f32 %v3160_v10, 0.0 }
 0x509   :  { %v2954_v6 = vadd.f32 %v6649_v4, %v7986_v11  ;;  %v3163_v7 = vadd.f32 %v6697_v5, %v7986_v11  ;;  %6738 = vmatprep.mubr.bf16.mxu0 %v3043_v0  ;;  %6786 = vmatprep.mubr.bf16.mxu1 %v3252_v1  ;;  %v3021_v20 = vmax.f32 %v2943_v28, 0.0 }
 0x50a   :  { %v2945_v12 = vpop.f32.mrf.mxu0  ;;  %v3154_v13 = vpop.f32.mrf.mxu1  ;;  %6739 = vmatmul.mubr.bf16.gmra.mxu0 %v3044_v2  ;;  %6787 = vmatmul.mubr.bf16.gmra.mxu1 %v3253_v3  ;;  %v3230_v21 = vmax.f32 %v3152_v31, 0.0 }
 0x50b   :  { %v2946_v14 = vadd.f32 %v7986_v11, %v2945_v12  ;;  %v3155_v15 = vadd.f32 %v7986_v11, %v3154_v13  ;;  %6819 = vmatpush3.bf16.msra.mxu0 %v7187_v55  ;;  %v3024_v16 = vmax.f32 %v2954_v6, 0.0  ;;  %v3233_v17 = vmax.f32 %v3163_v7, 0.0  ;;  %6867 = vmatpush3.bf16.msra.mxu1 %v7187_v55 }
 0x50c   :  { %v6652_v18 = vpop.f32.mrf.mxu0  ;;  %v6700_v19 = vpop.f32.mrf.mxu1 }
 0x50d   :  { %v3022_v22 = vmax.f32 %v2946_v14, 0.0  ;;  %v3231_v23 = vmax.f32 %v3155_v15, 0.0  ;;  %v3046_v29 = vpack.c.bf16 %v3024_v16, %v3023_v49  ;;  %v3255_v30 = vpack.c.bf16 %v3233_v17, %v3232_v24 }
 0x50e   :  { %v2958_v25 = vpop.f32.mrf.mxu0  ;;  %v3167_v52 = vpop.f32.mrf.mxu1  ;;  %v2967_v38 = vadd.f32 %v6652_v18, %v7986_v11  ;;  %v3176_v39 = vadd.f32 %v6700_v19, %v7986_v11 }
 0x50f   :  { %v3045_v26 = vpack.c.bf16 %v3022_v22, %v3021_v20  ;;  %v3254_v27 = vpack.c.bf16 %v3231_v23, %v3230_v21  ;;  %v2959_v32 = vadd.f32 %v7986_v11, %v2958_v25  ;;  %v3168_v35 = vadd.f32 %v7986_v11, %v3167_v52 }
 0x510   :  { %v6653_v33 = vpop.f32.mrf.mxu0  ;;  %v6701_v34 = vpop.f32.mrf.mxu1  ;;  %v3027_v53 = vmax.f32 %v2967_v38, 0.0  ;;  %v3236_v54 = vmax.f32 %v3176_v39, 0.0 }
 0x511   :  { %v2970_v36 = vadd.f32 %v6653_v33, %v7986_v11  ;;  %v3179_v37 = vadd.f32 %v6701_v34, %v7986_v11  ;;  %6742 = vmatprep.mubr.bf16.mxu0 %v3045_v26  ;;  %6790 = vmatprep.mubr.bf16.mxu1 %v3254_v27  ;;  %v3025_v47 = vmax.f32 %v2959_v32, 0.0  ;;  %v3234_v48 = vmax.f32 %v3168_v35, 0.0 }
 0x512   :  { %v2961_v40 = vpop.f32.mrf.mxu0  ;;  %v3170_v41 = vpop.f32.mrf.mxu1  ;;  %6743 = vmatmul.mubr.bf16.gmra.mxu0 %v3046_v29  ;;  %6791 = vmatmul.mubr.bf16.gmra.mxu1 %v3255_v30 }
 0x513   :  { %v2962_v42 = vadd.f32 %v7986_v11, %v2961_v40  ;;  %v3171_v43 = vadd.f32 %v7986_v11, %v3170_v41  ;;  %v3028_v44 = vmax.f32 %v2970_v36, 0.0  ;;  %v3237_v45 = vmax.f32 %v3179_v37, 0.0 }
 0x514   :  { %v6656_v46 = vpop.f32.mrf.mxu0  ;;  %v6704_v8 = vpop.f32.mrf.mxu1 }
 0x515   :  { %v3026_v50 = vmax.f32 %v2962_v42, 0.0  ;;  %v3235_v51 = vmax.f32 %v3171_v43, 0.0  ;;  %v3048_v59 = vpack.c.bf16 %v3028_v44, %v3027_v53  ;;  %v3257_v60 = vpack.c.bf16 %v3237_v45, %v3236_v54 }
 0x516   :  { %v2974_v55 = vpop.f32.mrf.mxu0  ;;  %v3183_v56 = vpop.f32.mrf.mxu1  ;;  %v2983_v3 = vadd.f32 %v6656_v46, %v7986_v11  ;;  %v3192_v28 = vadd.f32 %v6704_v8, %v7986_v11 }
 0x517   :  { %v3047_v57 = vpack.c.bf16 %v3026_v50, %v3025_v47  ;;  %v3256_v58 = vpack.c.bf16 %v3235_v51, %v3234_v48  ;;  %v2975_v61 = vadd.f32 %v7986_v11, %v2974_v55  ;;  %v3184_v0 = vadd.f32 %v7986_v11, %v3183_v56  ;;  %v7188_v48 = vld [vmem:[#allocation2 + $0x1c0] sm:$0xff]  }
 0x518   :  { %v6657_v62 = vpop.f32.mrf.mxu0  ;;  %v6705_v63 = vpop.f32.mrf.mxu1  ;;  %v3031_v17 = vmax.f32 %v2983_v3, 0.0  ;;  %v3240_v18 = vmax.f32 %v3192_v28, 0.0  ;;  %6820 = vmatprep.subr.bf16.mxu0 %v7188_v48  ;;  %6868 = vmatprep.subr.bf16.mxu1 %v7188_v48  ;;  %v8055_v55 = vld [vmem:[%s8524_s2 + $0x6] ss:$0 sm:$0xff] }
 0x519   :  { %v2986_v1 = vadd.f32 %v6657_v62, %v7986_v11  ;;  %v3195_v2 = vadd.f32 %v6705_v63, %v7986_v11  ;;  %6746 = vmatprep.mubr.bf16.mxu0 %v3047_v57  ;;  %6794 = vmatprep.mubr.bf16.mxu1 %v3256_v58  ;;  %v3029_v13 = vmax.f32 %v2975_v61, 0.0  ;;  %v3238_v14 = vmax.f32 %v3184_v0, 0.0 }
 0x51a   :  { %v2977_v4 = vpop.f32.mrf.mxu0  ;;  %v3186_v5 = vpop.f32.mrf.mxu1  ;;  %6747 = vmatmul.mubr.bf16.gmra.mxu0 %v3048_v59  ;;  %6795 = vmatmul.mubr.bf16.gmra.mxu1 %v3257_v60 }
 0x51b   :  { %v2978_v31 = vadd.f32 %v7986_v11, %v2977_v4  ;;  %v3187_v6 = vadd.f32 %v7986_v11, %v3186_v5  ;;  %v3032_v7 = vmax.f32 %v2986_v1, 0.0  ;;  %v3241_v9 = vmax.f32 %v3195_v2, 0.0  ;;  %6821 = vmatpush3.bf16.msra.mxu0 %v7188_v48  ;;  %6869 = vmatpush3.bf16.msra.mxu1 %v7188_v48 }
 0x51c   :  { %v6660_v10 = vpop.f32.mrf.mxu0  ;;  %v6708_v12 = vpop.f32.mrf.mxu1 }
 0x51d   :  { %v3030_v15 = vmax.f32 %v2978_v31, 0.0  ;;  %v3239_v16 = vmax.f32 %v3187_v6, 0.0  ;;  %v3050_v23 = vpack.c.bf16 %v3032_v7, %v3031_v17  ;;  %v3259_v49 = vpack.c.bf16 %v3241_v9, %v3240_v18 }
 0x51e   :  { %v2990_v19 = vpop.f32.mrf.mxu0  ;;  %v3199_v20 = vpop.f32.mrf.mxu1  ;;  %v2999_v30 = vadd.f32 %v6660_v10, %v7986_v11  ;;  %v3208_v32 = vadd.f32 %v6708_v12, %v7986_v11 }
 0x51f   :  { %v3049_v21 = vpack.c.bf16 %v3030_v15, %v3029_v13  ;;  %v3258_v22 = vpack.c.bf16 %v3239_v16, %v3238_v14  ;;  %v2991_v24 = vadd.f32 %v7986_v11, %v2990_v19  ;;  %v3200_v26 = vadd.f32 %v7986_v11, %v3199_v20 }
 0x520   :  { %v6661_v25 = vpop.f32.mrf.mxu0  ;;  %v6709_v52 = vpop.f32.mrf.mxu1  ;;  %v3035_v43 = vmax.f32 %v2999_v30, 0.0  ;;  %v3244_v44 = vmax.f32 %v3208_v32, 0.0 }
 0x521   :  { %v3002_v27 = vadd.f32 %v6661_v25, %v7986_v11  ;;  %v3211_v29 = vadd.f32 %v6709_v52, %v7986_v11  ;;  %6750 = vmatprep.mubr.bf16.mxu0 %v3049_v21  ;;  %6798 = vmatprep.mubr.bf16.mxu1 %v3258_v22  ;;  %v3033_v39 = vmax.f32 %v2991_v24, 0.0  ;;  %v3242_v40 = vmax.f32 %v3200_v26, 0.0 }
 0x522   :  { %v2993_v33 = vpop.f32.mrf.mxu0  ;;  %v3202_v34 = vpop.f32.mrf.mxu1  ;;  %6751 = vmatmul.mubr.bf16.gmra.mxu0 %v3050_v23  ;;  %6799 = vmatmul.mubr.bf16.gmra.mxu1 %v3259_v49  ;;  %v7190_v23 = vld [vmem:[#allocation2 + $0x230] sm:$0xff]  }
 0x523   :  { %v2994_v35 = vadd.f32 %v7986_v11, %v2993_v33  ;;  %v3203_v36 = vadd.f32 %v7986_v11, %v3202_v34  ;;  %v3036_v37 = vmax.f32 %v3002_v27, 0.0  ;;  %v3245_v38 = vmax.f32 %v3211_v29, 0.0  ;;  %v7189_v11 = vld [vmem:[#allocation2 + $0x238] sm:$0xff]  }
 0x524   :  { %6902 = vmatprep.subr.bf16.mxu0 %v7189_v11  ;;  %6950 = vmatprep.subr.bf16.mxu1 %v7189_v11 }
 0x525   :  { %v3034_v41 = vmax.f32 %v2994_v35, 0.0  ;;  %v3243_v42 = vmax.f32 %v3203_v36, 0.0  ;;  %v3052_v8 = vpack.c.bf16 %v3036_v37, %v3035_v43  ;;  %v3261_v47 = vpack.c.bf16 %v3245_v38, %v3244_v44  ;;  %v7191_v37 = vld [vmem:[#allocation2 + $0x228] sm:$0xff]  }
 0x527   :  { %v3051_v45 = vpack.c.bf16 %v3034_v41, %v3033_v39  ;;  %v3260_v46 = vpack.c.bf16 %v3243_v42, %v3242_v40 }
 0x529   :  { %6754 = vmatprep.mubr.bf16.mxu0 %v3051_v45  ;;  %6802 = vmatprep.mubr.bf16.mxu1 %v3260_v46 }
 0x52a   :  { %6755 = vmatmul.mubr.bf16.gmra.mxu0 %v3052_v8  ;;  %6803 = vmatmul.mubr.bf16.gmra.mxu1 %v3261_v47 }
 0x5b2   :  { %v6728_v50 = vpop.f32.mrf.mxu0  ;;  %v6776_v51 = vpop.f32.mrf.mxu1 }
 0x5b3   :  { %v3378_v62 = vadd.f32 %v6728_v50, %v8055_v55  ;;  %v3587_v63 = vadd.f32 %v6776_v51, %v8055_v55 }
 0x5b4   :  { %v3369_v53 = vpop.f32.mrf.mxu0  ;;  %v3578_v54 = vpop.f32.mrf.mxu1 }
 0x5b5   :  { %v3370_v58 = vadd.f32 %v8055_v55, %v3369_v53  ;;  %v3579_v59 = vadd.f32 %v8055_v55, %v3578_v54  ;;  %v3498_v12 = vmax.f32 %v3378_v62, 0.0  ;;  %v3707_v13 = vmax.f32 %v3587_v63, 0.0  ;;  %v7192_v53 = vld [vmem:[#allocation2 + $0x220] sm:$0xff]  }
 0x5b6   :  { %v6729_v56 = vpop.f32.mrf.mxu0  ;;  %v6777_v57 = vpop.f32.mrf.mxu1 }
 0x5b7   :  { %v3381_v60 = vadd.f32 %v6729_v56, %v8055_v55  ;;  %v3590_v61 = vadd.f32 %v6777_v57, %v8055_v55  ;;  %v3496_v6 = vmax.f32 %v3370_v58, 0.0  ;;  %v3705_v7 = vmax.f32 %v3579_v59, 0.0 }
 0x5b8   :  { %v3372_v0 = vpop.f32.mrf.mxu0  ;;  %v3581_v1 = vpop.f32.mrf.mxu1 }
 0x5b9   :  { %v3373_v2 = vadd.f32 %v8055_v55, %v3372_v0  ;;  %v3582_v3 = vadd.f32 %v8055_v55, %v3581_v1  ;;  %v3499_v28 = vmax.f32 %v3381_v60, 0.0  ;;  %v3708_v4 = vmax.f32 %v3590_v61, 0.0 }
 0x5ba   :  { %v6732_v5 = vpop.f32.mrf.mxu0  ;;  %v6780_v31 = vpop.f32.mrf.mxu1 }
 0x5bb   :  { %v3497_v9 = vmax.f32 %v3373_v2, 0.0  ;;  %v3706_v10 = vmax.f32 %v3582_v3, 0.0  ;;  %v3529_v18 = vpack.c.bf16 %v3499_v28, %v3498_v12  ;;  %v3738_v19 = vpack.c.bf16 %v3708_v4, %v3707_v13  ;;  %v7193_v28 = vld [vmem:[#allocation2 + $0x218] sm:$0xff]  }
 0x5bc   :  { %v3385_v14 = vpop.f32.mrf.mxu0  ;;  %v3594_v15 = vpop.f32.mrf.mxu1  ;;  %v3394_v52 = vadd.f32 %v6732_v5, %v8055_v55  ;;  %v3603_v26 = vadd.f32 %v6780_v31, %v8055_v55 }
 0x5bd   :  { %v3528_v16 = vpack.c.bf16 %v3497_v9, %v3496_v6  ;;  %v3737_v17 = vpack.c.bf16 %v3706_v10, %v3705_v7  ;;  %v3386_v20 = vadd.f32 %v8055_v55, %v3385_v14  ;;  %v3595_v49 = vadd.f32 %v8055_v55, %v3594_v15 }
 0x5be   :  { %v6733_v21 = vpop.f32.mrf.mxu0  ;;  %v6781_v22 = vpop.f32.mrf.mxu1  ;;  %v3502_v42 = vmax.f32 %v3394_v52, 0.0  ;;  %v3711_v43 = vmax.f32 %v3603_v26, 0.0 }
 0x5bf   :  { %v3397_v24 = vadd.f32 %v6733_v21, %v8055_v55  ;;  %v3606_v25 = vadd.f32 %v6781_v22, %v8055_v55  ;;  %6822 = vmatprep.mubr.bf16.mxu0 %v3528_v16  ;;  %6870 = vmatprep.mubr.bf16.mxu1 %v3737_v17  ;;  %v3500_v38 = vmax.f32 %v3386_v20, 0.0  ;;  %v3709_v39 = vmax.f32 %v3595_v49, 0.0  ;;  %v7194_v20 = vld [vmem:[#allocation2 + $0x210] sm:$0xff]  }
 0x5c0   :  { %v3388_v27 = vpop.f32.mrf.mxu0  ;;  %v3597_v29 = vpop.f32.mrf.mxu1  ;;  %6823 = vmatmul.mubr.bf16.vlgmr.msra.gmra.mxu0 %v3529_v18  ;;  %6871 = vmatmul.mubr.bf16.vlgmr.msra.gmra.mxu1 %v3738_v19 }
 0x5c1   :  { %v3389_v30 = vadd.f32 %v8055_v55, %v3388_v27  ;;  %v3598_v32 = vadd.f32 %v8055_v55, %v3597_v29  ;;  %6903 = vmatpush3.bf16.msra.mxu0 %v7189_v11  ;;  %6951 = vmatpush3.bf16.msra.mxu1 %v7189_v11  ;;  %v3503_v33 = vmax.f32 %v3397_v24, 0.0  ;;  %v3712_v34 = vmax.f32 %v3606_v25, 0.0 }
 0x5c2   :  { %v6736_v35 = vpop.f32.mrf.mxu0  ;;  %v6784_v36 = vpop.f32.mrf.mxu1  ;;  %6904 = vmatprep.subr.bf16.mxu0 %v7190_v23  ;;  %6952 = vmatprep.subr.bf16.mxu1 %v7190_v23 }
 0x5c3   :  { %v3501_v40 = vmax.f32 %v3389_v30, 0.0  ;;  %v3710_v41 = vmax.f32 %v3598_v32, 0.0  ;;  %v3531_v47 = vpack.c.bf16 %v3503_v33, %v3502_v42  ;;  %v3740_v48 = vpack.c.bf16 %v3712_v34, %v3711_v43  ;;  %v7195_v34 = vld [vmem:[#allocation2 + $0x208] sm:$0xff]  }
 0x5c4   :  { %v3401_v44 = vpop.f32.mrf.mxu0  ;;  %v3610_v45 = vpop.f32.mrf.mxu1  ;;  %v3410_v58 = vadd.f32 %v6736_v35, %v8055_v55  ;;  %v3619_v59 = vadd.f32 %v6784_v36, %v8055_v55 }
 0x5c5   :  { %v3530_v46 = vpack.c.bf16 %v3501_v40, %v3500_v38  ;;  %v3739_v8 = vpack.c.bf16 %v3710_v41, %v3709_v39  ;;  %6905 = vmatpush3.bf16.msra.mxu0 %v7190_v23  ;;  %v3402_v11 = vadd.f32 %v8055_v55, %v3401_v44  ;;  %6953 = vmatpush3.bf16.msra.mxu1 %v7190_v23 }
 0x5c6   :  { %v6737_v50 = vpop.f32.mrf.mxu0  ;;  %v6785_v51 = vpop.f32.mrf.mxu1  ;;  %6906 = vmatprep.subr.bf16.mxu0 %v7191_v37  ;;  %v3611_v54 = vadd.f32 %v8055_v55, %v3610_v45  ;;  %6954 = vmatprep.subr.bf16.mxu1 %v7191_v37  ;;  %v3506_v7 = vmax.f32 %v3410_v58, 0.0  ;;  %v3715_v9 = vmax.f32 %v3619_v59, 0.0 }
 0x5c7   :  { %v3413_v56 = vadd.f32 %v6737_v50, %v8055_v55  ;;  %v3622_v57 = vadd.f32 %v6785_v51, %v8055_v55  ;;  %6826 = vmatprep.mubr.bf16.mxu0 %v3530_v46  ;;  %6874 = vmatprep.mubr.bf16.mxu1 %v3739_v8  ;;  %v3504_v4 = vmax.f32 %v3402_v11, 0.0 }
 0x5c8   :  { %v3404_v60 = vpop.f32.mrf.mxu0  ;;  %v3613_v61 = vpop.f32.mrf.mxu1  ;;  %6827 = vmatmul.mubr.bf16.gmra.mxu0 %v3531_v47  ;;  %6875 = vmatmul.mubr.bf16.gmra.mxu1 %v3740_v48  ;;  %v3713_v5 = vmax.f32 %v3611_v54, 0.0 }
 0x5c9   :  { %v3405_v62 = vadd.f32 %v8055_v55, %v3404_v60  ;;  %v3614_v63 = vadd.f32 %v8055_v55, %v3613_v61  ;;  %6907 = vmatpush3.bf16.msra.mxu0 %v7191_v37  ;;  %v3507_v0 = vmax.f32 %v3413_v56, 0.0  ;;  %v3716_v1 = vmax.f32 %v3622_v57, 0.0  ;;  %6955 = vmatpush3.bf16.msra.mxu1 %v7191_v37 }
 0x5ca   :  { %v6740_v2 = vpop.f32.mrf.mxu0  ;;  %v6788_v3 = vpop.f32.mrf.mxu1  ;;  %6908 = vmatprep.subr.bf16.mxu0 %v7192_v53  ;;  %6956 = vmatprep.subr.bf16.mxu1 %v7192_v53 }
 0x5cb   :  { %v3505_v31 = vmax.f32 %v3405_v62, 0.0  ;;  %v3714_v6 = vmax.f32 %v3614_v63, 0.0  ;;  %v3533_v15 = vpack.c.bf16 %v3507_v0, %v3506_v7  ;;  %v3742_v16 = vpack.c.bf16 %v3716_v1, %v3715_v9 }
 0x5cc   :  { %v3417_v10 = vpop.f32.mrf.mxu0  ;;  %v3626_v12 = vpop.f32.mrf.mxu1  ;;  %v3426_v49 = vadd.f32 %v6740_v2, %v8055_v55  ;;  %v3635_v24 = vadd.f32 %v6788_v3, %v8055_v55 }
 0x5cd   :  { %v3532_v13 = vpack.c.bf16 %v3505_v31, %v3504_v4  ;;  %v3741_v14 = vpack.c.bf16 %v3714_v6, %v3713_v5  ;;  %6909 = vmatpush3.bf16.msra.mxu0 %v7192_v53  ;;  %v3418_v17 = vadd.f32 %v8055_v55, %v3417_v10  ;;  %6957 = vmatpush3.bf16.msra.mxu1 %v7192_v53 }
 0x5ce   :  { %v6741_v18 = vpop.f32.mrf.mxu0  ;;  %v6789_v19 = vpop.f32.mrf.mxu1  ;;  %6910 = vmatprep.subr.bf16.mxu0 %v7193_v28  ;;  %v3627_v21 = vadd.f32 %v8055_v55, %v3626_v12  ;;  %6958 = vmatprep.subr.bf16.mxu1 %v7193_v28  ;;  %v3510_v39 = vmax.f32 %v3426_v49, 0.0  ;;  %v3719_v40 = vmax.f32 %v3635_v24, 0.0 }
 0x5cf   :  { %v3429_v22 = vadd.f32 %v6741_v18, %v8055_v55  ;;  %v3638_v23 = vadd.f32 %v6789_v19, %v8055_v55  ;;  %6830 = vmatprep.mubr.bf16.mxu0 %v3532_v13  ;;  %6878 = vmatprep.mubr.bf16.mxu1 %v3741_v14  ;;  %v3508_v35 = vmax.f32 %v3418_v17, 0.0 }
 0x5d0   :  { %v3420_v25 = vpop.f32.mrf.mxu0  ;;  %v3629_v52 = vpop.f32.mrf.mxu1  ;;  %6831 = vmatmul.mubr.bf16.gmra.mxu0 %v3533_v15  ;;  %6879 = vmatmul.mubr.bf16.gmra.mxu1 %v3742_v16  ;;  %v3717_v36 = vmax.f32 %v3627_v21, 0.0 }
 0x5d1   :  { %v3421_v26 = vadd.f32 %v8055_v55, %v3420_v25  ;;  %v3630_v27 = vadd.f32 %v8055_v55, %v3629_v52  ;;  %6911 = vmatpush3.bf16.msra.mxu0 %v7193_v28  ;;  %v3511_v29 = vmax.f32 %v3429_v22, 0.0  ;;  %v3720_v30 = vmax.f32 %v3638_v23, 0.0  ;;  %6959 = vmatpush3.bf16.msra.mxu1 %v7193_v28 }
 0x5d2   :  { %v6744_v32 = vpop.f32.mrf.mxu0  ;;  %v6792_v33 = vpop.f32.mrf.mxu1  ;;  %6912 = vmatprep.subr.bf16.mxu0 %v7194_v20  ;;  %6960 = vmatprep.subr.bf16.mxu1 %v7194_v20 }
 0x5d3   :  { %v3509_v37 = vmax.f32 %v3421_v26, 0.0  ;;  %v3718_v38 = vmax.f32 %v3630_v27, 0.0  ;;  %v3535_v45 = vpack.c.bf16 %v3511_v29, %v3510_v39  ;;  %v3744_v46 = vpack.c.bf16 %v3720_v30, %v3719_v40 }
 0x5d4   :  { %v3433_v41 = vpop.f32.mrf.mxu0  ;;  %v3642_v42 = vpop.f32.mrf.mxu1  ;;  %v3442_v53 = vadd.f32 %v6744_v32, %v8055_v55  ;;  %v3651_v54 = vadd.f32 %v6792_v33, %v8055_v55 }
 0x5d5   :  { %v3534_v43 = vpack.c.bf16 %v3509_v37, %v3508_v35  ;;  %v3743_v44 = vpack.c.bf16 %v3718_v38, %v3717_v36  ;;  %6913 = vmatpush3.bf16.msra.mxu0 %v7194_v20  ;;  %v3434_v8 = vadd.f32 %v8055_v55, %v3433_v41  ;;  %6961 = vmatpush3.bf16.msra.mxu1 %v7194_v20 }
 0x5d6   :  { %v6745_v47 = vpop.f32.mrf.mxu0  ;;  %v6793_v48 = vpop.f32.mrf.mxu1  ;;  %6914 = vmatprep.subr.bf16.mxu0 %v7195_v34  ;;  %v3643_v11 = vadd.f32 %v8055_v55, %v3642_v42  ;;  %6962 = vmatprep.subr.bf16.mxu1 %v7195_v34  ;;  %v3514_v28 = vmax.f32 %v3442_v53, 0.0  ;;  %v3723_v4 = vmax.f32 %v3651_v54, 0.0 }
 0x5d7   :  { %v3445_v50 = vadd.f32 %v6745_v47, %v8055_v55  ;;  %v3654_v51 = vadd.f32 %v6793_v48, %v8055_v55  ;;  %6834 = vmatprep.mubr.bf16.mxu0 %v3534_v43  ;;  %6882 = vmatprep.mubr.bf16.mxu1 %v3743_v44  ;;  %v3512_v0 = vmax.f32 %v3434_v8, 0.0 }
 0x5d8   :  { %v3436_v56 = vpop.f32.mrf.mxu0  ;;  %v3645_v57 = vpop.f32.mrf.mxu1  ;;  %6835 = vmatmul.mubr.bf16.gmra.mxu0 %v3535_v45  ;;  %6883 = vmatmul.mubr.bf16.gmra.mxu1 %v3744_v46  ;;  %v3721_v1 = vmax.f32 %v3643_v11, 0.0 }
 0x5d9   :  { %v3437_v58 = vadd.f32 %v8055_v55, %v3436_v56  ;;  %v3646_v59 = vadd.f32 %v8055_v55, %v3645_v57  ;;  %6915 = vmatpush3.bf16.msra.mxu0 %v7195_v34  ;;  %v3515_v60 = vmax.f32 %v3445_v50, 0.0  ;;  %v3724_v61 = vmax.f32 %v3654_v51, 0.0  ;;  %6963 = vmatpush3.bf16.msra.mxu1 %v7195_v34 }
 0x5da   :  { %v6748_v62 = vpop.f32.mrf.mxu0  ;;  %v6796_v63 = vpop.f32.mrf.mxu1 }
 0x5db   :  { %v3513_v2 = vmax.f32 %v3437_v58, 0.0  ;;  %v3722_v3 = vmax.f32 %v3646_v59, 0.0  ;;  %v3537_v9 = vpack.c.bf16 %v3515_v60, %v3514_v28  ;;  %v3746_v10 = vpack.c.bf16 %v3724_v61, %v3723_v4 }
 0x5dc   :  { %v3449_v5 = vpop.f32.mrf.mxu0  ;;  %v3658_v31 = vpop.f32.mrf.mxu1  ;;  %v3458_v18 = vadd.f32 %v6748_v62, %v8055_v55  ;;  %v3667_v19 = vadd.f32 %v6796_v63, %v8055_v55 }
 0x5dd   :  { %v3536_v6 = vpack.c.bf16 %v3513_v2, %v3512_v0  ;;  %v3745_v7 = vpack.c.bf16 %v3722_v3, %v3721_v1  ;;  %v3450_v12 = vadd.f32 %v8055_v55, %v3449_v5  ;;  %v3659_v15 = vadd.f32 %v8055_v55, %v3658_v31 }
 0x5de   :  { %v6749_v13 = vpop.f32.mrf.mxu0  ;;  %v6797_v14 = vpop.f32.mrf.mxu1  ;;  %v3518_v32 = vmax.f32 %v3458_v18, 0.0  ;;  %v3727_v33 = vmax.f32 %v3667_v19, 0.0 }
 0x5df   :  { %v3461_v16 = vadd.f32 %v6749_v13, %v8055_v55  ;;  %v3670_v17 = vadd.f32 %v6797_v14, %v8055_v55  ;;  %6838 = vmatprep.mubr.bf16.mxu0 %v3536_v6  ;;  %6886 = vmatprep.mubr.bf16.mxu1 %v3745_v7  ;;  %v3516_v26 = vmax.f32 %v3450_v12, 0.0  ;;  %v3725_v27 = vmax.f32 %v3659_v15, 0.0 }
 0x5e0   :  { %v3452_v20 = vpop.f32.mrf.mxu0  ;;  %v3661_v21 = vpop.f32.mrf.mxu1  ;;  %6839 = vmatmul.mubr.bf16.gmra.mxu0 %v3537_v9  ;;  %6887 = vmatmul.mubr.bf16.gmra.mxu1 %v3746_v10 }
 0x5e1   :  { %v3453_v22 = vadd.f32 %v8055_v55, %v3452_v20  ;;  %v3662_v23 = vadd.f32 %v8055_v55, %v3661_v21  ;;  %v3519_v49 = vmax.f32 %v3461_v16, 0.0  ;;  %v3728_v24 = vmax.f32 %v3670_v17, 0.0 }
 0x5e2   :  { %v6752_v25 = vpop.f32.mrf.mxu0  ;;  %v6800_v52 = vpop.f32.mrf.mxu1 }
 0x5e3   :  { %v3517_v29 = vmax.f32 %v3453_v22, 0.0  ;;  %v3726_v30 = vmax.f32 %v3662_v23, 0.0  ;;  %v3539_v38 = vpack.c.bf16 %v3519_v49, %v3518_v32  ;;  %v3748_v39 = vpack.c.bf16 %v3728_v24, %v3727_v33 }
 0x5e4   :  { %v3465_v34 = vpop.f32.mrf.mxu0  ;;  %v3674_v35 = vpop.f32.mrf.mxu1  ;;  %v3474_v46 = vadd.f32 %v6752_v25, %v8055_v55  ;;  %v3683_v8 = vadd.f32 %v6800_v52, %v8055_v55 }
 0x5e5   :  { %v3538_v36 = vpack.c.bf16 %v3517_v29, %v3516_v26  ;;  %v3747_v37 = vpack.c.bf16 %v3726_v30, %v3725_v27  ;;  %v3466_v40 = vadd.f32 %v8055_v55, %v3465_v34  ;;  %v3675_v43 = vadd.f32 %v8055_v55, %v3674_v35  ;;  %v7196_v27 = vld [vmem:[#allocation2 + $0x200] sm:$0xff]  }
 0x5e6   :  { %v6753_v41 = vpop.f32.mrf.mxu0  ;;  %v6801_v42 = vpop.f32.mrf.mxu1  ;;  %v3522_v61 = vmax.f32 %v3474_v46, 0.0  ;;  %v3731_v62 = vmax.f32 %v3683_v8, 0.0  ;;  %6916 = vmatprep.subr.bf16.mxu0 %v7196_v27  ;;  %6964 = vmatprep.subr.bf16.mxu1 %v7196_v27  ;;  %v8124_v34 = vld [vmem:[%s8524_s2 + $0x7] ss:$0 sm:$0xff] }
 0x5e7   :  { %v3477_v44 = vadd.f32 %v6753_v41, %v8055_v55  ;;  %v3686_v45 = vadd.f32 %v6801_v42, %v8055_v55  ;;  %6842 = vmatprep.mubr.bf16.mxu0 %v3538_v36  ;;  %6890 = vmatprep.mubr.bf16.mxu1 %v3747_v37  ;;  %v3520_v57 = vmax.f32 %v3466_v40, 0.0  ;;  %v3729_v58 = vmax.f32 %v3675_v43, 0.0 }
 0x5e8   :  { %v3468_v47 = vpop.f32.mrf.mxu0  ;;  %v3677_v48 = vpop.f32.mrf.mxu1  ;;  %6843 = vmatmul.mubr.bf16.gmra.mxu0 %v3539_v38  ;;  %6891 = vmatmul.mubr.bf16.gmra.mxu1 %v3748_v39 }
 0x5e9   :  { %v3469_v11 = vadd.f32 %v8055_v55, %v3468_v47  ;;  %v3678_v50 = vadd.f32 %v8055_v55, %v3677_v48  ;;  %v3523_v51 = vmax.f32 %v3477_v44, 0.0  ;;  %v3732_v53 = vmax.f32 %v3686_v45, 0.0  ;;  %6917 = vmatpush3.bf16.msra.mxu0 %v7196_v27  ;;  %6965 = vmatpush3.bf16.msra.mxu1 %v7196_v27 }
 0x5ea   :  { %v6756_v54 = vpop.f32.mrf.mxu0  ;;  %v6804_v56 = vpop.f32.mrf.mxu1 }
 0x5eb   :  { %v3521_v59 = vmax.f32 %v3469_v11, 0.0  ;;  %v3730_v60 = vmax.f32 %v3678_v50, 0.0  ;;  %v3541_v3 = vpack.c.bf16 %v3523_v51, %v3522_v61  ;;  %v3750_v28 = vpack.c.bf16 %v3732_v53, %v3731_v62 }
 0x5ec   :  { %v3481_v63 = vpop.f32.mrf.mxu0  ;;  %v3690_v0 = vpop.f32.mrf.mxu1  ;;  %v3490_v10 = vadd.f32 %v6756_v54, %v8055_v55  ;;  %v3699_v12 = vadd.f32 %v6804_v56, %v8055_v55 }
 0x5ed   :  { %v3540_v1 = vpack.c.bf16 %v3521_v59, %v3520_v57  ;;  %v3749_v2 = vpack.c.bf16 %v3730_v60, %v3729_v58  ;;  %v3482_v4 = vadd.f32 %v8055_v55, %v3481_v63  ;;  %v3691_v6 = vadd.f32 %v8055_v55, %v3690_v0 }
 0x5ee   :  { %v6757_v5 = vpop.f32.mrf.mxu0  ;;  %v6805_v31 = vpop.f32.mrf.mxu1  ;;  %v3526_v23 = vmax.f32 %v3490_v10, 0.0  ;;  %v3735_v49 = vmax.f32 %v3699_v12, 0.0 }
 0x5ef   :  { %v3493_v7 = vadd.f32 %v6757_v5, %v8055_v55  ;;  %v3702_v9 = vadd.f32 %v6805_v31, %v8055_v55  ;;  %6846 = vmatprep.mubr.bf16.mxu0 %v3540_v1  ;;  %6894 = vmatprep.mubr.bf16.mxu1 %v3749_v2  ;;  %v3524_v19 = vmax.f32 %v3482_v4, 0.0  ;;  %v3733_v20 = vmax.f32 %v3691_v6, 0.0 }
 0x5f0   :  { %v3484_v13 = vpop.f32.mrf.mxu0  ;;  %v3693_v14 = vpop.f32.mrf.mxu1  ;;  %6847 = vmatmul.mubr.bf16.gmra.mxu0 %v3541_v3  ;;  %6895 = vmatmul.mubr.bf16.gmra.mxu1 %v3750_v28  ;;  %v7198_v3 = vld [vmem:[#allocation2 + $0x270] sm:$0xff]  }
 0x5f1   :  { %v3485_v15 = vadd.f32 %v8055_v55, %v3484_v13  ;;  %v3694_v16 = vadd.f32 %v8055_v55, %v3693_v14  ;;  %v3527_v17 = vmax.f32 %v3493_v7, 0.0  ;;  %v3736_v18 = vmax.f32 %v3702_v9, 0.0  ;;  %v7197_v55 = vld [vmem:[#allocation2 + $0x278] sm:$0xff]  }
 0x5f2   :  { %6998 = vmatprep.subr.bf16.mxu0 %v7197_v55  ;;  %7046 = vmatprep.subr.bf16.mxu1 %v7197_v55 }
 0x5f3   :  { %v3525_v21 = vmax.f32 %v3485_v15, 0.0  ;;  %v3734_v22 = vmax.f32 %v3694_v16, 0.0  ;;  %v3543_v52 = vpack.c.bf16 %v3527_v17, %v3526_v23  ;;  %v3752_v26 = vpack.c.bf16 %v3736_v18, %v3735_v49  ;;  %v7199_v17 = vld [vmem:[#allocation2 + $0x268] sm:$0xff]  }
 0x5f5   :  { %v3542_v24 = vpack.c.bf16 %v3525_v21, %v3524_v19  ;;  %v3751_v25 = vpack.c.bf16 %v3734_v22, %v3733_v20 }
 0x5f7   :  { %6850 = vmatprep.mubr.bf16.mxu0 %v3542_v24  ;;  %6898 = vmatprep.mubr.bf16.mxu1 %v3751_v25 }
 0x5f8   :  { %6851 = vmatmul.mubr.bf16.gmra.mxu0 %v3543_v52  ;;  %6899 = vmatmul.mubr.bf16.gmra.mxu1 %v3752_v26 }
 0x680   :  { %v6824_v29 = vpop.f32.mrf.mxu0  ;;  %v6872_v30 = vpop.f32.mrf.mxu1 }
 0x681   :  { %v3869_v41 = vadd.f32 %v6824_v29, %v8124_v34  ;;  %v4078_v42 = vadd.f32 %v6872_v30, %v8124_v34 }
 0x682   :  { %v3860_v32 = vpop.f32.mrf.mxu0  ;;  %v4069_v33 = vpop.f32.mrf.mxu1 }
 0x683   :  { %v3861_v37 = vadd.f32 %v8124_v34, %v3860_v32  ;;  %v4070_v38 = vadd.f32 %v8124_v34, %v4069_v33  ;;  %v3989_v56 = vmax.f32 %v3869_v41, 0.0  ;;  %v4198_v57 = vmax.f32 %v4078_v42, 0.0  ;;  %v7200_v32 = vld [vmem:[#allocation2 + $0x260] sm:$0xff]  }
 0x684   :  { %v6825_v35 = vpop.f32.mrf.mxu0  ;;  %v6873_v36 = vpop.f32.mrf.mxu1 }
 0x685   :  { %v3872_v39 = vadd.f32 %v6825_v35, %v8124_v34  ;;  %v4081_v40 = vadd.f32 %v6873_v36, %v8124_v34  ;;  %v3987_v50 = vmax.f32 %v3861_v37, 0.0  ;;  %v4196_v51 = vmax.f32 %v4070_v38, 0.0 }
 0x686   :  { %v3863_v43 = vpop.f32.mrf.mxu0  ;;  %v4072_v44 = vpop.f32.mrf.mxu1 }
 0x687   :  { %v3864_v45 = vadd.f32 %v8124_v34, %v3863_v43  ;;  %v4073_v46 = vadd.f32 %v8124_v34, %v4072_v44  ;;  %v3990_v8 = vmax.f32 %v3872_v39, 0.0  ;;  %v4199_v47 = vmax.f32 %v4081_v40, 0.0 }
 0x688   :  { %v6828_v48 = vpop.f32.mrf.mxu0  ;;  %v6876_v11 = vpop.f32.mrf.mxu1 }
 0x689   :  { %v3988_v53 = vmax.f32 %v3864_v45, 0.0  ;;  %v4197_v54 = vmax.f32 %v4073_v46, 0.0  ;;  %v4020_v62 = vpack.c.bf16 %v3990_v8, %v3989_v56  ;;  %v4229_v63 = vpack.c.bf16 %v4199_v47, %v4198_v57  ;;  %v7201_v8 = vld [vmem:[#allocation2 + $0x258] sm:$0xff]  }
 0x68a   :  { %v3876_v58 = vpop.f32.mrf.mxu0  ;;  %v4085_v59 = vpop.f32.mrf.mxu1  ;;  %v3885_v31 = vadd.f32 %v6828_v48, %v8124_v34  ;;  %v4094_v6 = vadd.f32 %v6876_v11, %v8124_v34 }
 0x68b   :  { %v4019_v60 = vpack.c.bf16 %v3988_v53, %v3987_v50  ;;  %v4228_v61 = vpack.c.bf16 %v4197_v54, %v4196_v51  ;;  %v3877_v0 = vadd.f32 %v8124_v34, %v3876_v58  ;;  %v4086_v28 = vadd.f32 %v8124_v34, %v4085_v59 }
 0x68c   :  { %v6829_v1 = vpop.f32.mrf.mxu0  ;;  %v6877_v2 = vpop.f32.mrf.mxu1  ;;  %v3993_v22 = vmax.f32 %v3885_v31, 0.0  ;;  %v4202_v23 = vmax.f32 %v4094_v6, 0.0 }
 0x68d   :  { %v3888_v4 = vadd.f32 %v6829_v1, %v8124_v34  ;;  %v4097_v5 = vadd.f32 %v6877_v2, %v8124_v34  ;;  %6918 = vmatprep.mubr.bf16.mxu0 %v4019_v60  ;;  %6966 = vmatprep.mubr.bf16.mxu1 %v4228_v61  ;;  %v3991_v18 = vmax.f32 %v3877_v0, 0.0  ;;  %v4200_v19 = vmax.f32 %v4086_v28, 0.0  ;;  %v7202_v0 = vld [vmem:[#allocation2 + $0x250] sm:$0xff]  }
 0x68e   :  { %v3879_v7 = vpop.f32.mrf.mxu0  ;;  %v4088_v9 = vpop.f32.mrf.mxu1  ;;  %6919 = vmatmul.mubr.bf16.vlgmr.msra.gmra.mxu0 %v4020_v62  ;;  %6967 = vmatmul.mubr.bf16.vlgmr.msra.gmra.mxu1 %v4229_v63 }
 0x68f   :  { %v3880_v10 = vadd.f32 %v8124_v34, %v3879_v7  ;;  %v4089_v12 = vadd.f32 %v8124_v34, %v4088_v9  ;;  %6999 = vmatpush3.bf16.msra.mxu0 %v7197_v55  ;;  %7047 = vmatpush3.bf16.msra.mxu1 %v7197_v55  ;;  %v3994_v13 = vmax.f32 %v3888_v4, 0.0  ;;  %v4203_v14 = vmax.f32 %v4097_v5, 0.0 }
 0x690   :  { %v6832_v15 = vpop.f32.mrf.mxu0  ;;  %v6880_v16 = vpop.f32.mrf.mxu1  ;;  %7000 = vmatprep.subr.bf16.mxu0 %v7198_v3  ;;  %7048 = vmatprep.subr.bf16.mxu1 %v7198_v3 }
 0x691   :  { %v3992_v20 = vmax.f32 %v3880_v10, 0.0  ;;  %v4201_v21 = vmax.f32 %v4089_v12, 0.0  ;;  %v4022_v26 = vpack.c.bf16 %v3994_v13, %v3993_v22  ;;  %v4231_v27 = vpack.c.bf16 %v4203_v14, %v4202_v23  ;;  %v7203_v14 = vld [vmem:[#allocation2 + $0x248] sm:$0xff]  }
 0x692   :  { %v3892_v49 = vpop.f32.mrf.mxu0  ;;  %v4101_v24 = vpop.f32.mrf.mxu1  ;;  %v3901_v37 = vadd.f32 %v6832_v15, %v8124_v34  ;;  %v4110_v38 = vadd.f32 %v6880_v16, %v8124_v34 }
 0x693   :  { %v4021_v25 = vpack.c.bf16 %v3992_v20, %v3991_v18  ;;  %v4230_v52 = vpack.c.bf16 %v4201_v21, %v4200_v19  ;;  %7001 = vmatpush3.bf16.msra.mxu0 %v7198_v3  ;;  %v3893_v55 = vadd.f32 %v8124_v34, %v3892_v49  ;;  %7049 = vmatpush3.bf16.msra.mxu1 %v7198_v3 }
 0x694   :  { %v6833_v29 = vpop.f32.mrf.mxu0  ;;  %v6881_v30 = vpop.f32.mrf.mxu1  ;;  %7002 = vmatprep.subr.bf16.mxu0 %v7199_v17  ;;  %v4102_v33 = vadd.f32 %v8124_v34, %v4101_v24  ;;  %7050 = vmatprep.subr.bf16.mxu1 %v7199_v17  ;;  %v3997_v51 = vmax.f32 %v3901_v37, 0.0  ;;  %v4206_v53 = vmax.f32 %v4110_v38, 0.0 }
 0x695   :  { %v3904_v35 = vadd.f32 %v6833_v29, %v8124_v34  ;;  %v4113_v36 = vadd.f32 %v6881_v30, %v8124_v34  ;;  %6922 = vmatprep.mubr.bf16.mxu0 %v4021_v25  ;;  %6970 = vmatprep.mubr.bf16.mxu1 %v4230_v52  ;;  %v3995_v47 = vmax.f32 %v3893_v55, 0.0 }
 0x696   :  { %v3895_v39 = vpop.f32.mrf.mxu0  ;;  %v4104_v40 = vpop.f32.mrf.mxu1  ;;  %6923 = vmatmul.mubr.bf16.gmra.mxu0 %v4022_v26  ;;  %6971 = vmatmul.mubr.bf16.gmra.mxu1 %v4231_v27  ;;  %v4204_v48 = vmax.f32 %v4102_v33, 0.0 }
 0x697   :  { %v3896_v41 = vadd.f32 %v8124_v34, %v3895_v39  ;;  %v4105_v42 = vadd.f32 %v8124_v34, %v4104_v40  ;;  %7003 = vmatpush3.bf16.msra.mxu0 %v7199_v17  ;;  %v3998_v43 = vmax.f32 %v3904_v35, 0.0  ;;  %v4207_v44 = vmax.f32 %v4113_v36, 0.0  ;;  %7051 = vmatpush3.bf16.msra.mxu1 %v7199_v17 }
 0x698   :  { %v6836_v45 = vpop.f32.mrf.mxu0  ;;  %v6884_v46 = vpop.f32.mrf.mxu1  ;;  %7004 = vmatprep.subr.bf16.mxu0 %v7200_v32  ;;  %7052 = vmatprep.subr.bf16.mxu1 %v7200_v32 }
 0x699   :  { %v3996_v11 = vmax.f32 %v3896_v41, 0.0  ;;  %v4205_v50 = vmax.f32 %v4105_v42, 0.0  ;;  %v4024_v59 = vpack.c.bf16 %v3998_v43, %v3997_v51  ;;  %v4233_v60 = vpack.c.bf16 %v4207_v44, %v4206_v53 }
 0x69a   :  { %v3908_v54 = vpop.f32.mrf.mxu0  ;;  %v4117_v56 = vpop.f32.mrf.mxu1  ;;  %v3917_v28 = vadd.f32 %v6836_v45, %v8124_v34  ;;  %v4126_v4 = vadd.f32 %v6884_v46, %v8124_v34 }
 0x69b   :  { %v4023_v57 = vpack.c.bf16 %v3996_v11, %v3995_v47  ;;  %v4232_v58 = vpack.c.bf16 %v4205_v50, %v4204_v48  ;;  %7005 = vmatpush3.bf16.msra.mxu0 %v7200_v32  ;;  %v3909_v61 = vadd.f32 %v8124_v34, %v3908_v54  ;;  %7053 = vmatpush3.bf16.msra.mxu1 %v7200_v32 }
 0x69c   :  { %v6837_v62 = vpop.f32.mrf.mxu0  ;;  %v6885_v63 = vpop.f32.mrf.mxu1  ;;  %7006 = vmatprep.subr.bf16.mxu0 %v7201_v8  ;;  %v4118_v1 = vadd.f32 %v8124_v34, %v4117_v56  ;;  %7054 = vmatprep.subr.bf16.mxu1 %v7201_v8  ;;  %v4001_v19 = vmax.f32 %v3917_v28, 0.0  ;;  %v4210_v20 = vmax.f32 %v4126_v4, 0.0 }
 0x69d   :  { %v3920_v2 = vadd.f32 %v6837_v62, %v8124_v34  ;;  %v4129_v3 = vadd.f32 %v6885_v63, %v8124_v34  ;;  %6926 = vmatprep.mubr.bf16.mxu0 %v4023_v57  ;;  %6974 = vmatprep.mubr.bf16.mxu1 %v4232_v58  ;;  %v3999_v15 = vmax.f32 %v3909_v61, 0.0 }
 0x69e   :  { %v3911_v5 = vpop.f32.mrf.mxu0  ;;  %v4120_v31 = vpop.f32.mrf.mxu1  ;;  %6927 = vmatmul.mubr.bf16.gmra.mxu0 %v4024_v59  ;;  %6975 = vmatmul.mubr.bf16.gmra.mxu1 %v4233_v60  ;;  %v4208_v16 = vmax.f32 %v4118_v1, 0.0 }
 0x69f   :  { %v3912_v6 = vadd.f32 %v8124_v34, %v3911_v5  ;;  %v4121_v7 = vadd.f32 %v8124_v34, %v4120_v31  ;;  %7007 = vmatpush3.bf16.msra.mxu0 %v7201_v8  ;;  %v4002_v9 = vmax.f32 %v3920_v2, 0.0  ;;  %v4211_v10 = vmax.f32 %v4129_v3, 0.0  ;;  %7055 = vmatpush3.bf16.msra.mxu1 %v7201_v8 }
 0x6a0   :  { %v6840_v12 = vpop.f32.mrf.mxu0  ;;  %v6888_v13 = vpop.f32.mrf.mxu1  ;;  %7008 = vmatprep.subr.bf16.mxu0 %v7202_v0  ;;  %7056 = vmatprep.subr.bf16.mxu1 %v7202_v0 }
 0x6a1   :  { %v4000_v17 = vmax.f32 %v3912_v6, 0.0  ;;  %v4209_v18 = vmax.f32 %v4121_v7, 0.0  ;;  %v4026_v24 = vpack.c.bf16 %v4002_v9, %v4001_v19  ;;  %v4235_v25 = vpack.c.bf16 %v4211_v10, %v4210_v20 }
 0x6a2   :  { %v3924_v21 = vpop.f32.mrf.mxu0  ;;  %v4133_v22 = vpop.f32.mrf.mxu1  ;;  %v3933_v32 = vadd.f32 %v6840_v12, %v8124_v34  ;;  %v4142_v33 = vadd.f32 %v6888_v13, %v8124_v34 }
 0x6a3   :  { %v4025_v23 = vpack.c.bf16 %v4000_v17, %v3999_v15  ;;  %v4234_v49 = vpack.c.bf16 %v4209_v18, %v4208_v16  ;;  %7009 = vmatpush3.bf16.msra.mxu0 %v7202_v0  ;;  %v3925_v52 = vadd.f32 %v8124_v34, %v3924_v21  ;;  %7057 = vmatpush3.bf16.msra.mxu1 %v7202_v0 }
 0x6a4   :  { %v6841_v26 = vpop.f32.mrf.mxu0  ;;  %v6889_v27 = vpop.f32.mrf.mxu1  ;;  %7010 = vmatprep.subr.bf16.mxu0 %v7203_v14  ;;  %v4134_v55 = vadd.f32 %v8124_v34, %v4133_v22  ;;  %7058 = vmatprep.subr.bf16.mxu1 %v7203_v14  ;;  %v4005_v8 = vmax.f32 %v3933_v32, 0.0  ;;  %v4214_v47 = vmax.f32 %v4142_v33, 0.0 }
 0x6a5   :  { %v3936_v29 = vadd.f32 %v6841_v26, %v8124_v34  ;;  %v4145_v30 = vadd.f32 %v6889_v27, %v8124_v34  ;;  %6930 = vmatprep.mubr.bf16.mxu0 %v4025_v23  ;;  %6978 = vmatprep.mubr.bf16.mxu1 %v4234_v49  ;;  %v4003_v43 = vmax.f32 %v3925_v52, 0.0 }
 0x6a6   :  { %v3927_v35 = vpop.f32.mrf.mxu0  ;;  %v4136_v36 = vpop.f32.mrf.mxu1  ;;  %6931 = vmatmul.mubr.bf16.gmra.mxu0 %v4026_v24  ;;  %6979 = vmatmul.mubr.bf16.gmra.mxu1 %v4235_v25  ;;  %v4212_v44 = vmax.f32 %v4134_v55, 0.0 }
 0x6a7   :  { %v3928_v37 = vadd.f32 %v8124_v34, %v3927_v35  ;;  %v4137_v38 = vadd.f32 %v8124_v34, %v4136_v36  ;;  %7011 = vmatpush3.bf16.msra.mxu0 %v7203_v14  ;;  %v4006_v39 = vmax.f32 %v3936_v29, 0.0  ;;  %v4215_v40 = vmax.f32 %v4145_v30, 0.0  ;;  %7059 = vmatpush3.bf16.msra.mxu1 %v7203_v14 }
 0x6a8   :  { %v6844_v41 = vpop.f32.mrf.mxu0  ;;  %v6892_v42 = vpop.f32.mrf.mxu1 }
 0x6a9   :  { %v4004_v45 = vmax.f32 %v3928_v37, 0.0  ;;  %v4213_v46 = vmax.f32 %v4137_v38, 0.0  ;;  %v4028_v53 = vpack.c.bf16 %v4006_v39, %v4005_v8  ;;  %v4237_v54 = vpack.c.bf16 %v4215_v40, %v4214_v47 }
 0x6aa   :  { %v3940_v48 = vpop.f32.mrf.mxu0  ;;  %v4149_v11 = vpop.f32.mrf.mxu1  ;;  %v3949_v62 = vadd.f32 %v6844_v41, %v8124_v34  ;;  %v4158_v63 = vadd.f32 %v6892_v42, %v8124_v34 }
 0x6ab   :  { %v4027_v50 = vpack.c.bf16 %v4004_v45, %v4003_v43  ;;  %v4236_v51 = vpack.c.bf16 %v4213_v46, %v4212_v44  ;;  %v3941_v56 = vadd.f32 %v8124_v34, %v3940_v48  ;;  %v4150_v59 = vadd.f32 %v8124_v34, %v4149_v11 }
 0x6ac   :  { %v6845_v57 = vpop.f32.mrf.mxu0  ;;  %v6893_v58 = vpop.f32.mrf.mxu1  ;;  %v4009_v12 = vmax.f32 %v3949_v62, 0.0  ;;  %v4218_v13 = vmax.f32 %v4158_v63, 0.0 }
 0x6ad   :  { %v3952_v60 = vadd.f32 %v6845_v57, %v8124_v34  ;;  %v4161_v61 = vadd.f32 %v6893_v58, %v8124_v34  ;;  %6934 = vmatprep.mubr.bf16.mxu0 %v4027_v50  ;;  %6982 = vmatprep.mubr.bf16.mxu1 %v4236_v51  ;;  %v4007_v6 = vmax.f32 %v3941_v56, 0.0  ;;  %v4216_v7 = vmax.f32 %v4150_v59, 0.0 }
 0x6ae   :  { %v3943_v0 = vpop.f32.mrf.mxu0  ;;  %v4152_v1 = vpop.f32.mrf.mxu1  ;;  %6935 = vmatmul.mubr.bf16.gmra.mxu0 %v4028_v53  ;;  %6983 = vmatmul.mubr.bf16.gmra.mxu1 %v4237_v54 }
 0x6af   :  { %v3944_v2 = vadd.f32 %v8124_v34, %v3943_v0  ;;  %v4153_v3 = vadd.f32 %v8124_v34, %v4152_v1  ;;  %v4010_v28 = vmax.f32 %v3952_v60, 0.0  ;;  %v4219_v4 = vmax.f32 %v4161_v61, 0.0 }
 0x6b0   :  { %v6848_v5 = vpop.f32.mrf.mxu0  ;;  %v6896_v31 = vpop.f32.mrf.mxu1 }
 0x6b1   :  { %v4008_v9 = vmax.f32 %v3944_v2, 0.0  ;;  %v4217_v10 = vmax.f32 %v4153_v3, 0.0  ;;  %v4030_v18 = vpack.c.bf16 %v4010_v28, %v4009_v12  ;;  %v4239_v19 = vpack.c.bf16 %v4219_v4, %v4218_v13  ;;  %v8193_v13 = vld [vmem:[%s8524_s2 + $0x8] ss:$0 sm:$0xff] }
 0x6b2   :  { %v3956_v14 = vpop.f32.mrf.mxu0  ;;  %v4165_v15 = vpop.f32.mrf.mxu1  ;;  %v3965_v25 = vadd.f32 %v6848_v5, %v8124_v34  ;;  %v4174_v52 = vadd.f32 %v6896_v31, %v8124_v34 }
 0x6b3   :  { %v4029_v16 = vpack.c.bf16 %v4008_v9, %v4007_v6  ;;  %v4238_v17 = vpack.c.bf16 %v4217_v10, %v4216_v7  ;;  %v3957_v20 = vadd.f32 %v8124_v34, %v3956_v14  ;;  %v4166_v23 = vadd.f32 %v8124_v34, %v4165_v15  ;;  %v7204_v7 = vld [vmem:[#allocation2 + $0x240] sm:$0xff]  }
 0x6b4   :  { %v6849_v21 = vpop.f32.mrf.mxu0  ;;  %v6897_v22 = vpop.f32.mrf.mxu1  ;;  %v4013_v40 = vmax.f32 %v3965_v25, 0.0  ;;  %v4222_v41 = vmax.f32 %v4174_v52, 0.0  ;;  %7012 = vmatprep.subr.bf16.mxu0 %v7204_v7  ;;  %7060 = vmatprep.subr.bf16.mxu1 %v7204_v7 }
 0x6b5   :  { %v3968_v49 = vadd.f32 %v6849_v21, %v8124_v34  ;;  %v4177_v24 = vadd.f32 %v6897_v22, %v8124_v34  ;;  %6938 = vmatprep.mubr.bf16.mxu0 %v4029_v16  ;;  %6986 = vmatprep.mubr.bf16.mxu1 %v4238_v17  ;;  %v4011_v36 = vmax.f32 %v3957_v20, 0.0  ;;  %v4220_v37 = vmax.f32 %v4166_v23, 0.0 }
 0x6b6   :  { %v3959_v26 = vpop.f32.mrf.mxu0  ;;  %v4168_v27 = vpop.f32.mrf.mxu1  ;;  %6939 = vmatmul.mubr.bf16.gmra.mxu0 %v4030_v18  ;;  %6987 = vmatmul.mubr.bf16.gmra.mxu1 %v4239_v19 }
 0x6b7   :  { %v3960_v55 = vadd.f32 %v8124_v34, %v3959_v26  ;;  %v4169_v29 = vadd.f32 %v8124_v34, %v4168_v27  ;;  %v4014_v30 = vmax.f32 %v3968_v49, 0.0  ;;  %v4223_v32 = vmax.f32 %v4177_v24, 0.0  ;;  %7013 = vmatpush3.bf16.msra.mxu0 %v7204_v7  ;;  %7061 = vmatpush3.bf16.msra.mxu1 %v7204_v7 }
 0x6b8   :  { %v6852_v33 = vpop.f32.mrf.mxu0  ;;  %v6900_v35 = vpop.f32.mrf.mxu1 }
 0x6b9   :  { %v4012_v38 = vmax.f32 %v3960_v55, 0.0  ;;  %v4221_v39 = vmax.f32 %v4169_v29, 0.0  ;;  %v4032_v46 = vpack.c.bf16 %v4014_v30, %v4013_v40  ;;  %v4241_v8 = vpack.c.bf16 %v4223_v32, %v4222_v41 }
 0x6ba   :  { %v3972_v42 = vpop.f32.mrf.mxu0  ;;  %v4181_v43 = vpop.f32.mrf.mxu1  ;;  %v3981_v54 = vadd.f32 %v6852_v33, %v8124_v34  ;;  %v4190_v56 = vadd.f32 %v6900_v35, %v8124_v34 }
 0x6bb   :  { %v4031_v44 = vpack.c.bf16 %v4012_v38, %v4011_v36  ;;  %v4240_v45 = vpack.c.bf16 %v4221_v39, %v4220_v37  ;;  %v3973_v47 = vadd.f32 %v8124_v34, %v3972_v42  ;;  %v4182_v50 = vadd.f32 %v8124_v34, %v4181_v43 }
 0x6bc   :  { %v6853_v48 = vpop.f32.mrf.mxu0  ;;  %v6901_v11 = vpop.f32.mrf.mxu1  ;;  %v4017_v3 = vmax.f32 %v3981_v54, 0.0  ;;  %v4226_v28 = vmax.f32 %v4190_v56, 0.0 }
 0x6bd   :  { %v3984_v51 = vadd.f32 %v6853_v48, %v8124_v34  ;;  %v4193_v53 = vadd.f32 %v6901_v11, %v8124_v34  ;;  %6942 = vmatprep.mubr.bf16.mxu0 %v4031_v44  ;;  %6990 = vmatprep.mubr.bf16.mxu1 %v4240_v45  ;;  %v4015_v63 = vmax.f32 %v3973_v47, 0.0  ;;  %v4224_v0 = vmax.f32 %v4182_v50, 0.0 }
 0x6be   :  { %v3975_v57 = vpop.f32.mrf.mxu0  ;;  %v4184_v58 = vpop.f32.mrf.mxu1  ;;  %6943 = vmatmul.mubr.bf16.gmra.mxu0 %v4032_v46  ;;  %6991 = vmatmul.mubr.bf16.gmra.mxu1 %v4241_v8 }
 0x6bf   :  { %v3976_v59 = vadd.f32 %v8124_v34, %v3975_v57  ;;  %v4185_v60 = vadd.f32 %v8124_v34, %v4184_v58  ;;  %v4018_v61 = vmax.f32 %v3984_v51, 0.0  ;;  %v4227_v62 = vmax.f32 %v4193_v53, 0.0 }
 0x6c1   :  { %v4016_v1 = vmax.f32 %v3976_v59, 0.0  ;;  %v4225_v2 = vmax.f32 %v4185_v60, 0.0  ;;  %v4034_v31 = vpack.c.bf16 %v4018_v61, %v4017_v3  ;;  %v4243_v6 = vpack.c.bf16 %v4227_v62, %v4226_v28 }
 0x6c3   :  { %v4033_v4 = vpack.c.bf16 %v4016_v1, %v4015_v63  ;;  %v4242_v5 = vpack.c.bf16 %v4225_v2, %v4224_v0 }
 0x6c5   :  { %6946 = vmatprep.mubr.bf16.mxu0 %v4033_v4  ;;  %6994 = vmatprep.mubr.bf16.mxu1 %v4242_v5 }
 0x6c6   :  { %6947 = vmatmul.mubr.bf16.gmra.mxu0 %v4034_v31  ;;  %6995 = vmatmul.mubr.bf16.gmra.mxu1 %v4243_v6 }
 0x74e   :  { %v6920_v34 = vpop.f32.mrf.mxu0  ;;  %v6968_v9 = vpop.f32.mrf.mxu1 }
 0x74f   :  { %v4360_v20 = vadd.f32 %v6920_v34, %v8193_v13  ;;  %v4569_v21 = vadd.f32 %v6968_v9, %v8193_v13 }
 0x750   :  { %v4351_v10 = vpop.f32.mrf.mxu0  ;;  %v4560_v12 = vpop.f32.mrf.mxu1 }
 0x751   :  { %v4352_v16 = vadd.f32 %v8193_v13, %v4351_v10  ;;  %v4561_v17 = vadd.f32 %v8193_v13, %v4560_v12  ;;  %v4480_v33 = vmax.f32 %v4360_v20, 0.0  ;;  %v4689_v35 = vmax.f32 %v4569_v21, 0.0 }
 0x752   :  { %v6921_v14 = vpop.f32.mrf.mxu0  ;;  %v6969_v15 = vpop.f32.mrf.mxu1 }
 0x753   :  { %v4363_v18 = vadd.f32 %v6921_v14, %v8193_v13  ;;  %v4572_v19 = vadd.f32 %v6969_v15, %v8193_v13  ;;  %v4478_v55 = vmax.f32 %v4352_v16, 0.0  ;;  %v4687_v29 = vmax.f32 %v4561_v17, 0.0 }
 0x754   :  { %v4354_v22 = vpop.f32.mrf.mxu0  ;;  %v4563_v23 = vpop.f32.mrf.mxu1 }
 0x755   :  { %v4355_v49 = vadd.f32 %v8193_v13, %v4354_v22  ;;  %v4564_v24 = vadd.f32 %v8193_v13, %v4563_v23  ;;  %v4481_v25 = vmax.f32 %v4363_v18, 0.0  ;;  %v4690_v52 = vmax.f32 %v4572_v19, 0.0 }
 0x756   :  { %v6924_v26 = vpop.f32.mrf.mxu0  ;;  %v6972_v27 = vpop.f32.mrf.mxu1 }
 0x757   :  { %v4479_v30 = vmax.f32 %v4355_v49, 0.0  ;;  %v4688_v32 = vmax.f32 %v4564_v24, 0.0  ;;  %v4511_v40 = vpack.c.bf16 %v4481_v25, %v4480_v33  ;;  %v4720_v41 = vpack.c.bf16 %v4690_v52, %v4689_v35 }
 0x758   :  { %v4367_v36 = vpop.f32.mrf.mxu0  ;;  %v4576_v37 = vpop.f32.mrf.mxu1  ;;  %v4376_v47 = vadd.f32 %v6924_v26, %v8193_v13  ;;  %v4585_v48 = vadd.f32 %v6972_v27, %v8193_v13 }
 0x759   :  { %v4510_v38 = vpack.c.bf16 %v4479_v30, %v4478_v55  ;;  %v4719_v39 = vpack.c.bf16 %v4688_v32, %v4687_v29  ;;  %v4368_v42 = vadd.f32 %v8193_v13, %v4367_v36  ;;  %v4577_v45 = vadd.f32 %v8193_v13, %v4576_v37 }
 0x75a   :  { %v6925_v43 = vpop.f32.mrf.mxu0  ;;  %v6973_v44 = vpop.f32.mrf.mxu1  ;;  %v4484_v63 = vmax.f32 %v4376_v47, 0.0  ;;  %v4693_v0 = vmax.f32 %v4585_v48, 0.0 }
 0x75b   :  { %v4379_v46 = vadd.f32 %v6925_v43, %v8193_v13  ;;  %v4588_v8 = vadd.f32 %v6973_v44, %v8193_v13  ;;  %7014 = vmatprep.mubr.bf16.mxu0 %v4510_v38  ;;  %7062 = vmatprep.mubr.bf16.mxu1 %v4719_v39  ;;  %v4482_v59 = vmax.f32 %v4368_v42, 0.0  ;;  %v4691_v60 = vmax.f32 %v4577_v45, 0.0 }
 0x75c   :  { %v4370_v11 = vpop.f32.mrf.mxu0  ;;  %v4579_v50 = vpop.f32.mrf.mxu1  ;;  %7015 = vmatmul.mubr.bf16.vlgmr.msra.gmra.mxu0 %v4511_v40  ;;  %7063 = vmatmul.mubr.bf16.vlgmr.msra.gmra.mxu1 %v4720_v41 }
 0x75d   :  { %v4371_v51 = vadd.f32 %v8193_v13, %v4370_v11  ;;  %v4580_v53 = vadd.f32 %v8193_v13, %v4579_v50  ;;  %v4485_v54 = vmax.f32 %v4379_v46, 0.0  ;;  %v4694_v56 = vmax.f32 %v4588_v8, 0.0 }
 0x75e   :  { %v6928_v57 = vpop.f32.mrf.mxu0  ;;  %v6976_v58 = vpop.f32.mrf.mxu1 }
 0x75f   :  { %v4483_v61 = vmax.f32 %v4371_v51, 0.0  ;;  %v4692_v62 = vmax.f32 %v4580_v53, 0.0  ;;  %v4513_v4 = vpack.c.bf16 %v4485_v54, %v4484_v63  ;;  %v4722_v5 = vpack.c.bf16 %v4694_v56, %v4693_v0 }
 0x760   :  { %v4383_v1 = vpop.f32.mrf.mxu0  ;;  %v4592_v2 = vpop.f32.mrf.mxu1  ;;  %v4392_v12 = vadd.f32 %v6928_v57, %v8193_v13  ;;  %v4601_v14 = vadd.f32 %v6976_v58, %v8193_v13 }
 0x761   :  { %v4512_v3 = vpack.c.bf16 %v4483_v61, %v4482_v59  ;;  %v4721_v28 = vpack.c.bf16 %v4692_v62, %v4691_v60  ;;  %v4384_v31 = vadd.f32 %v8193_v13, %v4383_v1  ;;  %v4593_v34 = vadd.f32 %v8193_v13, %v4592_v2 }
 0x762   :  { %v6929_v6 = vpop.f32.mrf.mxu0  ;;  %v6977_v7 = vpop.f32.mrf.mxu1  ;;  %v4488_v52 = vmax.f32 %v4392_v12, 0.0  ;;  %v4697_v26 = vmax.f32 %v4601_v14, 0.0 }
 0x763   :  { %v4395_v9 = vadd.f32 %v6929_v6, %v8193_v13  ;;  %v4604_v10 = vadd.f32 %v6977_v7, %v8193_v13  ;;  %7018 = vmatprep.mubr.bf16.mxu0 %v4512_v3  ;;  %7066 = vmatprep.mubr.bf16.mxu1 %v4721_v28  ;;  %v4486_v23 = vmax.f32 %v4384_v31, 0.0  ;;  %v4695_v49 = vmax.f32 %v4593_v34, 0.0 }
 0x764   :  { %v4386_v15 = vpop.f32.mrf.mxu0  ;;  %v4595_v16 = vpop.f32.mrf.mxu1  ;;  %7019 = vmatmul.mubr.bf16.gmra.mxu0 %v4513_v4  ;;  %7067 = vmatmul.mubr.bf16.gmra.mxu1 %v4722_v5 }
 0x765   :  { %v4387_v17 = vadd.f32 %v8193_v13, %v4386_v15  ;;  %v4596_v18 = vadd.f32 %v8193_v13, %v4595_v16  ;;  %v4489_v19 = vmax.f32 %v4395_v9, 0.0  ;;  %v4698_v20 = vmax.f32 %v4604_v10, 0.0 }
 0x766   :  { %v6932_v21 = vpop.f32.mrf.mxu0  ;;  %v6980_v22 = vpop.f32.mrf.mxu1 }
 0x767   :  { %v4487_v24 = vmax.f32 %v4387_v17, 0.0  ;;  %v4696_v25 = vmax.f32 %v4596_v18, 0.0  ;;  %v4515_v32 = vpack.c.bf16 %v4489_v19, %v4488_v52  ;;  %v4724_v33 = vpack.c.bf16 %v4698_v20, %v4697_v26 }
 0x768   :  { %v4399_v27 = vpop.f32.mrf.mxu0  ;;  %v4608_v55 = vpop.f32.mrf.mxu1  ;;  %v4408_v41 = vadd.f32 %v6932_v21, %v8193_v13  ;;  %v4617_v42 = vadd.f32 %v6980_v22, %v8193_v13 }
 0x769   :  { %v4514_v29 = vpack.c.bf16 %v4487_v24, %v4486_v23  ;;  %v4723_v30 = vpack.c.bf16 %v4696_v25, %v4695_v49  ;;  %v4400_v35 = vadd.f32 %v8193_v13, %v4399_v27  ;;  %v4609_v38 = vadd.f32 %v8193_v13, %v4608_v55 }
 0x76a   :  { %v6933_v36 = vpop.f32.mrf.mxu0  ;;  %v6981_v37 = vpop.f32.mrf.mxu1  ;;  %v4492_v56 = vmax.f32 %v4408_v41, 0.0  ;;  %v4701_v57 = vmax.f32 %v4617_v42, 0.0 }
 0x76b   :  { %v4411_v39 = vadd.f32 %v6933_v36, %v8193_v13  ;;  %v4620_v40 = vadd.f32 %v6981_v37, %v8193_v13  ;;  %7022 = vmatprep.mubr.bf16.mxu0 %v4514_v29  ;;  %7070 = vmatprep.mubr.bf16.mxu1 %v4723_v30  ;;  %v4490_v50 = vmax.f32 %v4400_v35, 0.0  ;;  %v4699_v51 = vmax.f32 %v4609_v38, 0.0 }
 0x76c   :  { %v4402_v43 = vpop.f32.mrf.mxu0  ;;  %v4611_v44 = vpop.f32.mrf.mxu1  ;;  %7023 = vmatmul.mubr.bf16.gmra.mxu0 %v4515_v32  ;;  %7071 = vmatmul.mubr.bf16.gmra.mxu1 %v4724_v33 }
 0x76d   :  { %v4403_v45 = vadd.f32 %v8193_v13, %v4402_v43  ;;  %v4612_v46 = vadd.f32 %v8193_v13, %v4611_v44  ;;  %v4493_v8 = vmax.f32 %v4411_v39, 0.0  ;;  %v4702_v47 = vmax.f32 %v4620_v40, 0.0 }
 0x76e   :  { %v6936_v48 = vpop.f32.mrf.mxu0  ;;  %v6984_v11 = vpop.f32.mrf.mxu1 }
 0x76f   :  { %v4491_v53 = vmax.f32 %v4403_v45, 0.0  ;;  %v4700_v54 = vmax.f32 %v4612_v46, 0.0  ;;  %v4517_v62 = vpack.c.bf16 %v4493_v8, %v4492_v56  ;;  %v4726_v63 = vpack.c.bf16 %v4702_v47, %v4701_v57 }
 0x770   :  { %v4415_v58 = vpop.f32.mrf.mxu0  ;;  %v4624_v59 = vpop.f32.mrf.mxu1  ;;  %v4424_v5 = vadd.f32 %v6936_v48, %v8193_v13  ;;  %v4633_v31 = vadd.f32 %v6984_v11, %v8193_v13 }
 0x771   :  { %v4516_v60 = vpack.c.bf16 %v4491_v53, %v4490_v50  ;;  %v4725_v61 = vpack.c.bf16 %v4700_v54, %v4699_v51  ;;  %v4416_v0 = vadd.f32 %v8193_v13, %v4415_v58  ;;  %v4625_v3 = vadd.f32 %v8193_v13, %v4624_v59 }
 0x772   :  { %v6937_v1 = vpop.f32.mrf.mxu0  ;;  %v6985_v2 = vpop.f32.mrf.mxu1  ;;  %v4496_v20 = vmax.f32 %v4424_v5, 0.0  ;;  %v4705_v21 = vmax.f32 %v4633_v31, 0.0 }
 0x773   :  { %v4427_v28 = vadd.f32 %v6937_v1, %v8193_v13  ;;  %v4636_v4 = vadd.f32 %v6985_v2, %v8193_v13  ;;  %7026 = vmatprep.mubr.bf16.mxu0 %v4516_v60  ;;  %7074 = vmatprep.mubr.bf16.mxu1 %v4725_v61  ;;  %v4494_v16 = vmax.f32 %v4416_v0, 0.0  ;;  %v4703_v17 = vmax.f32 %v4625_v3, 0.0 }
 0x774   :  { %v4418_v6 = vpop.f32.mrf.mxu0  ;;  %v4627_v7 = vpop.f32.mrf.mxu1  ;;  %7027 = vmatmul.mubr.bf16.gmra.mxu0 %v4517_v62  ;;  %7075 = vmatmul.mubr.bf16.gmra.mxu1 %v4726_v63 }
 0x775   :  { %v4419_v34 = vadd.f32 %v8193_v13, %v4418_v6  ;;  %v4628_v9 = vadd.f32 %v8193_v13, %v4627_v7  ;;  %v4497_v10 = vmax.f32 %v4427_v28, 0.0  ;;  %v4706_v12 = vmax.f32 %v4636_v4, 0.0 }
 0x776   :  { %v6940_v14 = vpop.f32.mrf.mxu0  ;;  %v6988_v15 = vpop.f32.mrf.mxu1 }
 0x777   :  { %v4495_v18 = vmax.f32 %v4419_v34, 0.0  ;;  %v4704_v19 = vmax.f32 %v4628_v9, 0.0  ;;  %v4519_v25 = vpack.c.bf16 %v4497_v10, %v4496_v20  ;;  %v4728_v52 = vpack.c.bf16 %v4706_v12, %v4705_v21 }
 0x778   :  { %v4431_v22 = vpop.f32.mrf.mxu0  ;;  %v4640_v23 = vpop.f32.mrf.mxu1  ;;  %v4440_v33 = vadd.f32 %v6940_v14, %v8193_v13  ;;  %v4649_v35 = vadd.f32 %v6988_v15, %v8193_v13 }
 0x779   :  { %v4518_v49 = vpack.c.bf16 %v4495_v18, %v4494_v16  ;;  %v4727_v24 = vpack.c.bf16 %v4704_v19, %v4703_v17  ;;  %v4432_v26 = vadd.f32 %v8193_v13, %v4431_v22  ;;  %v4641_v29 = vadd.f32 %v8193_v13, %v4640_v23 }
 0x77a   :  { %v6941_v27 = vpop.f32.mrf.mxu0  ;;  %v6989_v55 = vpop.f32.mrf.mxu1  ;;  %v4500_v47 = vmax.f32 %v4440_v33, 0.0  ;;  %v4709_v48 = vmax.f32 %v4649_v35, 0.0 }
 0x77b   :  { %v4443_v30 = vadd.f32 %v6941_v27, %v8193_v13  ;;  %v4652_v32 = vadd.f32 %v6989_v55, %v8193_v13  ;;  %7030 = vmatprep.mubr.bf16.mxu0 %v4518_v49  ;;  %7078 = vmatprep.mubr.bf16.mxu1 %v4727_v24  ;;  %v4498_v44 = vmax.f32 %v4432_v26, 0.0  ;;  %v4707_v45 = vmax.f32 %v4641_v29, 0.0 }
 0x77c   :  { %v4434_v36 = vpop.f32.mrf.mxu0  ;;  %v4643_v37 = vpop.f32.mrf.mxu1  ;;  %7031 = vmatmul.mubr.bf16.gmra.mxu0 %v4519_v25  ;;  %7079 = vmatmul.mubr.bf16.gmra.mxu1 %v4728_v52 }
 0x77d   :  { %v4435_v38 = vadd.f32 %v8193_v13, %v4434_v36  ;;  %v4644_v39 = vadd.f32 %v8193_v13, %v4643_v37  ;;  %v4501_v40 = vmax.f32 %v4443_v30, 0.0  ;;  %v4710_v41 = vmax.f32 %v4652_v32, 0.0 }
 0x77e   :  { %v6944_v42 = vpop.f32.mrf.mxu0  ;;  %v6992_v43 = vpop.f32.mrf.mxu1 }
 0x77f   :  { %v4499_v46 = vmax.f32 %v4435_v38, 0.0  ;;  %v4708_v8 = vmax.f32 %v4644_v39, 0.0  ;;  %v4521_v54 = vpack.c.bf16 %v4501_v40, %v4500_v47  ;;  %v4730_v56 = vpack.c.bf16 %v4710_v41, %v4709_v48 }
 0x780   :  { %v4447_v11 = vpop.f32.mrf.mxu0  ;;  %v4656_v50 = vpop.f32.mrf.mxu1  ;;  %v4456_v63 = vadd.f32 %v6944_v42, %v8193_v13  ;;  %v4665_v0 = vadd.f32 %v6992_v43, %v8193_v13 }
 0x781   :  { %v4520_v51 = vpack.c.bf16 %v4499_v46, %v4498_v44  ;;  %v4729_v53 = vpack.c.bf16 %v4708_v8, %v4707_v45  ;;  %v4448_v57 = vadd.f32 %v8193_v13, %v4447_v11  ;;  %v4657_v60 = vadd.f32 %v8193_v13, %v4656_v50 }
 0x782   :  { %v6945_v58 = vpop.f32.mrf.mxu0  ;;  %v6993_v59 = vpop.f32.mrf.mxu1  ;;  %v4504_v12 = vmax.f32 %v4456_v63, 0.0  ;;  %v4713_v14 = vmax.f32 %v4665_v0, 0.0 }
 0x783   :  { %v4459_v61 = vadd.f32 %v6945_v58, %v8193_v13  ;;  %v4668_v62 = vadd.f32 %v6993_v59, %v8193_v13  ;;  %7034 = vmatprep.mubr.bf16.mxu0 %v4520_v51  ;;  %7082 = vmatprep.mubr.bf16.mxu1 %v4729_v53  ;;  %v4502_v7 = vmax.f32 %v4448_v57, 0.0  ;;  %v4711_v34 = vmax.f32 %v4657_v60, 0.0 }
 0x784   :  { %v4450_v1 = vpop.f32.mrf.mxu0  ;;  %v4659_v2 = vpop.f32.mrf.mxu1  ;;  %7035 = vmatmul.mubr.bf16.gmra.mxu0 %v4521_v54  ;;  %7083 = vmatmul.mubr.bf16.gmra.mxu1 %v4730_v56 }
 0x785   :  { %v4451_v3 = vadd.f32 %v8193_v13, %v4450_v1  ;;  %v4660_v28 = vadd.f32 %v8193_v13, %v4659_v2  ;;  %v4505_v4 = vmax.f32 %v4459_v61, 0.0  ;;  %v4714_v5 = vmax.f32 %v4668_v62, 0.0 }
 0x786   :  { %v6948_v31 = vpop.f32.mrf.mxu0  ;;  %v6996_v6 = vpop.f32.mrf.mxu1 }
 0x787   :  { %v4503_v9 = vmax.f32 %v4451_v3, 0.0  ;;  %v4712_v10 = vmax.f32 %v4660_v28, 0.0  ;;  %v4523_v19 = vpack.c.bf16 %v4505_v4, %v4504_v12  ;;  %v4732_v20 = vpack.c.bf16 %v4714_v5, %v4713_v14 }
 0x788   :  { %v4463_v15 = vpop.f32.mrf.mxu0  ;;  %v4672_v16 = vpop.f32.mrf.mxu1  ;;  %v4472_v52 = vadd.f32 %v6948_v31, %v8193_v13  ;;  %v4681_v26 = vadd.f32 %v6996_v6, %v8193_v13 }
 0x789   :  { %v4522_v17 = vpack.c.bf16 %v4503_v9, %v4502_v7  ;;  %v4731_v18 = vpack.c.bf16 %v4712_v10, %v4711_v34  ;;  %v4464_v21 = vadd.f32 %v8193_v13, %v4463_v15  ;;  %v4673_v49 = vadd.f32 %v8193_v13, %v4672_v16 }
 0x78a   :  { %v6949_v22 = vpop.f32.mrf.mxu0  ;;  %v6997_v23 = vpop.f32.mrf.mxu1  ;;  %v4508_v39 = vmax.f32 %v4472_v52, 0.0  ;;  %v4717_v40 = vmax.f32 %v4681_v26, 0.0 }
 0x78b   :  { %v4475_v24 = vadd.f32 %v6949_v22, %v8193_v13  ;;  %v4684_v25 = vadd.f32 %v6997_v23, %v8193_v13  ;;  %7038 = vmatprep.mubr.bf16.mxu0 %v4522_v17  ;;  %7086 = vmatprep.mubr.bf16.mxu1 %v4731_v18  ;;  %v4506_v35 = vmax.f32 %v4464_v21, 0.0  ;;  %v4715_v36 = vmax.f32 %v4673_v49, 0.0 }
 0x78c   :  { %v4466_v27 = vpop.f32.mrf.mxu0  ;;  %v4675_v55 = vpop.f32.mrf.mxu1  ;;  %7039 = vmatmul.mubr.bf16.gmra.mxu0 %v4523_v19  ;;  %7087 = vmatmul.mubr.bf16.gmra.mxu1 %v4732_v20 }
 0x78d   :  { %v4467_v29 = vadd.f32 %v8193_v13, %v4466_v27  ;;  %v4676_v30 = vadd.f32 %v8193_v13, %v4675_v55  ;;  %v4509_v32 = vmax.f32 %v4475_v24, 0.0  ;;  %v4718_v33 = vmax.f32 %v4684_v25, 0.0  ;;  %v8262_v13 = vld [vmem:[%s8524_s2 + $0x9] ss:$0 sm:$0xff] }
 0x78f   :  { %v4507_v37 = vmax.f32 %v4467_v29, 0.0  ;;  %v4716_v38 = vmax.f32 %v4676_v30, 0.0  ;;  %v4525_v43 = vpack.c.bf16 %v4509_v32, %v4508_v39  ;;  %v4734_v44 = vpack.c.bf16 %v4718_v33, %v4717_v40 }
 0x791   :  { %v4524_v41 = vpack.c.bf16 %v4507_v37, %v4506_v35  ;;  %v4733_v42 = vpack.c.bf16 %v4716_v38, %v4715_v36 }
 0x793   :  { %7042 = vmatprep.mubr.bf16.mxu0 %v4524_v41  ;;  %7090 = vmatprep.mubr.bf16.mxu1 %v4733_v42 }
 0x794   :  { %7043 = vmatmul.mubr.bf16.gmra.mxu0 %v4525_v43  ;;  %7091 = vmatmul.mubr.bf16.gmra.mxu1 %v4734_v44 }
 0x81c   :  { %v7016_v45 = vpop.f32.mrf.mxu0  ;;  %v7064_v46 = vpop.f32.mrf.mxu1 }
 0x81d   :  { %v4851_v8 = vadd.f32 %v7016_v45, %v8262_v13  ;;  %v5172_v47 = vadd.f32 %v7064_v46, %v8262_v13 }
 0x81e   :  { %v4842_v48 = vpop.f32.mrf.mxu0  ;;  %v5163_v11 = vpop.f32.mrf.mxu1 }
 0x81f   :  { %v4971_v50 = vsub.f32 0.0, %v4851_v8  ;;  %v5292_v51 = vsub.f32 0.0, %v5172_v47  ;;  %v4843_v53 = vadd.f32 %v8262_v13, %v4842_v48  ;;  %v5164_v54 = vadd.f32 %v8262_v13, %v5163_v11 }
 0x820   :  { %v7017_v56 = vpop.f32.mrf.mxu0  ;;  %v7065_v57 = vpop.f32.mrf.mxu1 }
 0x821   :  { %v5005_v58 = vmul.f32 1.442695, %v4971_v50  ;;  %v5326_v59 = vmul.f32 1.442695, %v5292_v51  ;;  %v4969_v60 = vsub.f32 0.0, %v4843_v53  ;;  %v5290_v61 = vsub.f32 0.0, %v5164_v54 }
 0x822   :  { %v4854_v62 = vadd.f32 %v7017_v56, %v8262_v13  ;;  %v5175_v63 = vadd.f32 %v7065_v57, %v8262_v13  ;;  %v4845_v0 = vpop.f32.mrf.mxu0  ;;  %v5166_v1 = vpop.f32.mrf.mxu1 }
 0x823   :  { %7205 = vpow2.f32 %v5005_v58  ;;  %v5001_v2 = vmul.f32 1.442695, %v4969_v60  ;;  %v5322_v3 = vmul.f32 1.442695, %v5290_v61  ;;  %v4846_v28 = vadd.f32 %v8262_v13, %v4845_v0 }
 0x824   :  { %7207 = vpow2.f32 %v5326_v59  ;;  %v4972_v4 = vsub.f32 0.0, %v4854_v62  ;;  %v5293_v5 = vsub.f32 0.0, %v5175_v63  ;;  %v5167_v31 = vadd.f32 %v8262_v13, %v5166_v1  ;;  %v7020_v6 = vpop.f32.mrf.mxu0  ;;  %v7068_v7 = vpop.f32.mrf.mxu1 }
 0x825   :  { %7209 = vpow2.f32 %v5001_v2  ;;  %v4970_v34 = vsub.f32 0.0, %v4846_v28  ;;  %v4867_v9 = vadd.f32 %v7020_v6, %v8262_v13  ;;  %v5188_v10 = vadd.f32 %v7068_v7, %v8262_v13 }
 0x826   :  { %7211 = vpow2.f32 %v5322_v3  ;;  %v5007_v12 = vmul.f32 1.442695, %v4972_v4  ;;  %v5328_v14 = vmul.f32 1.442695, %v5293_v5  ;;  %v5291_v15 = vsub.f32 0.0, %v5167_v31  ;;  %v4858_v16 = vpop.f32.mrf.mxu0  ;;  %v5179_v17 = vpop.f32.mrf.mxu1 }
 0x827   :  { %v5003_v18 = vmul.f32 1.442695, %v4970_v34  ;;  %v4975_v19 = vsub.f32 0.0, %v4867_v9  ;;  %v5296_v20 = vsub.f32 0.0, %v5188_v10  ;;  %v4859_v21 = vadd.f32 %v8262_v13, %v4858_v16 }
 0x828   :  { %7213 = vpow2.f32 %v5007_v12  ;;  %v5324_v22 = vmul.f32 1.442695, %v5291_v15  ;;  %v5180_v23 = vadd.f32 %v8262_v13, %v5179_v17  ;;  %v7021_v49 = vpop.f32.mrf.mxu0  ;;  %v7069_v24 = vpop.f32.mrf.mxu1 }
 0x829   :  { %7215 = vpow2.f32 %v5328_v14  ;;  %v5013_v25 = vmul.f32 1.442695, %v4975_v19  ;;  %v5334_v52 = vmul.f32 1.442695, %v5296_v20  ;;  %v4973_v26 = vsub.f32 0.0, %v4859_v21 }
 0x82a   :  { %7217 = vpow2.f32 %v5003_v18  ;;  %v5294_v27 = vsub.f32 0.0, %v5180_v23  ;;  %v4870_v55 = vadd.f32 %v7021_v49, %v8262_v13  ;;  %v5191_v29 = vadd.f32 %v7069_v24, %v8262_v13  ;;  %v4861_v30 = vpop.f32.mrf.mxu0  ;;  %v5182_v32 = vpop.f32.mrf.mxu1 }
 0x82b   :  { %7219 = vpow2.f32 %v5324_v22  ;;  %v5009_v33 = vmul.f32 1.442695, %v4973_v26  ;;  %v4862_v35 = vadd.f32 %v8262_v13, %v4861_v30  ;;  %v5183_v36 = vadd.f32 %v8262_v13, %v5182_v32 }
 0x82c   :  { %7221 = vpow2.f32 %v5013_v25  ;;  %v5330_v37 = vmul.f32 1.442695, %v5294_v27  ;;  %v4976_v38 = vsub.f32 0.0, %v4870_v55  ;;  %v5297_v39 = vsub.f32 0.0, %v5191_v29  ;;  %v7024_v40 = vpop.f32.mrf.mxu0  ;;  %v7072_v41 = vpop.f32.mrf.mxu1 }
 0x82d   :  { %7223 = vpow2.f32 %v5334_v52  ;;  %v4974_v42 = vsub.f32 0.0, %v4862_v35  ;;  %v5295_v47 = vsub.f32 0.0, %v5183_v36  ;;  %v4883_v62 = vadd.f32 %v7024_v40, %v8262_v13 }
 0x82e   :  { %7225 = vpow2.f32 %v5009_v33  ;;  %v5015_v43 = vmul.f32 1.442695, %v4976_v38  ;;  %v5336_v44 = vmul.f32 1.442695, %v5297_v39  ;;  %v4874_v45 = vpop.f32.mrf.mxu0  ;;  %v5195_v46 = vpop.f32.mrf.mxu1  ;;  %v5204_v0 = vadd.f32 %v7072_v41, %v8262_v13 }
 0x82f   :  { %7227 = vpow2.f32 %v5330_v37  ;;  %v5011_v8 = vmul.f32 1.442695, %v4974_v42  ;;  %v5332_v59 = vmul.f32 1.442695, %v5295_v47  ;;  %v4979_v7 = vsub.f32 0.0, %v4883_v62 }
 0x830   :  { %v7206_v48 = vpop.eup %7205  ;;  %7229 = vpow2.f32 %v5015_v43  ;;  %v7025_v11 = vpop.f32.mrf.mxu0  ;;  %v5300_v10 = vsub.f32 0.0, %v5204_v0  ;;  %v4875_v12 = vadd.f32 %v8262_v13, %v4874_v45  ;;  %v5196_v16 = vadd.f32 %v8262_v13, %v5195_v46 }
 0x831   :  { %v7208_v50 = vpop.eup %7207  ;;  %v5067_v51 = vadd.f32 1.0, %v7206_v48  ;;  %7231 = vpow2.f32 %v5336_v44  ;;  %v7073_v56 = vpop.f32.mrf.mxu1  ;;  %v4886_v20 = vadd.f32 %v7025_v11, %v8262_v13  ;;  %v5021_v49 = vmul.f32 1.442695, %v4979_v7 }
 0x832   :  { %v7210_v53 = vpop.eup %7209  ;;  %v5388_v54 = vadd.f32 1.0, %v7208_v50  ;;  %7233 = vpow2.f32 %v5011_v8  ;;  %v4877_v60 = vpop.f32.mrf.mxu0  ;;  %v5207_v24 = vadd.f32 %v7073_v56, %v8262_v13  ;;  %v5342_v26 = vmul.f32 1.442695, %v5300_v10 }
 0x833   :  { %v7212_v57 = vpop.eup %7211  ;;  %7235 = vrcp.f32 %v5067_v51  ;;  %v5065_v58 = vadd.f32 1.0, %v7210_v53  ;;  %v5198_v3 = vpop.f32.mrf.mxu1  ;;  %v4977_v27 = vsub.f32 0.0, %v4875_v12  ;;  %v5298_v30 = vsub.f32 0.0, %v5196_v16 }
 0x834   :  { %7237 = vrcp.f32 %v5388_v54  ;;  %v5386_v61 = vadd.f32 1.0, %v7212_v57  ;;  %v7028_v5 = vpop.f32.mrf.mxu0  ;;  %v4878_v32 = vadd.f32 %v8262_v13, %v4877_v60  ;;  %v4980_v37 = vsub.f32 0.0, %v4886_v20 }
 0x835   :  { %v7214_v63 = vpop.eup %7213  ;;  %7239 = vrcp.f32 %v5065_v58  ;;  %v7076_v17 = vpop.f32.mrf.mxu1  ;;  %v5199_v38 = vadd.f32 %v8262_v13, %v5198_v3  ;;  %v5301_v42 = vsub.f32 0.0, %v5207_v24  ;;  %v4899_v43 = vadd.f32 %v7028_v5, %v8262_v13 }
 0x836   :  { %v7216_v1 = vpop.eup %7215  ;;  %7241 = vrcp.f32 %v5386_v61  ;;  %v5068_v2 = vadd.f32 1.0, %v7214_v63  ;;  %v4890_v21 = vpop.f32.mrf.mxu0  ;;  %v5017_v45 = vmul.f32 1.442695, %v4977_v27  ;;  %v5220_v46 = vadd.f32 %v7076_v17, %v8262_v13 }
 0x837   :  { %v7218_v28 = vpop.eup %7217  ;;  %v5389_v4 = vadd.f32 1.0, %v7216_v1  ;;  %7243 = vpow2.f32 %v5332_v59  ;;  %v5211_v33 = vpop.f32.mrf.mxu1  ;;  %v5338_v47 = vmul.f32 1.442695, %v5298_v30  ;;  %v4978_v48 = vsub.f32 0.0, %v4878_v32 }
 0x838   :  { %v7220_v31 = vpop.eup %7219  ;;  %7245 = vrcp.f32 %v5068_v2  ;;  %v5066_v6 = vadd.f32 1.0, %v7218_v28  ;;  %v7029_v39 = vpop.f32.mrf.mxu0  ;;  %v4891_v11 = vadd.f32 %v8262_v13, %v4890_v21  ;;  %v5023_v53 = vmul.f32 1.442695, %v4980_v37 }
 0x839   :  { %v7222_v34 = vpop.eup %7221  ;;  %7247 = vrcp.f32 %v5389_v4  ;;  %v5387_v9 = vadd.f32 1.0, %v7220_v31  ;;  %v7077_v50 = vpop.f32.mrf.mxu1  ;;  %v5299_v54 = vsub.f32 0.0, %v5199_v38  ;;  %v5212_v56 = vadd.f32 %v8262_v13, %v5211_v33 }
 0x83a   :  { %v7224_v14 = vpop.eup %7223  ;;  %7249 = vrcp.f32 %v5066_v6  ;;  %v5071_v15 = vadd.f32 1.0, %v7222_v34  ;;  %v4893_v57 = vpop.f32.mrf.mxu0  ;;  %v5344_v59 = vmul.f32 1.442695, %v5301_v42  ;;  %v4983_v60 = vsub.f32 0.0, %v4899_v43 }
 0x83b   :  { %v7226_v18 = vpop.eup %7225  ;;  %7251 = vrcp.f32 %v5387_v9  ;;  %v5392_v19 = vadd.f32 1.0, %v7224_v14  ;;  %v4902_v61 = vadd.f32 %v7029_v39, %v8262_v13  ;;  %v5304_v0 = vsub.f32 0.0, %v5220_v46  ;;  %v5214_v5 = vpop.f32.mrf.mxu1 }
 0x83c   :  { %v7228_v22 = vpop.eup %7227  ;;  %7253 = vrcp.f32 %v5071_v15  ;;  %v5069_v23 = vadd.f32 1.0, %v7226_v18  ;;  %v5223_v1 = vadd.f32 %v7077_v50, %v8262_v13  ;;  %v5019_v3 = vmul.f32 1.442695, %v4978_v48  ;;  %v7032_v34 = vpop.f32.mrf.mxu0 }
 0x83d   :  { %v7230_v25 = vpop.eup %7229  ;;  %7255 = vrcp.f32 %v5392_v19  ;;  %v5390_v52 = vadd.f32 1.0, %v7228_v22  ;;  %v4981_v28 = vsub.f32 0.0, %v4891_v11  ;;  %v4894_v4 = vadd.f32 %v8262_v13, %v4893_v57  ;;  %v7080_v20 = vpop.f32.mrf.mxu1 }
 0x83e   :  { %v7232_v55 = vpop.eup %7231  ;;  %7257 = vrcp.f32 %v5069_v23  ;;  %v5072_v29 = vadd.f32 1.0, %v7230_v25  ;;  %v5340_v6 = vmul.f32 1.442695, %v5299_v54  ;;  %v5302_v7 = vsub.f32 0.0, %v5212_v56 }
 0x83f   :  { %v7234_v35 = vpop.eup %7233  ;;  %7259 = vrcp.f32 %v5390_v52  ;;  %v5393_v36 = vadd.f32 1.0, %v7232_v55  ;;  %v5029_v10 = vmul.f32 1.442695, %v4983_v60  ;;  %v4984_v12 = vsub.f32 0.0, %v4902_v61 }
 0x840   :  { %v7236_v40 = vpop.eup %7235  ;;  %7261 = vrcp.f32 %v5072_v29  ;;  %v5070_v41 = vadd.f32 1.0, %v7234_v35  ;;  %v5350_v15 = vmul.f32 1.442695, %v5304_v0  ;;  %v5305_v16 = vsub.f32 0.0, %v5223_v1  ;;  %v5227_v29 = vpop.f32.mrf.mxu1 }
 0x841   :  { %v7238_v44 = vpop.eup %7237  ;;  %5452 = vst [vmem:[%s8525_s3 + $0x10] sm:$0xff] %v7236_v40  ;;  %7263 = vrcp.f32 %v5393_v36  ;;  %v5025_v18 = vmul.f32 1.442695, %v4981_v28  ;;  %v4982_v19 = vsub.f32 0.0, %v4894_v4  ;;  %v5346_v22 = vmul.f32 1.442695, %v5302_v7 }
 0x842   :  { %v7240_v8 = vpop.eup %7239  ;;  %5484 = vst [vmem:[%s8525_s3 + $0x110] sm:$0xff] %v7238_v44  ;;  %7265 = vrcp.f32 %v5070_v41  ;;  %v5215_v23 = vadd.f32 %v8262_v13, %v5214_v5  ;;  %v5031_v25 = vmul.f32 1.442695, %v4984_v12  ;;  %v7081_v40 = vpop.f32.mrf.mxu1  ;;  %v5236_v48 = vadd.f32 %v7080_v20, %v8262_v13 }
 0x843   :  { %v7242_v51 = vpop.eup %7241  ;;  %5450 = vst [vmem:[%s8525_s3] sm:$0xff] %v7240_v8  ;;  %7267 = vpow2.f32 %v5021_v49  ;;  %v4906_v49 = vpop.f32.mrf.mxu0  ;;  %v5027_v55 = vmul.f32 1.442695, %v4982_v19  ;;  %v4915_v8 = vadd.f32 %v7032_v34, %v8262_v13 }
 0x844   :  { %v7244_v58 = vpop.eup %7243  ;;  %5482 = vst [vmem:[%s8525_s3 + $0x100] sm:$0xff] %v7242_v51  ;;  %7269 = vpow2.f32 %v5342_v26  ;;  %v5352_v26 = vmul.f32 1.442695, %v5305_v16  ;;  %v5303_v32 = vsub.f32 0.0, %v5215_v23  ;;  %v5230_v51 = vpop.f32.mrf.mxu1 }
 0x845   :  { %v7246_v62 = vpop.eup %7245  ;;  %v5391_v63 = vadd.f32 1.0, %v7244_v58  ;;  %7271 = vpow2.f32 %v5017_v45  ;;  %v7033_v33 = vpop.f32.mrf.mxu0 }
 0x846   :  { %v7248_v2 = vpop.eup %7247  ;;  %5453 = vst [vmem:[%s8525_s3 + $0x18] sm:$0xff] %v7246_v62  ;;  %7273 = vpow2.f32 %v5338_v47  ;;  %v5348_v43 = vmul.f32 1.442695, %v5303_v32  ;;  %v5308_v62 = vsub.f32 0.0, %v5236_v48  ;;  %v4918_v5 = vadd.f32 %v7033_v33, %v8262_v13 }
 0x847   :  { %v7250_v31 = vpop.eup %7249  ;;  %5485 = vst [vmem:[%s8525_s3 + $0x118] sm:$0xff] %v7248_v2  ;;  %7275 = vrcp.f32 %v5391_v63  ;;  %v4909_v44 = vpop.f32.mrf.mxu0  ;;  %v4907_v63 = vadd.f32 %v8262_v13, %v4906_v49  ;;  %v5228_v2 = vadd.f32 %v8262_v13, %v5227_v29  ;;  %v5231_v49 = vadd.f32 %v8262_v13, %v5230_v51 }
 0x848   :  { %v7252_v9 = vpop.eup %7251  ;;  %5451 = vst [vmem:[%s8525_s3 + $0x8] sm:$0xff] %v7250_v31  ;;  %7277 = vpow2.f32 %v5023_v53  ;;  %v4910_v19 = vadd.f32 %v8262_v13, %v4909_v44  ;;  %v4988_v23 = vsub.f32 0.0, %v4918_v5 }
 0x849   :  { %v7254_v14 = vpop.eup %7253  ;;  %5483 = vst [vmem:[%s8525_s3 + $0x108] sm:$0xff] %v7252_v9  ;;  %7279 = vpow2.f32 %v5344_v59  ;;  %v7036_v56 = vpop.f32.mrf.mxu0  ;;  %v4987_v59 = vsub.f32 0.0, %v4915_v8  ;;  %v5239_v9 = vadd.f32 %v7081_v40, %v8262_v13  ;;  %v5307_v40 = vsub.f32 0.0, %v5231_v49 }
 0x84a   :  { %v7256_v17 = vpop.eup %7255  ;;  %5456 = vst [vmem:[%s8525_s3 + $0x30] sm:$0xff] %v7254_v14  ;;  %7281 = vpow2.f32 %v5019_v3  ;;  %v7084_v3 = vpop.f32.mrf.mxu1  ;;  %v5358_v14 = vmul.f32 1.442695, %v5308_v62 }
 0x84b   :  { %v7258_v21 = vpop.eup %7257  ;;  %5488 = vst [vmem:[%s8525_s3 + $0x130] sm:$0xff] %v7256_v17  ;;  %7283 = vpow2.f32 %v5340_v6  ;;  %v4922_v31 = vpop.f32.mrf.mxu0  ;;  %v5037_v34 = vmul.f32 1.442695, %v4987_v59 }
 0x84c   :  { %v7260_v24 = vpop.eup %7259  ;;  %5454 = vst [vmem:[%s8525_s3 + $0x20] sm:$0xff] %v7258_v21  ;;  %7285 = vpow2.f32 %v5029_v10  ;;  %v5243_v20 = vpop.f32.mrf.mxu1 }
 0x84d   :  { %v7262_v52 = vpop.eup %7261  ;;  %5486 = vst [vmem:[%s8525_s3 + $0x120] sm:$0xff] %v7260_v24  ;;  %7287 = vpow2.f32 %v5350_v15  ;;  %v4985_v15 = vsub.f32 0.0, %v4907_v63  ;;  %v7037_v24 = vpop.f32.mrf.mxu0 }
 0x84e   :  { %v7264_v27 = vpop.eup %7263  ;;  %5457 = vst [vmem:[%s8525_s3 + $0x38] sm:$0xff] %v7262_v52  ;;  %7289 = vpow2.f32 %v5025_v18  ;;  %v5306_v18 = vsub.f32 0.0, %v5228_v2 }
 0x84f   :  { %v7266_v30 = vpop.eup %7265  ;;  %5489 = vst [vmem:[%s8525_s3 + $0x138] sm:$0xff] %v7264_v27  ;;  %7291 = vpow2.f32 %v5346_v22  ;;  %v4931_v27 = vadd.f32 %v7036_v56, %v8262_v13  ;;  %v5033_v29 = vmul.f32 1.442695, %v4985_v15 }
 0x850   :  { %v7268_v35 = vpop.eup %7267  ;;  %5455 = vst [vmem:[%s8525_s3 + $0x28] sm:$0xff] %v7266_v30  ;;  %7293 = vpow2.f32 %v5031_v25  ;;  %v5252_v30 = vadd.f32 %v7084_v3, %v8262_v13  ;;  %v5354_v33 = vmul.f32 1.442695, %v5306_v18 }
 0x851   :  { %v7270_v36 = vpop.eup %7269  ;;  %v5075_v37 = vadd.f32 1.0, %v7268_v35  ;;  %7295 = vpow2.f32 %v5352_v26  ;;  %v5309_v26 = vsub.f32 0.0, %v5239_v9  ;;  %v4986_v35 = vsub.f32 0.0, %v4910_v19 }
 0x852   :  { %v7272_v38 = vpop.eup %7271  ;;  %v5396_v39 = vadd.f32 1.0, %v7270_v36  ;;  %7297 = vpow2.f32 %v5027_v55  ;;  %v4923_v36 = vadd.f32 %v8262_v13, %v4922_v31  ;;  %v5312_v48 = vsub.f32 0.0, %v5252_v30 }
 0x853   :  { %v7274_v41 = vpop.eup %7273  ;;  %7299 = vrcp.f32 %v5075_v37  ;;  %v5073_v42 = vadd.f32 1.0, %v7272_v38  ;;  %v7085_v37 = vpop.f32.mrf.mxu1  ;;  %v5360_v44 = vmul.f32 1.442695, %v5309_v26  ;;  %v5035_v51 = vmul.f32 1.442695, %v4986_v35 }
 0x854   :  { %v7276_v45 = vpop.eup %7275  ;;  %7301 = vrcp.f32 %v5396_v39  ;;  %v5394_v46 = vadd.f32 1.0, %v7274_v41  ;;  %v5039_v39 = vmul.f32 1.442695, %v4988_v23  ;;  %v5244_v41 = vadd.f32 %v8262_v13, %v5243_v20 }
 0x855   :  { %v7278_v47 = vpop.eup %7277  ;;  %5487 = vst [vmem:[%s8525_s3 + $0x128] sm:$0xff] %v7276_v45  ;;  %7303 = vrcp.f32 %v5073_v42  ;;  %v4925_v42 = vpop.f32.mrf.mxu0  ;;  %v4991_v45 = vsub.f32 0.0, %v4931_v27 }
 0x856   :  { %v7280_v11 = vpop.eup %7279  ;;  %7305 = vrcp.f32 %v5394_v46  ;;  %v5076_v50 = vadd.f32 1.0, %v7278_v47  ;;  %v4934_v46 = vadd.f32 %v7037_v24, %v8262_v13  ;;  %v5246_v56 = vpop.f32.mrf.mxu1  ;;  %v5310_v59 = vsub.f32 0.0, %v5244_v41 }
 0x857   :  { %v7282_v53 = vpop.eup %7281  ;;  %v5397_v54 = vadd.f32 1.0, %v7280_v11  ;;  %7307 = vpow2.f32 %v5348_v43  ;;  %v5255_v11 = vadd.f32 %v7085_v37, %v8262_v13  ;;  %v5045_v62 = vmul.f32 1.442695, %v4991_v45 }
 0x858   :  { %v7284_v57 = vpop.eup %7283  ;;  %7309 = vrcp.f32 %v5076_v50  ;;  %v5074_v58 = vadd.f32 1.0, %v7282_v53  ;;  %v4989_v53 = vsub.f32 0.0, %v4923_v36  ;;  %v4992_v63 = vsub.f32 0.0, %v4934_v46  ;;  %v7088_v5 = vpop.f32.mrf.mxu1 }
 0x859   :  { %v7286_v60 = vpop.eup %7285  ;;  %7311 = vrcp.f32 %v5397_v54  ;;  %v5395_v61 = vadd.f32 1.0, %v7284_v57  ;;  %v4926_v54 = vadd.f32 %v8262_v13, %v4925_v42  ;;  %v5313_v2 = vsub.f32 0.0, %v5255_v11 }
 0x85a   :  { %v7288_v0 = vpop.eup %7287  ;;  %7313 = vrcp.f32 %v5074_v58  ;;  %v5079_v1 = vadd.f32 1.0, %v7286_v60  ;;  %v5356_v58 = vmul.f32 1.442695, %v5307_v40  ;;  %v7040_v60 = vpop.f32.mrf.mxu0  ;;  %v5268_v35 = vadd.f32 %v7088_v5, %v8262_v13 }
 0x85b   :  { %v7290_v28 = vpop.eup %7289  ;;  %7315 = vrcp.f32 %v5395_v61  ;;  %v5400_v4 = vadd.f32 1.0, %v7288_v0 }
 0x85c   :  { %v7292_v6 = vpop.eup %7291  ;;  %7317 = vrcp.f32 %v5079_v1  ;;  %v5077_v7 = vadd.f32 1.0, %v7290_v28  ;;  %v5366_v1 = vmul.f32 1.442695, %v5312_v48  ;;  %v5041_v28 = vmul.f32 1.442695, %v4989_v53 }
 0x85d   :  { %v7294_v10 = vpop.eup %7293  ;;  %7319 = vrcp.f32 %v5400_v4  ;;  %v5398_v12 = vadd.f32 1.0, %v7292_v6  ;;  %v4990_v4 = vsub.f32 0.0, %v4926_v54  ;;  %v5362_v6 = vmul.f32 1.442695, %v5310_v59 }
 0x85e   :  { %v7296_v16 = vpop.eup %7295  ;;  %7321 = vrcp.f32 %v5077_v7  ;;  %v5080_v17 = vadd.f32 1.0, %v7294_v10  ;;  %v5247_v7 = vadd.f32 %v8262_v13, %v5246_v56  ;;  %v5047_v10 = vmul.f32 1.442695, %v4992_v63 }
 0x85f   :  { %v7298_v21 = vpop.eup %7297  ;;  %7323 = vrcp.f32 %v5398_v12  ;;  %v5401_v22 = vadd.f32 1.0, %v7296_v16  ;;  %v5043_v16 = vmul.f32 1.442695, %v4990_v4 }
 0x860   :  { %v7300_v25 = vpop.eup %7299  ;;  %7325 = vrcp.f32 %v5080_v17  ;;  %v5078_v52 = vadd.f32 1.0, %v7298_v21  ;;  %v5259_v17 = vpop.f32.mrf.mxu1  ;;  %v5311_v19 = vsub.f32 0.0, %v5247_v7 }
 0x861   :  { %v7302_v55 = vpop.eup %7301  ;;  %5460 = vst [vmem:[%s8525_s3 + $0x50] sm:$0xff] %v7300_v25  ;;  %7327 = vrcp.f32 %v5401_v22 }
 0x862   :  { %v7304_v32 = vpop.eup %7303  ;;  %5492 = vst [vmem:[%s8525_s3 + $0x150] sm:$0xff] %v7302_v55  ;;  %7329 = vrcp.f32 %v5078_v52  ;;  %v7089_v25 = vpop.f32.mrf.mxu1  ;;  %v5364_v27 = vmul.f32 1.442695, %v5311_v19 }
 0x863   :  { %v7306_v38 = vpop.eup %7305  ;;  %5458 = vst [vmem:[%s8525_s3 + $0x40] sm:$0xff] %v7304_v32  ;;  %7331 = vpow2.f32 %v5037_v34  ;;  %v4938_v34 = vpop.f32.mrf.mxu0 }
 0x864   :  { %v7308_v43 = vpop.eup %7307  ;;  %5490 = vst [vmem:[%s8525_s3 + $0x140] sm:$0xff] %v7306_v38  ;;  %7333 = vpow2.f32 %v5358_v14  ;;  %v5368_v14 = vmul.f32 1.442695, %v5313_v2  ;;  %v5262_v38 = vpop.f32.mrf.mxu1 }
 0x865   :  { %v7310_v8 = vpop.eup %7309  ;;  %v5399_v47 = vadd.f32 1.0, %v7308_v43  ;;  %7335 = vpow2.f32 %v5033_v29  ;;  %v7041_v20 = vpop.f32.mrf.mxu0 }
 0x866   :  { %v7312_v50 = vpop.eup %7311  ;;  %5461 = vst [vmem:[%s8525_s3 + $0x58] sm:$0xff] %v7310_v8  ;;  %7337 = vpow2.f32 %v5354_v33  ;;  %v4947_v33 = vadd.f32 %v7040_v60, %v8262_v13  ;;  %v4950_v56 = vadd.f32 %v7041_v20, %v8262_v13 }
 0x867   :  { %v7314_v57 = vpop.eup %7313  ;;  %5493 = vst [vmem:[%s8525_s3 + $0x158] sm:$0xff] %v7312_v50  ;;  %7339 = vrcp.f32 %v5399_v47  ;;  %v4941_v55 = vpop.f32.mrf.mxu0  ;;  %v5316_v47 = vsub.f32 0.0, %v5268_v35  ;;  %v5260_v50 = vadd.f32 %v8262_v13, %v5259_v17 }
 0x868   :  { %v7316_v61 = vpop.eup %7315  ;;  %5459 = vst [vmem:[%s8525_s3 + $0x48] sm:$0xff] %v7314_v57  ;;  %7341 = vpow2.f32 %v5039_v39  ;;  %v4995_v8 = vsub.f32 0.0, %v4947_v33  ;;  %v4942_v4 = vadd.f32 %v8262_v13, %v4941_v55  ;;  %v4996_v7 = vsub.f32 0.0, %v4950_v56  ;;  %v7461_v56 = vld [vmem:[%s8524_s2 + $0x9] ss:$0 sm:$0xff] }
 0x869   :  { %v7318_v0 = vpop.eup %7317  ;;  %5491 = vst [vmem:[%s8525_s3 + $0x148] sm:$0xff] %v7316_v61  ;;  %7343 = vpow2.f32 %v5360_v44  ;;  %v7044_v41 = vpop.f32.mrf.mxu0  ;;  %v4939_v44 = vadd.f32 %v8262_v13, %v4938_v34  ;;  %v5271_v61 = vadd.f32 %v7089_v25, %v8262_v13  ;;  %v5263_v34 = vadd.f32 %v8262_v13, %v5262_v38 }
 0x86a   :  { %v7320_v3 = vpop.eup %7319  ;;  %5464 = vst [vmem:[%s8525_s3 + $0x70] sm:$0xff] %v7318_v0  ;;  %7345 = vpow2.f32 %v5035_v51  ;;  %v7092_v51 = vpop.f32.mrf.mxu1  ;;  %v5053_v0 = vmul.f32 1.442695, %v4995_v8 }
 0x86b   :  { %v7322_v31 = vpop.eup %7321  ;;  %5496 = vst [vmem:[%s8525_s3 + $0x170] sm:$0xff] %v7320_v3  ;;  %7347 = vpow2.f32 %v5356_v58  ;;  %v4954_v57 = vpop.f32.mrf.mxu0  ;;  %v4993_v60 = vsub.f32 0.0, %v4939_v44  ;;  %v5315_v25 = vsub.f32 0.0, %v5263_v34 }
 0x86c   :  { %v7324_v9 = vpop.eup %7323  ;;  %5462 = vst [vmem:[%s8525_s3 + $0x60] sm:$0xff] %v7322_v31  ;;  %7349 = vpow2.f32 %v5045_v62  ;;  %v5275_v5 = vpop.f32.mrf.mxu1 }
 0x86d   :  { %v7326_v12 = vpop.eup %7325  ;;  %5494 = vst [vmem:[%s8525_s3 + $0x160] sm:$0xff] %v7324_v9  ;;  %7351 = vpow2.f32 %v5366_v1  ;;  %v5374_v1 = vmul.f32 1.442695, %v5316_v47  ;;  %v7045_v9 = vpop.f32.mrf.mxu0  ;;  %v5049_v17 = vmul.f32 1.442695, %v4993_v60 }
 0x86e   :  { %v7328_v15 = vpop.eup %7327  ;;  %5465 = vst [vmem:[%s8525_s3 + $0x78] sm:$0xff] %v7326_v12  ;;  %7353 = vpow2.f32 %v5041_v28  ;;  %v5314_v28 = vsub.f32 0.0, %v5260_v50 }
 0x86f   :  { %v7330_v18 = vpop.eup %7329  ;;  %5497 = vst [vmem:[%s8525_s3 + $0x178] sm:$0xff] %v7328_v15  ;;  %7355 = vpow2.f32 %v5362_v6  ;;  %v4963_v15 = vadd.f32 %v7044_v41, %v8262_v13 }
 0x870   :  { %v7332_v21 = vpop.eup %7331  ;;  %5463 = vst [vmem:[%s8525_s3 + $0x68] sm:$0xff] %v7330_v18  ;;  %7357 = vpow2.f32 %v5047_v10  ;;  %v5284_v18 = vadd.f32 %v7092_v51, %v8262_v13  ;;  %v5370_v20 = vmul.f32 1.442695, %v5314_v28 }
 0x871   :  { %v7334_v22 = vpop.eup %7333  ;;  %v5083_v23 = vadd.f32 1.0, %v7332_v21  ;;  %7359 = vpow2.f32 %v5368_v14  ;;  %v5317_v14 = vsub.f32 0.0, %v5271_v61  ;;  %v4994_v21 = vsub.f32 0.0, %v4942_v4 }
 0x872   :  { %v7336_v49 = vpop.eup %7335  ;;  %v5404_v24 = vadd.f32 1.0, %v7334_v22  ;;  %7361 = vpow2.f32 %v5043_v16  ;;  %v4955_v22 = vadd.f32 %v8262_v13, %v4954_v57  ;;  %v5320_v35 = vsub.f32 0.0, %v5284_v18 }
 0x873   :  { %v7338_v52 = vpop.eup %7337  ;;  %7363 = vrcp.f32 %v5083_v23  ;;  %v5081_v26 = vadd.f32 1.0, %v7336_v49  ;;  %v7093_v23 = vpop.f32.mrf.mxu1  ;;  %v5376_v55 = vmul.f32 1.442695, %v5317_v14  ;;  %v5051_v38 = vmul.f32 1.442695, %v4994_v21 }
 0x874   :  { %v7340_v29 = vpop.eup %7339  ;;  %7365 = vrcp.f32 %v5404_v24  ;;  %v5402_v30 = vadd.f32 1.0, %v7338_v52  ;;  %v5055_v24 = vmul.f32 1.442695, %v4996_v7  ;;  %v5276_v52 = vadd.f32 %v8262_v13, %v5275_v5 }
 0x875   :  { %v7342_v32 = vpop.eup %7341  ;;  %5495 = vst [vmem:[%s8525_s3 + $0x168] sm:$0xff] %v7340_v29  ;;  %7367 = vrcp.f32 %v5081_v26  ;;  %v4957_v26 = vpop.f32.mrf.mxu0  ;;  %v4999_v29 = vsub.f32 0.0, %v4963_v15 }
 0x876   :  { %v7344_v36 = vpop.eup %7343  ;;  %7369 = vrcp.f32 %v5402_v30  ;;  %v5084_v37 = vadd.f32 1.0, %v7342_v32  ;;  %v4966_v30 = vadd.f32 %v7045_v9, %v8262_v13  ;;  %v5278_v8 = vpop.f32.mrf.mxu1 }
 0x877   :  { %v7346_v39 = vpop.eup %7345  ;;  %v5405_v40 = vadd.f32 1.0, %v7344_v36  ;;  %7371 = vpow2.f32 %v5364_v27  ;;  %v5287_v36 = vadd.f32 %v7093_v23, %v8262_v13  ;;  %v5279_v57 = vadd.f32 %v7461_v56, %v5278_v8 }
 0x878   :  { %v7348_v42 = vpop.eup %7347  ;;  %7373 = vrcp.f32 %v5084_v37  ;;  %v5082_v43 = vadd.f32 1.0, %v7346_v39  ;;  %v4997_v39 = vsub.f32 0.0, %v4955_v22 }
 0x879   :  { %v7350_v45 = vpop.eup %7349  ;;  %7375 = vrcp.f32 %v5405_v40  ;;  %v5403_v46 = vadd.f32 1.0, %v7348_v42  ;;  %v4958_v40 = vadd.f32 %v8262_v13, %v4957_v26  ;;  %v5372_v42 = vmul.f32 1.442695, %v5315_v25 }
 0x87a   :  { %v7352_v48 = vpop.eup %7351  ;;  %7377 = vrcp.f32 %v5082_v43  ;;  %v5087_v11 = vadd.f32 1.0, %v7350_v45  ;;  %v5318_v43 = vsub.f32 0.0, %v5276_v52  ;;  %v5061_v45 = vmul.f32 1.442695, %v4999_v29 }
 0x87b   :  { %v7354_v53 = vpop.eup %7353  ;;  %7379 = vrcp.f32 %v5403_v46  ;;  %v5408_v54 = vadd.f32 1.0, %v7352_v48  ;;  %v5000_v46 = vsub.f32 0.0, %v4966_v30  ;;  %v5382_v13 = vmul.f32 1.442695, %v5320_v35 }
 0x87c   :  { %v7356_v58 = vpop.eup %7355  ;;  %7381 = vrcp.f32 %v5087_v11  ;;  %v5085_v59 = vadd.f32 1.0, %v7354_v53  ;;  %v5321_v48 = vsub.f32 0.0, %v5287_v36  ;;  %v5057_v50 = vmul.f32 1.442695, %v4997_v39 }
 0x87d   :  { %v7358_v62 = vpop.eup %7357  ;;  %7383 = vrcp.f32 %v5408_v54  ;;  %v5406_v63 = vadd.f32 1.0, %v7356_v58  ;;  %v4998_v51 = vsub.f32 0.0, %v4958_v40  ;;  %v5378_v54 = vmul.f32 1.442695, %v5318_v43 }
 0x87e   :  { %v7360_v2 = vpop.eup %7359  ;;  %7385 = vrcp.f32 %v5085_v59  ;;  %v5088_v3 = vadd.f32 1.0, %v7358_v62  ;;  %v5063_v59 = vmul.f32 1.442695, %v5000_v46  ;;  %v5384_v61 = vmul.f32 1.442695, %v5321_v48 }
 0x87f   :  { %v7362_v31 = vpop.eup %7361  ;;  %7387 = vrcp.f32 %v5406_v63  ;;  %v5409_v6 = vadd.f32 1.0, %v7360_v2  ;;  %v5059_v63 = vmul.f32 1.442695, %v4998_v51 }
 0x880   :  { %v7364_v10 = vpop.eup %7363  ;;  %7389 = vrcp.f32 %v5088_v3  ;;  %v5086_v12 = vadd.f32 1.0, %v7362_v31 }
 0x881   :  { %v7366_v16 = vpop.eup %7365  ;;  %5468 = vst [vmem:[%s8525_s3 + $0x90] sm:$0xff] %v7364_v10  ;;  %7391 = vrcp.f32 %v5409_v6 }
 0x882   :  { %v7368_v19 = vpop.eup %7367  ;;  %5500 = vst [vmem:[%s8525_s3 + $0x190] sm:$0xff] %v7366_v16  ;;  %7393 = vrcp.f32 %v5086_v12 }
 0x883   :  { %v7370_v49 = vpop.eup %7369  ;;  %5466 = vst [vmem:[%s8525_s3 + $0x80] sm:$0xff] %v7368_v19  ;;  %7395 = vpow2.f32 %v5053_v0 }
 0x884   :  { %v7372_v27 = vpop.eup %7371  ;;  %5498 = vst [vmem:[%s8525_s3 + $0x180] sm:$0xff] %v7370_v49  ;;  %7397 = vpow2.f32 %v5374_v1  ;;  %v5319_v1 = vsub.f32 0.0, %v5279_v57 }
 0x885   :  { %v7374_v32 = vpop.eup %7373  ;;  %v5407_v33 = vadd.f32 1.0, %v7372_v27  ;;  %7399 = vpow2.f32 %v5049_v17 }
 0x886   :  { %v7376_v37 = vpop.eup %7375  ;;  %5469 = vst [vmem:[%s8525_s3 + $0x98] sm:$0xff] %v7374_v32  ;;  %7401 = vpow2.f32 %v5370_v20  ;;  %v5380_v7 = vmul.f32 1.442695, %v5319_v1 }
 0x887   :  { %v7378_v41 = vpop.eup %7377  ;;  %5501 = vst [vmem:[%s8525_s3 + $0x198] sm:$0xff] %v7376_v37  ;;  %7403 = vrcp.f32 %v5407_v33 }
 0x888   :  { %v7380_v44 = vpop.eup %7379  ;;  %5467 = vst [vmem:[%s8525_s3 + $0x88] sm:$0xff] %v7378_v41  ;;  %7405 = vpow2.f32 %v5055_v24 }
 0x889   :  { %v7382_v47 = vpop.eup %7381  ;;  %5499 = vst [vmem:[%s8525_s3 + $0x188] sm:$0xff] %v7380_v44  ;;  %7407 = vpow2.f32 %v5376_v55 }
 0x88a   :  { %v7384_v11 = vpop.eup %7383  ;;  %5472 = vst [vmem:[%s8525_s3 + $0xb0] sm:$0xff] %v7382_v47  ;;  %7409 = vpow2.f32 %v5051_v38 }
 0x88b   :  { %v7386_v53 = vpop.eup %7385  ;;  %5504 = vst [vmem:[%s8525_s3 + $0x1b0] sm:$0xff] %v7384_v11  ;;  %7411 = vpow2.f32 %v5372_v42 }
 0x88c   :  { %v7388_v58 = vpop.eup %7387  ;;  %5470 = vst [vmem:[%s8525_s3 + $0xa0] sm:$0xff] %v7386_v53  ;;  %7413 = vpow2.f32 %v5061_v45 }
 0x88d   :  { %v7390_v60 = vpop.eup %7389  ;;  %5502 = vst [vmem:[%s8525_s3 + $0x1a0] sm:$0xff] %v7388_v58  ;;  %7415 = vpow2.f32 %v5382_v13 }
 0x88e   :  { %v7392_v62 = vpop.eup %7391  ;;  %5473 = vst [vmem:[%s8525_s3 + $0xb8] sm:$0xff] %v7390_v60  ;;  %7417 = vpow2.f32 %v5057_v50 }
 0x88f   :  { %v7394_v0 = vpop.eup %7393  ;;  %5505 = vst [vmem:[%s8525_s3 + $0x1b8] sm:$0xff] %v7392_v62  ;;  %7419 = vpow2.f32 %v5378_v54 }
 0x890   :  { %v7396_v2 = vpop.eup %7395  ;;  %5471 = vst [vmem:[%s8525_s3 + $0xa8] sm:$0xff] %v7394_v0  ;;  %7421 = vpow2.f32 %v5063_v59 }
 0x891   :  { %v7398_v3 = vpop.eup %7397  ;;  %v5091_v28 = vadd.f32 1.0, %v7396_v2  ;;  %7423 = vpow2.f32 %v5384_v61 }
 0x892   :  { %v7400_v4 = vpop.eup %7399  ;;  %v5412_v5 = vadd.f32 1.0, %v7398_v3  ;;  %7425 = vpow2.f32 %v5059_v63 }
 0x893   :  { %v7402_v31 = vpop.eup %7401  ;;  %7427 = vrcp.f32 %v5091_v28  ;;  %v5089_v6 = vadd.f32 1.0, %v7400_v4 }
 0x894   :  { %v7404_v34 = vpop.eup %7403  ;;  %7429 = vrcp.f32 %v5412_v5  ;;  %v5410_v9 = vadd.f32 1.0, %v7402_v31 }
 0x895   :  { %v7406_v10 = vpop.eup %7405  ;;  %5503 = vst [vmem:[%s8525_s3 + $0x1a8] sm:$0xff] %v7404_v34  ;;  %7431 = vrcp.f32 %v5089_v6 }
 0x896   :  { %v7408_v12 = vpop.eup %7407  ;;  %7433 = vrcp.f32 %v5410_v9  ;;  %v5092_v14 = vadd.f32 1.0, %v7406_v10 }
 0x897   :  { %v7410_v15 = vpop.eup %7409  ;;  %v5413_v16 = vadd.f32 1.0, %v7408_v12  ;;  %7435 = vpow2.f32 %v5380_v7 }
 0x898   :  { %v7412_v17 = vpop.eup %7411  ;;  %7437 = vrcp.f32 %v5092_v14  ;;  %v5090_v18 = vadd.f32 1.0, %v7410_v15 }
 0x899   :  { %v7414_v19 = vpop.eup %7413  ;;  %7439 = vrcp.f32 %v5413_v16  ;;  %v5411_v20 = vadd.f32 1.0, %v7412_v17 }
 0x89a   :  { %v7416_v21 = vpop.eup %7415  ;;  %7441 = vrcp.f32 %v5090_v18  ;;  %v5095_v22 = vadd.f32 1.0, %v7414_v19 }
 0x89b   :  { %v7418_v23 = vpop.eup %7417  ;;  %7443 = vrcp.f32 %v5411_v20  ;;  %v5416_v49 = vadd.f32 1.0, %v7416_v21 }
 0x89c   :  { %v7420_v24 = vpop.eup %7419  ;;  %7445 = vrcp.f32 %v5095_v22  ;;  %v5093_v25 = vadd.f32 1.0, %v7418_v23 }
 0x89d   :  { %v7422_v52 = vpop.eup %7421  ;;  %7447 = vrcp.f32 %v5416_v49  ;;  %v5414_v26 = vadd.f32 1.0, %v7420_v24 }
 0x89e   :  { %v7424_v27 = vpop.eup %7423  ;;  %7449 = vrcp.f32 %v5093_v25  ;;  %v5096_v55 = vadd.f32 1.0, %v7422_v52 }
 0x89f   :  { %v7426_v29 = vpop.eup %7425  ;;  %7451 = vrcp.f32 %v5414_v26  ;;  %v5417_v30 = vadd.f32 1.0, %v7424_v27 }
 0x8a0   :  { %v7428_v32 = vpop.eup %7427  ;;  %7453 = vrcp.f32 %v5096_v55  ;;  %v5094_v33 = vadd.f32 1.0, %v7426_v29 }
 0x8a1   :  { %v7430_v35 = vpop.eup %7429  ;;  %5476 = vst [vmem:[%s8525_s3 + $0xd0] sm:$0xff] %v7428_v32  ;;  %7455 = vrcp.f32 %v5417_v30 }
 0x8a2   :  { %v7432_v36 = vpop.eup %7431  ;;  %5508 = vst [vmem:[%s8525_s3 + $0x1d0] sm:$0xff] %v7430_v35  ;;  %7457 = vrcp.f32 %v5094_v33 }
 0x8a3   :  { %v7434_v37 = vpop.eup %7433  ;;  %5474 = vst [vmem:[%s8525_s3 + $0xc0] sm:$0xff] %v7432_v36 }
 0x8a4   :  { %v7436_v38 = vpop.eup %7435  ;;  %5506 = vst [vmem:[%s8525_s3 + $0x1c0] sm:$0xff] %v7434_v37 }
 0x8a5   :  { %v7438_v39 = vpop.eup %7437  ;;  %v5415_v40 = vadd.f32 1.0, %v7436_v38 }
 0x8a6   :  { %v7440_v41 = vpop.eup %7439  ;;  %5477 = vst [vmem:[%s8525_s3 + $0xd8] sm:$0xff] %v7438_v39 }
 0x8a7   :  { %v7442_v42 = vpop.eup %7441  ;;  %5509 = vst [vmem:[%s8525_s3 + $0x1d8] sm:$0xff] %v7440_v41  ;;  %7459 = vrcp.f32 %v5415_v40 }
 0x8a8   :  { %v7444_v43 = vpop.eup %7443  ;;  %5475 = vst [vmem:[%s8525_s3 + $0xc8] sm:$0xff] %v7442_v42 }
 0x8a9   :  { %v7446_v44 = vpop.eup %7445  ;;  %5507 = vst [vmem:[%s8525_s3 + $0x1c8] sm:$0xff] %v7444_v43 }
 0x8aa   :  { %v7448_v45 = vpop.eup %7447  ;;  %5480 = vst [vmem:[%s8525_s3 + $0xf0] sm:$0xff] %v7446_v44 }
 0x8ab   :  { %v7450_v46 = vpop.eup %7449  ;;  %5512 = vst [vmem:[%s8525_s3 + $0x1f0] sm:$0xff] %v7448_v45 }
 0x8ac   :  { %v7452_v8 = vpop.eup %7451  ;;  %5478 = vst [vmem:[%s8525_s3 + $0xe0] sm:$0xff] %v7450_v46 }
 0x8ad   :  { %v7454_v47 = vpop.eup %7453  ;;  %5510 = vst [vmem:[%s8525_s3 + $0x1e0] sm:$0xff] %v7452_v8 }
 0x8ae   :  { %v7456_v13 = vpop.eup %7455  ;;  %5481 = vst [vmem:[%s8525_s3 + $0xf8] sm:$0xff] %v7454_v47 }
 0x8af   :  { %v7458_v48 = vpop.eup %7457  ;;  %5513 = vst [vmem:[%s8525_s3 + $0x1f8] sm:$0xff] %v7456_v13 }
 0x8b0   :  { %5479 = vst [vmem:[%s8525_s3 + $0xe8] sm:$0xff] %v7458_v48 }
 0x8b4   :  { %v7460_v11 = vpop.eup %7459 }
 0x8b5   :  { %5511 = vst [vmem:[%s8525_s3 + $0x1e8] sm:$0xff] %v7460_v11 }
 0x8b6   :  { %5518 = vsyncpa [#allocation3], 1 }

</bundles_post_ra>
